<compile_context>
chip_gen: v5e
topology: v5e:2x2
jax: 0.10.0
libtpu: 0.0.40
codegen_flags: <defaults>
</compile_context>

<pallas_src>
import functools
import math

import jax
import jax.numpy as jnp
from jax import lax
from jax.experimental import pallas as pl
from jax.experimental.pallas import tpu as pltpu


def _round_up(x, m):
    return (x + m - 1) // m * m


# ---------------------------------------------------------------------------
# Pallas kernels
# ---------------------------------------------------------------------------

def _mlp_kernel(*refs, has_bias, relus):
    """Fused chain of linear layers on one (tm, K0) row tile.

    refs = (x_ref, w0[, b0], w1[, b1], ..., o_ref).
    MXU operands are bf16; accumulation, bias add and ReLU are f32.
    """
    x_ref = refs[0]
    o_ref = refs[-1]
    h = x_ref[...]
    idx = 1
    for i in range(len(has_bias)):
        w = refs[idx][...]
        idx += 1
        y = jnp.dot(h.astype(jnp.bfloat16), w, preferred_element_type=jnp.float32)
        if has_bias[i]:
            y = y + refs[idx][...]
            idx += 1
        if relus[i]:
            y = jnp.maximum(y, 0.0)
        h = y
    o_ref[...] = h


def pallas_mlp(x, layers, relus=None, tm_target=1024):
    """y = chain_i( x @ w_i (+ b_i) (, ReLU) ), all matmuls fused in one Pallas kernel,
    tiled and software-pipelined over the row dimension.

    x: (..., K0); layers: sequence of (w, b) with b possibly None; relus: per-layer bool.
    """
    layers = list(layers)
    n_layers = len(layers)
    if relus is None:
        relus = (False,) * n_layers
    relus = tuple(bool(r) for r in relus)
    assert len(relus) == n_layers

    k0 = x.shape[-1]
    lead = x.shape[:-1]
    n_out = layers[-1][0].shape[1]

    x2 = x.reshape(-1, k0).astype(jnp.bfloat16)
    m = x2.shape[0]
    if m > tm_target:
        tm = tm_target                       # tiled path: pipelined, megacore-shardable
        mp = _round_up(m, tm)
        if mp != m:
            x2 = jnp.pad(x2, ((0, mp - m), (0, 0)))
    else:
        tm = m                               # small M: one full-array block
        mp = m
    grid = (mp // tm,)

    args = [x2]
    in_specs = [pl.BlockSpec((tm, k0), lambda i: (i, 0))]
    has_bias = []
    for (w, b) in layers:
        k_in, k_out = w.shape
        args.append(w.astype(jnp.bfloat16))
        in_specs.append(pl.BlockSpec((k_in, k_out), lambda i: (0, 0)))
        if b is not None:
            args.append(b.reshape(1, k_out).astype(jnp.float32))
            in_specs.append(pl.BlockSpec((1, k_out), lambda i: (0, 0)))
            has_bias.append(True)
        else:
            has_bias.append(False)

    out = pl.pallas_call(
        functools.partial(_mlp_kernel, has_bias=tuple(has_bias), relus=relus),
        out_shape=jax.ShapeDtypeStruct((mp, n_out), jnp.float32),
        grid=grid,
        in_specs=in_specs,
        out_specs=pl.BlockSpec((tm, n_out), lambda i: (i, 0)),
        compiler_params=pltpu.CompilerParams(
            dimension_semantics=("parallel",),
            vmem_limit_bytes=48 * 1024 * 1024),   # safe on v5e/v6e (128 MiB) and v7x (64 MiB)
    )(*args)
    if mp != m:
        out = out[:m]
    return out.reshape(lead + (n_out,))


def pallas_linear(x, w, b=None, relu=False):
    return pallas_mlp(x, [(w, b)], relus=(relu,))


def _vec_attn_kernel(x_ref, vp_ref, w1_ref, b1_ref, w2_ref, b2_ref, o_ref, *, scale):
    """Vector attention on a tn-point tile of one batch element.

    x  = q - k + pos_enc  : (1, K, tn, dm) f32  (neighbor-major)
    vp = v + pos_enc      : (1, K, tn, dm) f32
    out_i = sum_j softmax_j(gamma(x)_{j,i}) * vp_{j,i}   (softmax over the K neighbors)

    The gamma MLP runs as ONE (K*tn, dm) matmul pair (bf16 MXU operands, f32 accumulation)
    instead of K tiny matmuls; the softmax uses a running max + approx reciprocal.
    """
    nk = x_ref.shape[1]
    tn = o_ref.shape[1]
    dm = o_ref.shape[2]

    # tn is padded to a multiple of 8 by the wrapper, so this collapse is layout-preserving.
    xf = x_ref[0].reshape(nk * tn, dm)
    h = jnp.dot(xf.astype(jnp.bfloat16), w1_ref[...],
                preferred_element_type=jnp.float32) + b1_ref[...]
    h = jnp.maximum(h, 0.0)
    a = jnp.dot(h.astype(jnp.bfloat16), w2_ref[...],
                preferred_element_type=jnp.float32) + b2_ref[...]
    a = a * scale                                    # (nk*tn, dm) logits; neighbor j = rows [j*tn, (j+1)*tn)

    m = a[0:tn]
    for j in range(1, nk):
        m = jnp.maximum(m, a[j * tn:(j + 1) * tn])
    num = jnp.zeros((tn, dm), jnp.float32)
    den = jnp.zeros((tn, dm), jnp.float32)
    for j in range(nk):
        e = jnp.exp(a[j * tn:(j + 1) * tn] - m)      # softmax over the neighbor axis (dim=-2)
        den = den + e
        num = num + e * vp_ref[0, j]
    o_ref[0] = num * pl.reciprocal(den, approx=True)


def pallas_vector_attention(x, vp, w1, b1, w2, b2, tn_target=128):
    """x, vp: (B, K, N, dm) neighbor-major  ->  (B, N, dm)."""
    B, K, N, dm = x.shape
    scale = 1.0 / math.sqrt(dm)      # torch: attn / sqrt(k.size(-1)) with k.size(-1) == d_model

    if N > tn_target:
        tn = tn_target
    else:
        tn = _round_up(N, 8)
    n_pad = _round_up(N, tn)
    if n_pad != N:
        pad = ((0, 0), (0, 0), (0, n_pad - N), (0, 0))
        x = jnp.pad(x, pad)          # padded points produce finite garbage, sliced off below
        vp = jnp.pad(vp, pad)
    grid = (B, n_pad // tn)

    g_spec = pl.BlockSpec((1, K, tn, dm), lambda b, i: (b, 0, i, 0))
    w_spec = pl.BlockSpec((dm, dm), lambda b, i: (0, 0))
    b_spec = pl.BlockSpec((1, dm), lambda b, i: (0, 0))
    out = pl.pallas_call(
        functools.partial(_vec_attn_kernel, scale=scale),
        out_shape=jax.ShapeDtypeStruct((B, n_pad, dm), jnp.float32),
        grid=grid,
        in_specs=[g_spec, g_spec, w_spec, b_spec, w_spec, b_spec],
        out_specs=pl.BlockSpec((1, tn, dm), lambda b, i: (b, i, 0)),
        compiler_params=pltpu.CompilerParams(
            dimension_semantics=("parallel", "parallel"),
            vmem_limit_bytes=48 * 1024 * 1024),
    )(x, vp,
      w1.astype(jnp.bfloat16), b1.reshape(1, dm).astype(jnp.float32),
      w2.astype(jnp.bfloat16), b2.reshape(1, dm).astype(jnp.float32))
    return out[:, :N]


# ---------------------------------------------------------------------------
# Point-cloud utilities (glue, plain JAX)
# ---------------------------------------------------------------------------

def square_distance(src, dst):
    # (B, N, 3), (B, M, 3) -> (B, N, M)
    return jnp.sum((src[:, :, None, :] - dst[:, None, :, :]) ** 2, axis=-1)


def index_points(points, idx):
    # points: (B, N, C); idx: (B, ...) -> (B, ..., C)
    B = points.shape[0]
    batch_idx = jnp.arange(B).reshape((B,) + (1,) * (idx.ndim - 1))
    return points[batch_idx, idx]


def knn_indices(query_xyz, ref_xyz, k):
    # top_k (O(N^2 * k)) instead of a full argsort (O(N^2 log N)) over the distance matrix.
    dists = square_distance(query_xyz, ref_xyz)
    _, idx = lax.top_k(-dists, k)
    return idx                                                     # (B, Q, k) int32


def farthest_point_sample(xyz, npoint):
    # TODO(synk): torch FPS starts from torch.randint(0, N, (B,)); deterministic start index 0 here.
    B, N, _ = xyz.shape

    def body(i, state):
        centroids, distance, farthest = state
        centroids = centroids.at[:, i].set(farthest)
        centroid = xyz[jnp.arange(B), farthest][:, None, :]         # (B, 1, 3)
        dist = jnp.sum((xyz - centroid) ** 2, axis=-1)
        distance = jnp.minimum(distance, dist)
        farthest = jnp.argmax(distance, axis=-1).astype(jnp.int32)
        return centroids, distance, farthest

    centroids = jnp.zeros((B, npoint), dtype=jnp.int32)
    distance = jnp.full((B, N), 1e10, dtype=jnp.float32)
    farthest = jnp.zeros((B,), dtype=jnp.int32)
    centroids, _, _ = lax.fori_loop(0, npoint, body, (centroids, distance, farthest))
    return centroids


# ---------------------------------------------------------------------------
# Model blocks
# ---------------------------------------------------------------------------

def transformer_block(p, xyz, features, k):
    """Point-Transformer vector-attention block. xyz: (B,N,3), features: (B,N,d_points)."""
    dm = p['g1_w'].shape[0]

    knn_idx = knn_indices(xyz, xyz, k)                              # (B, N, k)
    knn_idx_t = jnp.transpose(knn_idx, (0, 2, 1))                   # (B, k, N): cheap int transpose;
                                                                    # gathers then land neighbor-major directly
    pre = features

    # fc1 + fused (no-bias) Q/K/V projection: one kernel, 3*dm-wide (lane-dense) output.
    wqkv = jnp.concatenate([p['wq_w'], p['wk_w'], p['wv_w']], axis=1)        # (dm, 3*dm)
    qkv = pallas_mlp(features, [(p['fc1_w'], p['fc1_b']), (wqkv, None)],
                     relus=(False, False))                          # (B, N, 3*dm)
    q = qkv[..., :dm]
    kf = qkv[..., dm:2 * dm]
    vf = qkv[..., 2 * dm:]

    kg = index_points(kf, knn_idx_t)                                # (B, k, N, dm)
    vg = index_points(vf, knn_idx_t)                                # (B, k, N, dm)

    # fc_delta positional encoding: both linears fused in one kernel.
    rel = xyz[:, None, :, :] - index_points(xyz, knn_idx_t)         # (B, k, N, 3)
    pos = pallas_mlp(rel, [(p['d1_w'], p['d1_b']), (p['d2_w'], p['d2_b'])],
                     relus=(True, False))                           # (B, k, N, dm)

    x_attn = q[:, None, :, :] - kg + pos                            # gamma-MLP input
    vp = vg + pos                                                   # value + positional encoding
    res = pallas_vector_attention(x_attn, vp,
                                  p['g1_w'], p['g1_b'], p['g2_w'], p['g2_b'])
    res = pallas_linear(res, p['fc2_w'], p['fc2_b']) + pre
    return res


def transition_down(p, xyz, points, npoint, nsample):
    """PointNetSetAbstraction(knn=True, group_all=False) with train-mode BatchNorm."""
    fps_idx = farthest_point_sample(xyz, npoint)
    new_xyz = index_points(xyz, fps_idx)                            # (B, S, 3)
    idx = knn_indices(new_xyz, xyz, nsample)                        # (B, S, K)
    grouped_xyz = index_points(xyz, idx)                            # (B, S, K, 3)
    grouped_xyz_norm = grouped_xyz - new_xyz[:, :, None, :]
    grouped_points = index_points(points, idx)                      # (B, S, K, C)
    feat = jnp.concatenate([grouped_xyz_norm, grouped_points], axis=-1)

    for (w, b, gamma, beta) in p['mlp']:
        feat = pallas_linear(feat, w, b)                            # 1x1 Conv2d == per-point matmul
        # TODO(synk): BatchNorm2d uses training-mode batch statistics (no running stats available).
        mean = jnp.mean(feat, axis=(0, 1, 2))
        var = jnp.var(feat, axis=(0, 1, 2))
        feat = (feat - mean) * lax.rsqrt(var + 1e-5) * gamma + beta
        feat = jnp.maximum(feat, 0.0)

    new_points = jnp.max(feat, axis=2)                              # max over nsample -> (B, S, C_out)
    return new_xyz, new_points


def point_transformer_forward(params, x, cfg):
    xyz = x[..., :3]
    h = pallas_mlp(x, params['fc1'], relus=(True, False))           # Linear-ReLU-Linear fused
    points = transformer_block(params['transformer1'], xyz, h, cfg['nneighbor'])
    for i in range(cfg['nblocks']):
        npoint = cfg['npoints'] // 4 ** (i + 1)
        xyz, points = transition_down(params['td'][i], xyz, points, npoint, cfg['nneighbor'])
        points = transformer_block(params['tf'][i], xyz, points, cfg['nneighbor'])
    feat = jnp.mean(points, axis=1)
    return pallas_mlp(feat, params['fc2'], relus=(True, True, False))   # classifier head fused


# ---------------------------------------------------------------------------
# Deterministic parameter initialization
# ---------------------------------------------------------------------------

def init_params(key, cfg):
    dm = cfg['transformer_dim']
    keys = iter(jax.random.split(key, 512))

    def lin(d_in, d_out, bias=True):
        w = jax.random.normal(next(keys), (d_in, d_out), jnp.float32) / jnp.sqrt(d_in)
        b = jax.random.normal(next(keys), (d_out,), jnp.float32) * 0.02 if bias else None
        return w, b

    def tblock(d_points):
        p = {}
        p['fc1_w'], p['fc1_b'] = lin(d_points, dm)
        p['fc2_w'], p['fc2_b'] = lin(dm, d_points)
        p['d1_w'], p['d1_b'] = lin(3, dm)
        p['d2_w'], p['d2_b'] = lin(dm, dm)
        p['g1_w'], p['g1_b'] = lin(dm, dm)
        p['g2_w'], p['g2_b'] = lin(dm, dm)
        p['wq_w'], _ = lin(dm, dm, bias=False)
        p['wk_w'], _ = lin(dm, dm, bias=False)
        p['wv_w'], _ = lin(dm, dm, bias=False)
        return p

    params = {}
    params['fc1'] = [lin(cfg['d_points'], 32), lin(32, 32)]
    params['transformer1'] = tblock(32)
    params['td'] = []
    params['tf'] = []
    for i in range(cfg['nblocks']):
        channel = 32 * 2 ** (i + 1)
        last = channel // 2 + 3
        mlp = []
        for c_out in (channel, channel):
            w, b = lin(last, c_out)
            gamma = jnp.ones((c_out,), jnp.float32)
            beta = jnp.zeros((c_out,), jnp.float32)
            mlp.append((w, b, gamma, beta))
            last = c_out
        params['td'].append({'mlp': mlp})
        params['tf'].append(tblock(channel))
    params['fc2'] = [lin(32 * 2 ** cfg['nblocks'], 256), lin(256, 64), lin(64, cfg['n_c'])]
    return params


# ---------------------------------------------------------------------------

if __name__ == "__main__":
    cfg = dict(npoints=64, nblocks=2, nneighbor=4, n_c=5, d_points=3, transformer_dim=32)
    key = jax.random.PRNGKey(0)
    kparam, kx = jax.random.split(key)
    params = init_params(kparam, cfg)
    x = jax.random.normal(kx, (2, cfg['npoints'], cfg['d_points']), jnp.float32)

    fwd = jax.jit(lambda p, inp: point_transformer_forward(p, inp, cfg))
    out = jax.block_until_ready(fwd(params, x))
    assert out.shape == (2, cfg['n_c']), out.shape
    assert jnp.all(jnp.isfinite(out))
    print("KERNEL_OK")
</pallas_src>

<mosaic_0001>
module attributes {stable_mosaic.version = 11 : i64} {
  func.func @_mlp_kernel(%arg0: i32, %arg1: memref<128x3xbf16, #tpu.memory_space<vmem>>, %arg2: memref<3x32xbf16, #tpu.memory_space<vmem>>, %arg3: memref<1x32xf32, #tpu.memory_space<vmem>>, %arg4: memref<32x32xbf16, #tpu.memory_space<vmem>>, %arg5: memref<1x32xf32, #tpu.memory_space<vmem>>, %arg6: memref<128x32xf32, #tpu.memory_space<vmem>>) attributes {dimension_semantics = [#tpu.dimension_semantics<parallel>], iteration_bounds = array<i64: 1>, scalar_prefetch = 0 : i64, scratch_operands = 0 : i64, tpu.core_type = #tpu.core_type<tc>, window_params = [{transform_indices = @transform_0, window_bounds = array<i64: 128, 3>}, {pipeline_mode = #tpu.pipeline_mode<synchronous>, transform_indices = @transform_1, window_bounds = array<i64: 3, 32>}, {pipeline_mode = #tpu.pipeline_mode<synchronous>, transform_indices = @transform_2, window_bounds = array<i64: 1, 32>}, {pipeline_mode = #tpu.pipeline_mode<synchronous>, transform_indices = @transform_3, window_bounds = array<i64: 32, 32>}, {pipeline_mode = #tpu.pipeline_mode<synchronous>, transform_indices = @transform_4, window_bounds = array<i64: 1, 32>}, {transform_indices = @transform_5, window_bounds = array<i64: 128, 32>}]} {
    %c0 = arith.constant 0 : index
    %c0_0 = arith.constant 0 : index
    %0 = vector.load %arg1[%c0, %c0_0] : memref<128x3xbf16, #tpu.memory_space<vmem>>, vector<128x3xbf16>
    %c0_1 = arith.constant 0 : index
    %c0_2 = arith.constant 0 : index
    %1 = vector.load %arg2[%c0_1, %c0_2] : memref<3x32xbf16, #tpu.memory_space<vmem>>, vector<3x32xbf16>
    %cst = arith.constant dense<0.000000e+00> : vector<128x32xf32>
    %2 = tpu.matmul %0, %1, %cst {dimension_numbers = #tpu.dot_dimension_numbers<[1], [0], [0], [1], [0, 0, 1, 1], [], []>} : vector<128x3xbf16>, vector<3x32xbf16>, vector<128x32xf32> -> vector<128x32xf32>
    %c0_3 = arith.constant 0 : index
    %c0_4 = arith.constant 0 : index
    %3 = vector.load %arg3[%c0_3, %c0_4] : memref<1x32xf32, #tpu.memory_space<vmem>>, vector<1x32xf32>
    %4 = vector.broadcast %3 : vector<1x32xf32> to vector<128x32xf32>
    %5 = arith.addf %2, %4 : vector<128x32xf32>
    %cst_5 = arith.constant 0.000000e+00 : f32
    %6 = vector.broadcast %cst_5 : f32 to vector<128x32xf32>
    %7 = arith.maximumf %5, %6 : vector<128x32xf32>
    %c0_6 = arith.constant 0 : index
    %c0_7 = arith.constant 0 : index
    %8 = vector.load %arg4[%c0_6, %c0_7] : memref<32x32xbf16, #tpu.memory_space<vmem>>, vector<32x32xbf16>
    %9 = arith.truncf %7 : vector<128x32xf32> to vector<128x32xbf16>
    %cst_8 = arith.constant dense<0.000000e+00> : vector<128x32xf32>
    %10 = tpu.matmul %9, %8, %cst_8 {dimension_numbers = #tpu.dot_dimension_numbers<[1], [0], [0], [1], [0, 0, 1, 1], [], []>} : vector<128x32xbf16>, vector<32x32xbf16>, vector<128x32xf32> -> vector<128x32xf32>
    %c0_9 = arith.constant 0 : index
    %c0_10 = arith.constant 0 : index
    %11 = vector.load %arg5[%c0_9, %c0_10] : memref<1x32xf32, #tpu.memory_space<vmem>>, vector<1x32xf32>
    %12 = vector.broadcast %11 : vector<1x32xf32> to vector<128x32xf32>
    %13 = arith.addf %10, %12 : vector<128x32xf32>
    %c0_11 = arith.constant 0 : index
    %c0_12 = arith.constant 0 : index
    %14 = vector.load %arg6[%c0_11, %c0_12] : memref<128x32xf32, #tpu.memory_space<vmem>>, vector<128x32xf32>
    tpu.vector_store %arg6[%c0_11, %c0_12], %13 {strides = array<i32>} : memref<128x32xf32, #tpu.memory_space<vmem>>, vector<128x32xf32>,
    return
  }
  func.func @transform_0(%arg0: i32) -> (i32, i32) {
    %c0_i32 = arith.constant 0 : i32
    %c0_i32_0 = arith.constant 0 : i32
    return %arg0, %c0_i32 : i32, i32
  }
  func.func @transform_1(%arg0: i32) -> (i32, i32) {
    %c0_i32 = arith.constant 0 : i32
    %c0_i32_0 = arith.constant 0 : i32
    %c0_i32_1 = arith.constant 0 : i32
    return %c0_i32, %c0_i32_0 : i32, i32
  }
  func.func @transform_2(%arg0: i32) -> (i32, i32) {
    %c0_i32 = arith.constant 0 : i32
    %c0_i32_0 = arith.constant 0 : i32
    %c0_i32_1 = arith.constant 0 : i32
    return %c0_i32, %c0_i32_0 : i32, i32
  }
  func.func @transform_3(%arg0: i32) -> (i32, i32) {
    %c0_i32 = arith.constant 0 : i32
    %c0_i32_0 = arith.constant 0 : i32
    %c0_i32_1 = arith.constant 0 : i32
    return %c0_i32, %c0_i32_0 : i32, i32
  }
  func.func @transform_4(%arg0: i32) -> (i32, i32) {
    %c0_i32 = arith.constant 0 : i32
    %c0_i32_0 = arith.constant 0 : i32
    %c0_i32_1 = arith.constant 0 : i32
    return %c0_i32, %c0_i32_0 : i32, i32
  }
  func.func @transform_5(%arg0: i32) -> (i32, i32) {
    %c0_i32 = arith.constant 0 : i32
    %c0_i32_0 = arith.constant 0 : i32
    return %arg0, %c0_i32 : i32, i32
  }
}

module attributes {stable_mosaic.version = 11 : i64} {
  func.func @_mlp_kernel(%arg0: i32, %arg1: memref<512x3xbf16, #tpu.memory_space<vmem>>, %arg2: memref<3x32xbf16, #tpu.memory_space<vmem>>, %arg3: memref<1x32xf32, #tpu.memory_space<vmem>>, %arg4: memref<32x32xbf16, #tpu.memory_space<vmem>>, %arg5: memref<1x32xf32, #tpu.memory_space<vmem>>, %arg6: memref<512x32xf32, #tpu.memory_space<vmem>>) attributes {dimension_semantics = [#tpu.dimension_semantics<parallel>], iteration_bounds = array<i64: 1>, scalar_prefetch = 0 : i64, scratch_operands = 0 : i64, tpu.core_type = #tpu.core_type<tc>, window_params = [{transform_indices = @transform_0, window_bounds = array<i64: 512, 3>}, {pipeline_mode = #tpu.pipeline_mode<synchronous>, transform_indices = @transform_1, window_bounds = array<i64: 3, 32>}, {pipeline_mode = #tpu.pipeline_mode<synchronous>, transform_indices = @transform_2, window_bounds = array<i64: 1, 32>}, {pipeline_mode = #tpu.pipeline_mode<synchronous>, transform_indices = @transform_3, window_bounds = array<i64: 32, 32>}, {pipeline_mode = #tpu.pipeline_mode<synchronous>, transform_indices = @transform_4, window_bounds = array<i64: 1, 32>}, {transform_indices = @transform_5, window_bounds = array<i64: 512, 32>}]} {
    %c0 = arith.constant 0 : index
    %c0_0 = arith.constant 0 : index
    %0 = vector.load %arg1[%c0, %c0_0] : memref<512x3xbf16, #tpu.memory_space<vmem>>, vector<512x3xbf16>
    %c0_1 = arith.constant 0 : index
    %c0_2 = arith.constant 0 : index
    %1 = vector.load %arg2[%c0_1, %c0_2] : memref<3x32xbf16, #tpu.memory_space<vmem>>, vector<3x32xbf16>
    %cst = arith.constant dense<0.000000e+00> : vector<512x32xf32>
    %2 = tpu.matmul %0, %1, %cst {dimension_numbers = #tpu.dot_dimension_numbers<[1], [0], [0], [1], [0, 0, 1, 1], [], []>} : vector<512x3xbf16>, vector<3x32xbf16>, vector<512x32xf32> -> vector<512x32xf32>
    %c0_3 = arith.constant 0 : index
    %c0_4 = arith.constant 0 : index
    %3 = vector.load %arg3[%c0_3, %c0_4] : memref<1x32xf32, #tpu.memory_space<vmem>>, vector<1x32xf32>
    %4 = vector.broadcast %3 : vector<1x32xf32> to vector<512x32xf32>
    %5 = arith.addf %2, %4 : vector<512x32xf32>
    %cst_5 = arith.constant 0.000000e+00 : f32
    %6 = vector.broadcast %cst_5 : f32 to vector<512x32xf32>
    %7 = arith.maximumf %5, %6 : vector<512x32xf32>
    %c0_6 = arith.constant 0 : index
    %c0_7 = arith.constant 0 : index
    %8 = vector.load %arg4[%c0_6, %c0_7] : memref<32x32xbf16, #tpu.memory_space<vmem>>, vector<32x32xbf16>
    %9 = arith.truncf %7 : vector<512x32xf32> to vector<512x32xbf16>
    %cst_8 = arith.constant dense<0.000000e+00> : vector<512x32xf32>
    %10 = tpu.matmul %9, %8, %cst_8 {dimension_numbers = #tpu.dot_dimension_numbers<[1], [0], [0], [1], [0, 0, 1, 1], [], []>} : vector<512x32xbf16>, vector<32x32xbf16>, vector<512x32xf32> -> vector<512x32xf32>
    %c0_9 = arith.constant 0 : index
    %c0_10 = arith.constant 0 : index
    %11 = vector.load %arg5[%c0_9, %c0_10] : memref<1x32xf32, #tpu.memory_space<vmem>>, vector<1x32xf32>
    %12 = vector.broadcast %11 : vector<1x32xf32> to vector<512x32xf32>
    %13 = arith.addf %10, %12 : vector<512x32xf32>
    %c0_11 = arith.constant 0 : index
    %c0_12 = arith.constant 0 : index
    %14 = vector.load %arg6[%c0_11, %c0_12] : memref<512x32xf32, #tpu.memory_space<vmem>>, vector<512x32xf32>
    tpu.vector_store %arg6[%c0_11, %c0_12], %13 {strides = array<i32>} : memref<512x32xf32, #tpu.memory_space<vmem>>, vector<512x32xf32>,
    return
  }
  func.func @transform_0(%arg0: i32) -> (i32, i32) {
    %c0_i32 = arith.constant 0 : i32
    %c0_i32_0 = arith.constant 0 : i32
    return %arg0, %c0_i32 : i32, i32
  }
  func.func @transform_1(%arg0: i32) -> (i32, i32) {
    %c0_i32 = arith.constant 0 : i32
    %c0_i32_0 = arith.constant 0 : i32
    %c0_i32_1 = arith.constant 0 : i32
    return %c0_i32, %c0_i32_0 : i32, i32
  }
  func.func @transform_2(%arg0: i32) -> (i32, i32) {
    %c0_i32 = arith.constant 0 : i32
    %c0_i32_0 = arith.constant 0 : i32
    %c0_i32_1 = arith.constant 0 : i32
    return %c0_i32, %c0_i32_0 : i32, i32
  }
  func.func @transform_3(%arg0: i32) -> (i32, i32) {
    %c0_i32 = arith.constant 0 : i32
    %c0_i32_0 = arith.constant 0 : i32
    %c0_i32_1 = arith.constant 0 : i32
    return %c0_i32, %c0_i32_0 : i32, i32
  }
  func.func @transform_4(%arg0: i32) -> (i32, i32) {
    %c0_i32 = arith.constant 0 : i32
    %c0_i32_0 = arith.constant 0 : i32
    %c0_i32_1 = arith.constant 0 : i32
    return %c0_i32, %c0_i32_0 : i32, i32
  }
  func.func @transform_5(%arg0: i32) -> (i32, i32) {
    %c0_i32 = arith.constant 0 : i32
    %c0_i32_0 = arith.constant 0 : i32
    return %arg0, %c0_i32 : i32, i32
  }
}

module attributes {stable_mosaic.version = 11 : i64} {
  func.func @_mlp_kernel(%arg0: i32, %arg1: memref<128x32xbf16, #tpu.memory_space<vmem>>, %arg2: memref<32x32xbf16, #tpu.memory_space<vmem>>, %arg3: memref<1x32xf32, #tpu.memory_space<vmem>>, %arg4: memref<32x96xbf16, #tpu.memory_space<vmem>>, %arg5: memref<128x96xf32, #tpu.memory_space<vmem>>) attributes {dimension_semantics = [#tpu.dimension_semantics<parallel>], iteration_bounds = array<i64: 1>, scalar_prefetch = 0 : i64, scratch_operands = 0 : i64, tpu.core_type = #tpu.core_type<tc>, window_params = [{transform_indices = @transform_0, window_bounds = array<i64: 128, 32>}, {pipeline_mode = #tpu.pipeline_mode<synchronous>, transform_indices = @transform_1, window_bounds = array<i64: 32, 32>}, {pipeline_mode = #tpu.pipeline_mode<synchronous>, transform_indices = @transform_2, window_bounds = array<i64: 1, 32>}, {pipeline_mode = #tpu.pipeline_mode<synchronous>, transform_indices = @transform_3, window_bounds = array<i64: 32, 96>}, {transform_indices = @transform_4, window_bounds = array<i64: 128, 96>}]} {
    %c0 = arith.constant 0 : index
    %c0_0 = arith.constant 0 : index
    %0 = vector.load %arg1[%c0, %c0_0] : memref<128x32xbf16, #tpu.memory_space<vmem>>, vector<128x32xbf16>
    %c0_1 = arith.constant 0 : index
    %c0_2 = arith.constant 0 : index
    %1 = vector.load %arg2[%c0_1, %c0_2] : memref<32x32xbf16, #tpu.memory_space<vmem>>, vector<32x32xbf16>
    %cst = arith.constant dense<0.000000e+00> : vector<128x32xf32>
    %2 = tpu.matmul %0, %1, %cst {dimension_numbers = #tpu.dot_dimension_numbers<[1], [0], [0], [1], [0, 0, 1, 1], [], []>} : vector<128x32xbf16>, vector<32x32xbf16>, vector<128x32xf32> -> vector<128x32xf32>
    %c0_3 = arith.constant 0 : index
    %c0_4 = arith.constant 0 : index
    %3 = vector.load %arg3[%c0_3, %c0_4] : memref<1x32xf32, #tpu.memory_space<vmem>>, vector<1x32xf32>
    %4 = vector.broadcast %3 : vector<1x32xf32> to vector<128x32xf32>
    %5 = arith.addf %2, %4 : vector<128x32xf32>
    %c0_5 = arith.constant 0 : index
    %c0_6 = arith.constant 0 : index
    %6 = vector.load %arg4[%c0_5, %c0_6] : memref<32x96xbf16, #tpu.memory_space<vmem>>, vector<32x96xbf16>
    %7 = arith.truncf %5 : vector<128x32xf32> to vector<128x32xbf16>
    %cst_7 = arith.constant dense<0.000000e+00> : vector<128x96xf32>
    %8 = tpu.matmul %7, %6, %cst_7 {dimension_numbers = #tpu.dot_dimension_numbers<[1], [0], [0], [1], [0, 0, 1, 1], [], []>} : vector<128x32xbf16>, vector<32x96xbf16>, vector<128x96xf32> -> vector<128x96xf32>
    %c0_8 = arith.constant 0 : index
    %c0_9 = arith.constant 0 : index
    %9 = vector.load %arg5[%c0_8, %c0_9] : memref<128x96xf32, #tpu.memory_space<vmem>>, vector<128x96xf32>
    tpu.vector_store %arg5[%c0_8, %c0_9], %8 {strides = array<i32>} : memref<128x96xf32, #tpu.memory_space<vmem>>, vector<128x96xf32>,
    return
  }
  func.func @transform_0(%arg0: i32) -> (i32, i32) {
    %c0_i32 = arith.constant 0 : i32
    %c0_i32_0 = arith.constant 0 : i32
    return %arg0, %c0_i32 : i32, i32
  }
  func.func @transform_1(%arg0: i32) -> (i32, i32) {
    %c0_i32 = arith.constant 0 : i32
    %c0_i32_0 = arith.constant 0 : i32
    %c0_i32_1 = arith.constant 0 : i32
    return %c0_i32, %c0_i32_0 : i32, i32
  }
  func.func @transform_2(%arg0: i32) -> (i32, i32) {
    %c0_i32 = arith.constant 0 : i32
    %c0_i32_0 = arith.constant 0 : i32
    %c0_i32_1 = arith.constant 0 : i32
    return %c0_i32, %c0_i32_0 : i32, i32
  }
  func.func @transform_3(%arg0: i32) -> (i32, i32) {
    %c0_i32 = arith.constant 0 : i32
    %c0_i32_0 = arith.constant 0 : i32
    %c0_i32_1 = arith.constant 0 : i32
    return %c0_i32, %c0_i32_0 : i32, i32
  }
  func.func @transform_4(%arg0: i32) -> (i32, i32) {
    %c0_i32 = arith.constant 0 : i32
    %c0_i32_0 = arith.constant 0 : i32
    return %arg0, %c0_i32 : i32, i32
  }
}

module attributes {stable_mosaic.version = 11 : i64} {
  func.func @_vec_attn_kernel(%arg0: i32, %arg1: i32, %arg2: memref<1x4x64x32xf32, #tpu.memory_space<vmem>>, %arg3: memref<1x4x64x32xf32, #tpu.memory_space<vmem>>, %arg4: memref<32x32xbf16, #tpu.memory_space<vmem>>, %arg5: memref<1x32xf32, #tpu.memory_space<vmem>>, %arg6: memref<32x32xbf16, #tpu.memory_space<vmem>>, %arg7: memref<1x32xf32, #tpu.memory_space<vmem>>, %arg8: memref<1x64x32xf32, #tpu.memory_space<vmem>>) attributes {dimension_semantics = [#tpu.dimension_semantics<parallel>, #tpu.dimension_semantics<parallel>], iteration_bounds = array<i64: 2, 1>, scalar_prefetch = 0 : i64, scratch_operands = 0 : i64, tpu.core_type = #tpu.core_type<tc>, window_params = [{transform_indices = @transform_0, window_bounds = array<i64: 1, 4, 64, 32>}, {transform_indices = @transform_1, window_bounds = array<i64: 1, 4, 64, 32>}, {pipeline_mode = #tpu.pipeline_mode<synchronous>, transform_indices = @transform_2, window_bounds = array<i64: 32, 32>}, {pipeline_mode = #tpu.pipeline_mode<synchronous>, transform_indices = @transform_3, window_bounds = array<i64: 1, 32>}, {pipeline_mode = #tpu.pipeline_mode<synchronous>, transform_indices = @transform_4, window_bounds = array<i64: 32, 32>}, {pipeline_mode = #tpu.pipeline_mode<synchronous>, transform_indices = @transform_5, window_bounds = array<i64: 1, 32>}, {transform_indices = @transform_6, window_bounds = array<i64: 1, 64, 32>}]} {
    %c0 = arith.constant 0 : index
    %c0_0 = arith.constant 0 : index
    %c0_1 = arith.constant 0 : index
    %c0_2 = arith.constant 0 : index
    %0 = vector.load %arg2[%c0, %c0_0, %c0_1, %c0_2] : memref<1x4x64x32xf32, #tpu.memory_space<vmem>>, vector<1x4x64x32xf32>
    %1 = vector.shape_cast %0 : vector<1x4x64x32xf32> to vector<4x64x32xf32>
    %2 = vector.shape_cast %1 : vector<4x64x32xf32> to vector<256x32xf32>
    %3 = arith.truncf %2 : vector<256x32xf32> to vector<256x32xbf16>
    %c0_3 = arith.constant 0 : index
    %c0_4 = arith.constant 0 : index
    %4 = vector.load %arg4[%c0_3, %c0_4] : memref<32x32xbf16, #tpu.memory_space<vmem>>, vector<32x32xbf16>
    %cst = arith.constant dense<0.000000e+00> : vector<256x32xf32>
    %5 = tpu.matmul %3, %4, %cst {dimension_numbers = #tpu.dot_dimension_numbers<[1], [0], [0], [1], [0, 0, 1, 1], [], []>} : vector<256x32xbf16>, vector<32x32xbf16>, vector<256x32xf32> -> vector<256x32xf32>
    %c0_5 = arith.constant 0 : index
    %c0_6 = arith.constant 0 : index
    %6 = vector.load %arg5[%c0_5, %c0_6] : memref<1x32xf32, #tpu.memory_space<vmem>>, vector<1x32xf32>
    %7 = vector.broadcast %6 : vector<1x32xf32> to vector<256x32xf32>
    %8 = arith.addf %5, %7 : vector<256x32xf32>
    %cst_7 = arith.constant 0.000000e+00 : f32
    %9 = vector.broadcast %cst_7 : f32 to vector<256x32xf32>
    %10 = arith.maximumf %8, %9 : vector<256x32xf32>
    %11 = arith.truncf %10 : vector<256x32xf32> to vector<256x32xbf16>
    %c0_8 = arith.constant 0 : index
    %c0_9 = arith.constant 0 : index
    %12 = vector.load %arg6[%c0_8, %c0_9] : memref<32x32xbf16, #tpu.memory_space<vmem>>, vector<32x32xbf16>
    %cst_10 = arith.constant dense<0.000000e+00> : vector<256x32xf32>
    %13 = tpu.matmul %11, %12, %cst_10 {dimension_numbers = #tpu.dot_dimension_numbers<[1], [0], [0], [1], [0, 0, 1, 1], [], []>} : vector<256x32xbf16>, vector<32x32xbf16>, vector<256x32xf32> -> vector<256x32xf32>
    %c0_11 = arith.constant 0 : index
    %c0_12 = arith.constant 0 : index
    %14 = vector.load %arg7[%c0_11, %c0_12] : memref<1x32xf32, #tpu.memory_space<vmem>>, vector<1x32xf32>
    %15 = vector.broadcast %14 : vector<1x32xf32> to vector<256x32xf32>
    %16 = arith.addf %13, %15 : vector<256x32xf32>
    %cst_13 = arith.constant 0.176776692 : f32
    %17 = vector.broadcast %cst_13 : f32 to vector<256x32xf32>
    %18 = arith.mulf %16, %17 : vector<256x32xf32>
    %19 = vector.extract_strided_slice %18 {offsets = [0, 0], sizes = [64, 32], strides = [1, 1]} : vector<256x32xf32> to vector<64x32xf32>
    %20 = vector.extract_strided_slice %18 {offsets = [64, 0], sizes = [64, 32], strides = [1, 1]} : vector<256x32xf32> to vector<64x32xf32>
    %21 = arith.maximumf %19, %20 : vector<64x32xf32>
    %22 = vector.extract_strided_slice %18 {offsets = [128, 0], sizes = [64, 32], strides = [1, 1]} : vector<256x32xf32> to vector<64x32xf32>
    %23 = arith.maximumf %21, %22 : vector<64x32xf32>
    %24 = vector.extract_strided_slice %18 {offsets = [192, 0], sizes = [64, 32], strides = [1, 1]} : vector<256x32xf32> to vector<64x32xf32>
    %25 = arith.maximumf %23, %24 : vector<64x32xf32>
    %cst_14 = arith.constant 0.000000e+00 : f32
    %26 = vector.broadcast %cst_14 : f32 to vector<64x32xf32>
    %cst_15 = arith.constant 0.000000e+00 : f32
    %27 = vector.broadcast %cst_15 : f32 to vector<64x32xf32>
    %28 = vector.extract_strided_slice %18 {offsets = [0, 0], sizes = [64, 32], strides = [1, 1]} : vector<256x32xf32> to vector<64x32xf32>
    %29 = arith.subf %28, %25 : vector<64x32xf32>
    %30 = math.exp %29 : vector<64x32xf32>
    %31 = arith.addf %27, %30 : vector<64x32xf32>
    %c0_16 = arith.constant 0 : index
    %c0_17 = arith.constant 0 : index
    %c0_18 = arith.constant 0 : index
    %c0_19 = arith.constant 0 : index
    %32 = vector.load %arg3[%c0_16, %c0_17, %c0_18, %c0_19] : memref<1x4x64x32xf32, #tpu.memory_space<vmem>>, vector<1x1x64x32xf32>
    %33 = vector.shape_cast %32 : vector<1x1x64x32xf32> to vector<64x32xf32>
    %34 = arith.mulf %30, %33 : vector<64x32xf32>
    %35 = arith.addf %26, %34 : vector<64x32xf32>
    %36 = vector.extract_strided_slice %18 {offsets = [64, 0], sizes = [64, 32], strides = [1, 1]} : vector<256x32xf32> to vector<64x32xf32>
    %37 = arith.subf %36, %25 : vector<64x32xf32>
    %38 = math.exp %37 : vector<64x32xf32>
    %39 = arith.addf %31, %38 : vector<64x32xf32>
    %c0_20 = arith.constant 0 : index
    %c1 = arith.constant 1 : index
    %c0_21 = arith.constant 0 : index
    %c0_22 = arith.constant 0 : index
    %40 = vector.load %arg3[%c0_20, %c1, %c0_21, %c0_22] : memref<1x4x64x32xf32, #tpu.memory_space<vmem>>, vector<1x1x64x32xf32>
    %41 = vector.shape_cast %40 : vector<1x1x64x32xf32> to vector<64x32xf32>
    %42 = arith.mulf %38, %41 : vector<64x32xf32>
    %43 = arith.addf %35, %42 : vector<64x32xf32>
    %44 = vector.extract_strided_slice %18 {offsets = [128, 0], sizes = [64, 32], strides = [1, 1]} : vector<256x32xf32> to vector<64x32xf32>
    %45 = arith.subf %44, %25 : vector<64x32xf32>
    %46 = math.exp %45 : vector<64x32xf32>
    %47 = arith.addf %39, %46 : vector<64x32xf32>
    %c0_23 = arith.constant 0 : index
    %c2 = arith.constant 2 : index
    %c0_24 = arith.constant 0 : index
    %c0_25 = arith.constant 0 : index
    %48 = vector.load %arg3[%c0_23, %c2, %c0_24, %c0_25] : memref<1x4x64x32xf32, #tpu.memory_space<vmem>>, vector<1x1x64x32xf32>
    %49 = vector.shape_cast %48 : vector<1x1x64x32xf32> to vector<64x32xf32>
    %50 = arith.mulf %46, %49 : vector<64x32xf32>
    %51 = arith.addf %43, %50 : vector<64x32xf32>
    %52 = vector.extract_strided_slice %18 {offsets = [192, 0], sizes = [64, 32], strides = [1, 1]} : vector<256x32xf32> to vector<64x32xf32>
    %53 = arith.subf %52, %25 : vector<64x32xf32>
    %54 = math.exp %53 : vector<64x32xf32>
    %55 = arith.addf %47, %54 : vector<64x32xf32>
    %c0_26 = arith.constant 0 : index
    %c3 = arith.constant 3 : index
    %c0_27 = arith.constant 0 : index
    %c0_28 = arith.constant 0 : index
    %56 = vector.load %arg3[%c0_26, %c3, %c0_27, %c0_28] : memref<1x4x64x32xf32, #tpu.memory_space<vmem>>, vector<1x1x64x32xf32>
    %57 = vector.shape_cast %56 : vector<1x1x64x32xf32> to vector<64x32xf32>
    %58 = arith.mulf %54, %57 : vector<64x32xf32>
    %59 = arith.addf %51, %58 : vector<64x32xf32>
    %60 = tpu.reciprocal %55 {approx = true} : vector<64x32xf32> -> vector<64x32xf32>
    %61 = arith.mulf %59, %60 : vector<64x32xf32>
    %c0_29 = arith.constant 0 : index
    %c0_30 = arith.constant 0 : index
    %c0_31 = arith.constant 0 : index
    %62 = vector.load %arg8[%c0_29, %c0_30, %c0_31] : memref<1x64x32xf32, #tpu.memory_space<vmem>>, vector<1x64x32xf32>
    %63 = vector.shape_cast %62 : vector<1x64x32xf32> to vector<64x32xf32>
    %64 = vector.shape_cast %61 : vector<64x32xf32> to vector<1x64x32xf32>
    tpu.vector_store %arg8[%c0_29, %c0_30, %c0_31], %64 {strides = array<i32>} : memref<1x64x32xf32, #tpu.memory_space<vmem>>, vector<1x64x32xf32>,
    return
  }
  func.func @transform_0(%arg0: i32, %arg1: i32) -> (i32, i32, i32, i32) {
    %c0_i32 = arith.constant 0 : i32
    %c0_i32_0 = arith.constant 0 : i32
    %c0_i32_1 = arith.constant 0 : i32
    return %arg0, %c0_i32, %arg1, %c0_i32_0 : i32, i32, i32, i32
  }
  func.func @transform_1(%arg0: i32, %arg1: i32) -> (i32, i32, i32, i32) {
    %c0_i32 = arith.constant 0 : i32
    %c0_i32_0 = arith.constant 0 : i32
    %c0_i32_1 = arith.constant 0 : i32
    return %arg0, %c0_i32, %arg1, %c0_i32_0 : i32, i32, i32, i32
  }
  func.func @transform_2(%arg0: i32, %arg1: i32) -> (i32, i32) {
    %c0_i32 = arith.constant 0 : i32
    %c0_i32_0 = arith.constant 0 : i32
    %c0_i32_1 = arith.constant 0 : i32
    return %c0_i32, %c0_i32_0 : i32, i32
  }
  func.func @transform_3(%arg0: i32, %arg1: i32) -> (i32, i32) {
    %c0_i32 = arith.constant 0 : i32
    %c0_i32_0 = arith.constant 0 : i32
    %c0_i32_1 = arith.constant 0 : i32
    return %c0_i32, %c0_i32_0 : i32, i32
  }
  func.func @transform_4(%arg0: i32, %arg1: i32) -> (i32, i32) {
    %c0_i32 = arith.constant 0 : i32
    %c0_i32_0 = arith.constant 0 : i32
    %c0_i32_1 = arith.constant 0 : i32
    return %c0_i32, %c0_i32_0 : i32, i32
  }
  func.func @transform_5(%arg0: i32, %arg1: i32) -> (i32, i32) {
    %c0_i32 = arith.constant 0 : i32
    %c0_i32_0 = arith.constant 0 : i32
    %c0_i32_1 = arith.constant 0 : i32
    return %c0_i32, %c0_i32_0 : i32, i32
  }
  func.func @transform_6(%arg0: i32, %arg1: i32) -> (i32, i32, i32) {
    %c0_i32 = arith.constant 0 : i32
    %c0_i32_0 = arith.constant 0 : i32
    return %arg0, %arg1, %c0_i32 : i32, i32, i32
  }
}

module attributes {stable_mosaic.version = 11 : i64} {
  func.func @_mlp_kernel(%arg0: i32, %arg1: memref<128x32xbf16, #tpu.memory_space<vmem>>, %arg2: memref<32x32xbf16, #tpu.memory_space<vmem>>, %arg3: memref<1x32xf32, #tpu.memory_space<vmem>>, %arg4: memref<128x32xf32, #tpu.memory_space<vmem>>) attributes {dimension_semantics = [#tpu.dimension_semantics<parallel>], iteration_bounds = array<i64: 1>, scalar_prefetch = 0 : i64, scratch_operands = 0 : i64, tpu.core_type = #tpu.core_type<tc>, window_params = [{transform_indices = @transform_0, window_bounds = array<i64: 128, 32>}, {pipeline_mode = #tpu.pipeline_mode<synchronous>, transform_indices = @transform_1, window_bounds = array<i64: 32, 32>}, {pipeline_mode = #tpu.pipeline_mode<synchronous>, transform_indices = @transform_2, window_bounds = array<i64: 1, 32>}, {transform_indices = @transform_3, window_bounds = array<i64: 128, 32>}]} {
    %c0 = arith.constant 0 : index
    %c0_0 = arith.constant 0 : index
    %0 = vector.load %arg1[%c0, %c0_0] : memref<128x32xbf16, #tpu.memory_space<vmem>>, vector<128x32xbf16>
    %c0_1 = arith.constant 0 : index
    %c0_2 = arith.constant 0 : index
    %1 = vector.load %arg2[%c0_1, %c0_2] : memref<32x32xbf16, #tpu.memory_space<vmem>>, vector<32x32xbf16>
    %cst = arith.constant dense<0.000000e+00> : vector<128x32xf32>
    %2 = tpu.matmul %0, %1, %cst {dimension_numbers = #tpu.dot_dimension_numbers<[1], [0], [0], [1], [0, 0, 1, 1], [], []>} : vector<128x32xbf16>, vector<32x32xbf16>, vector<128x32xf32> -> vector<128x32xf32>
    %c0_3 = arith.constant 0 : index
    %c0_4 = arith.constant 0 : index
    %3 = vector.load %arg3[%c0_3, %c0_4] : memref<1x32xf32, #tpu.memory_space<vmem>>, vector<1x32xf32>
    %4 = vector.broadcast %3 : vector<1x32xf32> to vector<128x32xf32>
    %5 = arith.addf %2, %4 : vector<128x32xf32>
    %c0_5 = arith.constant 0 : index
    %c0_6 = arith.constant 0 : index
    %6 = vector.load %arg4[%c0_5, %c0_6] : memref<128x32xf32, #tpu.memory_space<vmem>>, vector<128x32xf32>
    tpu.vector_store %arg4[%c0_5, %c0_6], %5 {strides = array<i32>} : memref<128x32xf32, #tpu.memory_space<vmem>>, vector<128x32xf32>,
    return
  }
  func.func @transform_0(%arg0: i32) -> (i32, i32) {
    %c0_i32 = arith.constant 0 : i32
    %c0_i32_0 = arith.constant 0 : i32
    return %arg0, %c0_i32 : i32, i32
  }
  func.func @transform_1(%arg0: i32) -> (i32, i32) {
    %c0_i32 = arith.constant 0 : i32
    %c0_i32_0 = arith.constant 0 : i32
    %c0_i32_1 = arith.constant 0 : i32
    return %c0_i32, %c0_i32_0 : i32, i32
  }
  func.func @transform_2(%arg0: i32) -> (i32, i32) {
    %c0_i32 = arith.constant 0 : i32
    %c0_i32_0 = arith.constant 0 : i32
    %c0_i32_1 = arith.constant 0 : i32
    return %c0_i32, %c0_i32_0 : i32, i32
  }
  func.func @transform_3(%arg0: i32) -> (i32, i32) {
    %c0_i32 = arith.constant 0 : i32
    %c0_i32_0 = arith.constant 0 : i32
    return %arg0, %c0_i32 : i32, i32
  }
}

module attributes {stable_mosaic.version = 11 : i64} {
  func.func @_mlp_kernel(%arg0: i32, %arg1: memref<128x35xbf16, #tpu.memory_space<vmem>>, %arg2: memref<35x64xbf16, #tpu.memory_space<vmem>>, %arg3: memref<1x64xf32, #tpu.memory_space<vmem>>, %arg4: memref<128x64xf32, #tpu.memory_space<vmem>>) attributes {dimension_semantics = [#tpu.dimension_semantics<parallel>], iteration_bounds = array<i64: 1>, scalar_prefetch = 0 : i64, scratch_operands = 0 : i64, tpu.core_type = #tpu.core_type<tc>, window_params = [{transform_indices = @transform_0, window_bounds = array<i64: 128, 35>}, {pipeline_mode = #tpu.pipeline_mode<synchronous>, transform_indices = @transform_1, window_bounds = array<i64: 35, 64>}, {pipeline_mode = #tpu.pipeline_mode<synchronous>, transform_indices = @transform_2, window_bounds = array<i64: 1, 64>}, {transform_indices = @transform_3, window_bounds = array<i64: 128, 64>}]} {
    %c0 = arith.constant 0 : index
    %c0_0 = arith.constant 0 : index
    %0 = vector.load %arg1[%c0, %c0_0] : memref<128x35xbf16, #tpu.memory_space<vmem>>, vector<128x35xbf16>
    %c0_1 = arith.constant 0 : index
    %c0_2 = arith.constant 0 : index
    %1 = vector.load %arg2[%c0_1, %c0_2] : memref<35x64xbf16, #tpu.memory_space<vmem>>, vector<35x64xbf16>
    %cst = arith.constant dense<0.000000e+00> : vector<128x64xf32>
    %2 = tpu.matmul %0, %1, %cst {dimension_numbers = #tpu.dot_dimension_numbers<[1], [0], [0], [1], [0, 0, 1, 1], [], []>} : vector<128x35xbf16>, vector<35x64xbf16>, vector<128x64xf32> -> vector<128x64xf32>
    %c0_3 = arith.constant 0 : index
    %c0_4 = arith.constant 0 : index
    %3 = vector.load %arg3[%c0_3, %c0_4] : memref<1x64xf32, #tpu.memory_space<vmem>>, vector<1x64xf32>
    %4 = vector.broadcast %3 : vector<1x64xf32> to vector<128x64xf32>
    %5 = arith.addf %2, %4 : vector<128x64xf32>
    %c0_5 = arith.constant 0 : index
    %c0_6 = arith.constant 0 : index
    %6 = vector.load %arg4[%c0_5, %c0_6] : memref<128x64xf32, #tpu.memory_space<vmem>>, vector<128x64xf32>
    tpu.vector_store %arg4[%c0_5, %c0_6], %5 {strides = array<i32>} : memref<128x64xf32, #tpu.memory_space<vmem>>, vector<128x64xf32>,
    return
  }
  func.func @transform_0(%arg0: i32) -> (i32, i32) {
    %c0_i32 = arith.constant 0 : i32
    %c0_i32_0 = arith.constant 0 : i32
    return %arg0, %c0_i32 : i32, i32
  }
  func.func @transform_1(%arg0: i32) -> (i32, i32) {
    %c0_i32 = arith.constant 0 : i32
    %c0_i32_0 = arith.constant 0 : i32
    %c0_i32_1 = arith.constant 0 : i32
    return %c0_i32, %c0_i32_0 : i32, i32
  }
  func.func @transform_2(%arg0: i32) -> (i32, i32) {
    %c0_i32 = arith.constant 0 : i32
    %c0_i32_0 = arith.constant 0 : i32
    %c0_i32_1 = arith.constant 0 : i32
    return %c0_i32, %c0_i32_0 : i32, i32
  }
  func.func @transform_3(%arg0: i32) -> (i32, i32) {
    %c0_i32 = arith.constant 0 : i32
    %c0_i32_0 = arith.constant 0 : i32
    return %arg0, %c0_i32 : i32, i32
  }
}

module attributes {stable_mosaic.version = 11 : i64} {
  func.func @_mlp_kernel(%arg0: i32, %arg1: memref<128x64xbf16, #tpu.memory_space<vmem>>, %arg2: memref<64x64xbf16, #tpu.memory_space<vmem>>, %arg3: memref<1x64xf32, #tpu.memory_space<vmem>>, %arg4: memref<128x64xf32, #tpu.memory_space<vmem>>) attributes {dimension_semantics = [#tpu.dimension_semantics<parallel>], iteration_bounds = array<i64: 1>, scalar_prefetch = 0 : i64, scratch_operands = 0 : i64, tpu.core_type = #tpu.core_type<tc>, window_params = [{transform_indices = @transform_0, window_bounds = array<i64: 128, 64>}, {pipeline_mode = #tpu.pipeline_mode<synchronous>, transform_indices = @transform_1, window_bounds = array<i64: 64, 64>}, {pipeline_mode = #tpu.pipeline_mode<synchronous>, transform_indices = @transform_2, window_bounds = array<i64: 1, 64>}, {transform_indices = @transform_3, window_bounds = array<i64: 128, 64>}]} {
    %c0 = arith.constant 0 : index
    %c0_0 = arith.constant 0 : index
    %0 = vector.load %arg1[%c0, %c0_0] : memref<128x64xbf16, #tpu.memory_space<vmem>>, vector<128x64xbf16>
    %c0_1 = arith.constant 0 : index
    %c0_2 = arith.constant 0 : index
    %1 = vector.load %arg2[%c0_1, %c0_2] : memref<64x64xbf16, #tpu.memory_space<vmem>>, vector<64x64xbf16>
    %cst = arith.constant dense<0.000000e+00> : vector<128x64xf32>
    %2 = tpu.matmul %0, %1, %cst {dimension_numbers = #tpu.dot_dimension_numbers<[1], [0], [0], [1], [0, 0, 1, 1], [], []>} : vector<128x64xbf16>, vector<64x64xbf16>, vector<128x64xf32> -> vector<128x64xf32>
    %c0_3 = arith.constant 0 : index
    %c0_4 = arith.constant 0 : index
    %3 = vector.load %arg3[%c0_3, %c0_4] : memref<1x64xf32, #tpu.memory_space<vmem>>, vector<1x64xf32>
    %4 = vector.broadcast %3 : vector<1x64xf32> to vector<128x64xf32>
    %5 = arith.addf %2, %4 : vector<128x64xf32>
    %c0_5 = arith.constant 0 : index
    %c0_6 = arith.constant 0 : index
    %6 = vector.load %arg4[%c0_5, %c0_6] : memref<128x64xf32, #tpu.memory_space<vmem>>, vector<128x64xf32>
    tpu.vector_store %arg4[%c0_5, %c0_6], %5 {strides = array<i32>} : memref<128x64xf32, #tpu.memory_space<vmem>>, vector<128x64xf32>,
    return
  }
  func.func @transform_0(%arg0: i32) -> (i32, i32) {
    %c0_i32 = arith.constant 0 : i32
    %c0_i32_0 = arith.constant 0 : i32
    return %arg0, %c0_i32 : i32, i32
  }
  func.func @transform_1(%arg0: i32) -> (i32, i32) {
    %c0_i32 = arith.constant 0 : i32
    %c0_i32_0 = arith.constant 0 : i32
    %c0_i32_1 = arith.constant 0 : i32
    return %c0_i32, %c0_i32_0 : i32, i32
  }
  func.func @transform_2(%arg0: i32) -> (i32, i32) {
    %c0_i32 = arith.constant 0 : i32
    %c0_i32_0 = arith.constant 0 : i32
    %c0_i32_1 = arith.constant 0 : i32
    return %c0_i32, %c0_i32_0 : i32, i32
  }
  func.func @transform_3(%arg0: i32) -> (i32, i32) {
    %c0_i32 = arith.constant 0 : i32
    %c0_i32_0 = arith.constant 0 : i32
    return %arg0, %c0_i32 : i32, i32
  }
}

module attributes {stable_mosaic.version = 11 : i64} {
  func.func @_mlp_kernel(%arg0: i32, %arg1: memref<32x64xbf16, #tpu.memory_space<vmem>>, %arg2: memref<64x32xbf16, #tpu.memory_space<vmem>>, %arg3: memref<1x32xf32, #tpu.memory_space<vmem>>, %arg4: memref<32x96xbf16, #tpu.memory_space<vmem>>, %arg5: memref<32x96xf32, #tpu.memory_space<vmem>>) attributes {dimension_semantics = [#tpu.dimension_semantics<parallel>], iteration_bounds = array<i64: 1>, scalar_prefetch = 0 : i64, scratch_operands = 0 : i64, tpu.core_type = #tpu.core_type<tc>, window_params = [{transform_indices = @transform_0, window_bounds = array<i64: 32, 64>}, {pipeline_mode = #tpu.pipeline_mode<synchronous>, transform_indices = @transform_1, window_bounds = array<i64: 64, 32>}, {pipeline_mode = #tpu.pipeline_mode<synchronous>, transform_indices = @transform_2, window_bounds = array<i64: 1, 32>}, {pipeline_mode = #tpu.pipeline_mode<synchronous>, transform_indices = @transform_3, window_bounds = array<i64: 32, 96>}, {transform_indices = @transform_4, window_bounds = array<i64: 32, 96>}]} {
    %c0 = arith.constant 0 : index
    %c0_0 = arith.constant 0 : index
    %0 = vector.load %arg1[%c0, %c0_0] : memref<32x64xbf16, #tpu.memory_space<vmem>>, vector<32x64xbf16>
    %c0_1 = arith.constant 0 : index
    %c0_2 = arith.constant 0 : index
    %1 = vector.load %arg2[%c0_1, %c0_2] : memref<64x32xbf16, #tpu.memory_space<vmem>>, vector<64x32xbf16>
    %cst = arith.constant dense<0.000000e+00> : vector<32x32xf32>
    %2 = tpu.matmul %0, %1, %cst {dimension_numbers = #tpu.dot_dimension_numbers<[1], [0], [0], [1], [0, 0, 1, 1], [], []>} : vector<32x64xbf16>, vector<64x32xbf16>, vector<32x32xf32> -> vector<32x32xf32>
    %c0_3 = arith.constant 0 : index
    %c0_4 = arith.constant 0 : index
    %3 = vector.load %arg3[%c0_3, %c0_4] : memref<1x32xf32, #tpu.memory_space<vmem>>, vector<1x32xf32>
    %4 = vector.broadcast %3 : vector<1x32xf32> to vector<32x32xf32>
    %5 = arith.addf %2, %4 : vector<32x32xf32>
    %c0_5 = arith.constant 0 : index
    %c0_6 = arith.constant 0 : index
    %6 = vector.load %arg4[%c0_5, %c0_6] : memref<32x96xbf16, #tpu.memory_space<vmem>>, vector<32x96xbf16>
    %7 = arith.truncf %5 : vector<32x32xf32> to vector<32x32xbf16>
    %cst_7 = arith.constant dense<0.000000e+00> : vector<32x96xf32>
    %8 = tpu.matmul %7, %6, %cst_7 {dimension_numbers = #tpu.dot_dimension_numbers<[1], [0], [0], [1], [0, 0, 1, 1], [], []>} : vector<32x32xbf16>, vector<32x96xbf16>, vector<32x96xf32> -> vector<32x96xf32>
    %c0_8 = arith.constant 0 : index
    %c0_9 = arith.constant 0 : index
    %9 = vector.load %arg5[%c0_8, %c0_9] : memref<32x96xf32, #tpu.memory_space<vmem>>, vector<32x96xf32>
    tpu.vector_store %arg5[%c0_8, %c0_9], %8 {strides = array<i32>} : memref<32x96xf32, #tpu.memory_space<vmem>>, vector<32x96xf32>,
    return
  }
  func.func @transform_0(%arg0: i32) -> (i32, i32) {
    %c0_i32 = arith.constant 0 : i32
    %c0_i32_0 = arith.constant 0 : i32
    return %arg0, %c0_i32 : i32, i32
  }
  func.func @transform_1(%arg0: i32) -> (i32, i32) {
    %c0_i32 = arith.constant 0 : i32
    %c0_i32_0 = arith.constant 0 : i32
    %c0_i32_1 = arith.constant 0 : i32
    return %c0_i32, %c0_i32_0 : i32, i32
  }
  func.func @transform_2(%arg0: i32) -> (i32, i32) {
    %c0_i32 = arith.constant 0 : i32
    %c0_i32_0 = arith.constant 0 : i32
    %c0_i32_1 = arith.constant 0 : i32
    return %c0_i32, %c0_i32_0 : i32, i32
  }
  func.func @transform_3(%arg0: i32) -> (i32, i32) {
    %c0_i32 = arith.constant 0 : i32
    %c0_i32_0 = arith.constant 0 : i32
    %c0_i32_1 = arith.constant 0 : i32
    return %c0_i32, %c0_i32_0 : i32, i32
  }
  func.func @transform_4(%arg0: i32) -> (i32, i32) {
    %c0_i32 = arith.constant 0 : i32
    %c0_i32_0 = arith.constant 0 : i32
    return %arg0, %c0_i32 : i32, i32
  }
}

module attributes {stable_mosaic.version = 11 : i64} {
  func.func @_vec_attn_kernel(%arg0: i32, %arg1: i32, %arg2: memref<1x4x16x32xf32, #tpu.memory_space<vmem>>, %arg3: memref<1x4x16x32xf32, #tpu.memory_space<vmem>>, %arg4: memref<32x32xbf16, #tpu.memory_space<vmem>>, %arg5: memref<1x32xf32, #tpu.memory_space<vmem>>, %arg6: memref<32x32xbf16, #tpu.memory_space<vmem>>, %arg7: memref<1x32xf32, #tpu.memory_space<vmem>>, %arg8: memref<1x16x32xf32, #tpu.memory_space<vmem>>) attributes {dimension_semantics = [#tpu.dimension_semantics<parallel>, #tpu.dimension_semantics<parallel>], iteration_bounds = array<i64: 2, 1>, scalar_prefetch = 0 : i64, scratch_operands = 0 : i64, tpu.core_type = #tpu.core_type<tc>, window_params = [{transform_indices = @transform_0, window_bounds = array<i64: 1, 4, 16, 32>}, {transform_indices = @transform_1, window_bounds = array<i64: 1, 4, 16, 32>}, {pipeline_mode = #tpu.pipeline_mode<synchronous>, transform_indices = @transform_2, window_bounds = array<i64: 32, 32>}, {pipeline_mode = #tpu.pipeline_mode<synchronous>, transform_indices = @transform_3, window_bounds = array<i64: 1, 32>}, {pipeline_mode = #tpu.pipeline_mode<synchronous>, transform_indices = @transform_4, window_bounds = array<i64: 32, 32>}, {pipeline_mode = #tpu.pipeline_mode<synchronous>, transform_indices = @transform_5, window_bounds = array<i64: 1, 32>}, {transform_indices = @transform_6, window_bounds = array<i64: 1, 16, 32>}]} {
    %c0 = arith.constant 0 : index
    %c0_0 = arith.constant 0 : index
    %c0_1 = arith.constant 0 : index
    %c0_2 = arith.constant 0 : index
    %0 = vector.load %arg2[%c0, %c0_0, %c0_1, %c0_2] : memref<1x4x16x32xf32, #tpu.memory_space<vmem>>, vector<1x4x16x32xf32>
    %1 = vector.shape_cast %0 : vector<1x4x16x32xf32> to vector<4x16x32xf32>
    %2 = vector.shape_cast %1 : vector<4x16x32xf32> to vector<64x32xf32>
    %3 = arith.truncf %2 : vector<64x32xf32> to vector<64x32xbf16>
    %c0_3 = arith.constant 0 : index
    %c0_4 = arith.constant 0 : index
    %4 = vector.load %arg4[%c0_3, %c0_4] : memref<32x32xbf16, #tpu.memory_space<vmem>>, vector<32x32xbf16>
    %cst = arith.constant dense<0.000000e+00> : vector<64x32xf32>
    %5 = tpu.matmul %3, %4, %cst {dimension_numbers = #tpu.dot_dimension_numbers<[1], [0], [0], [1], [0, 0, 1, 1], [], []>} : vector<64x32xbf16>, vector<32x32xbf16>, vector<64x32xf32> -> vector<64x32xf32>
    %c0_5 = arith.constant 0 : index
    %c0_6 = arith.constant 0 : index
    %6 = vector.load %arg5[%c0_5, %c0_6] : memref<1x32xf32, #tpu.memory_space<vmem>>, vector<1x32xf32>
    %7 = vector.broadcast %6 : vector<1x32xf32> to vector<64x32xf32>
    %8 = arith.addf %5, %7 : vector<64x32xf32>
    %cst_7 = arith.constant 0.000000e+00 : f32
    %9 = vector.broadcast %cst_7 : f32 to vector<64x32xf32>
    %10 = arith.maximumf %8, %9 : vector<64x32xf32>
    %11 = arith.truncf %10 : vector<64x32xf32> to vector<64x32xbf16>
    %c0_8 = arith.constant 0 : index
    %c0_9 = arith.constant 0 : index
    %12 = vector.load %arg6[%c0_8, %c0_9] : memref<32x32xbf16, #tpu.memory_space<vmem>>, vector<32x32xbf16>
    %cst_10 = arith.constant dense<0.000000e+00> : vector<64x32xf32>
    %13 = tpu.matmul %11, %12, %cst_10 {dimension_numbers = #tpu.dot_dimension_numbers<[1], [0], [0], [1], [0, 0, 1, 1], [], []>} : vector<64x32xbf16>, vector<32x32xbf16>, vector<64x32xf32> -> vector<64x32xf32>
    %c0_11 = arith.constant 0 : index
    %c0_12 = arith.constant 0 : index
    %14 = vector.load %arg7[%c0_11, %c0_12] : memref<1x32xf32, #tpu.memory_space<vmem>>, vector<1x32xf32>
    %15 = vector.broadcast %14 : vector<1x32xf32> to vector<64x32xf32>
    %16 = arith.addf %13, %15 : vector<64x32xf32>
    %cst_13 = arith.constant 0.176776692 : f32
    %17 = vector.broadcast %cst_13 : f32 to vector<64x32xf32>
    %18 = arith.mulf %16, %17 : vector<64x32xf32>
    %19 = vector.extract_strided_slice %18 {offsets = [0, 0], sizes = [16, 32], strides = [1, 1]} : vector<64x32xf32> to vector<16x32xf32>
    %20 = vector.extract_strided_slice %18 {offsets = [16, 0], sizes = [16, 32], strides = [1, 1]} : vector<64x32xf32> to vector<16x32xf32>
    %21 = arith.maximumf %19, %20 : vector<16x32xf32>
    %22 = vector.extract_strided_slice %18 {offsets = [32, 0], sizes = [16, 32], strides = [1, 1]} : vector<64x32xf32> to vector<16x32xf32>
    %23 = arith.maximumf %21, %22 : vector<16x32xf32>
    %24 = vector.extract_strided_slice %18 {offsets = [48, 0], sizes = [16, 32], strides = [1, 1]} : vector<64x32xf32> to vector<16x32xf32>
    %25 = arith.maximumf %23, %24 : vector<16x32xf32>
    %cst_14 = arith.constant 0.000000e+00 : f32
    %26 = vector.broadcast %cst_14 : f32 to vector<16x32xf32>
    %cst_15 = arith.constant 0.000000e+00 : f32
    %27 = vector.broadcast %cst_15 : f32 to vector<16x32xf32>
    %28 = vector.extract_strided_slice %18 {offsets = [0, 0], sizes = [16, 32], strides = [1, 1]} : vector<64x32xf32> to vector<16x32xf32>
    %29 = arith.subf %28, %25 : vector<16x32xf32>
    %30 = math.exp %29 : vector<16x32xf32>
    %31 = arith.addf %27, %30 : vector<16x32xf32>
    %c0_16 = arith.constant 0 : index
    %c0_17 = arith.constant 0 : index
    %c0_18 = arith.constant 0 : index
    %c0_19 = arith.constant 0 : index
    %32 = vector.load %arg3[%c0_16, %c0_17, %c0_18, %c0_19] : memref<1x4x16x32xf32, #tpu.memory_space<vmem>>, vector<1x1x16x32xf32>
    %33 = vector.shape_cast %32 : vector<1x1x16x32xf32> to vector<16x32xf32>
    %34 = arith.mulf %30, %33 : vector<16x32xf32>
    %35 = arith.addf %26, %34 : vector<16x32xf32>
    %36 = vector.extract_strided_slice %18 {offsets = [16, 0], sizes = [16, 32], strides = [1, 1]} : vector<64x32xf32> to vector<16x32xf32>
    %37 = arith.subf %36, %25 : vector<16x32xf32>
    %38 = math.exp %37 : vector<16x32xf32>
    %39 = arith.addf %31, %38 : vector<16x32xf32>
    %c0_20 = arith.constant 0 : index
    %c1 = arith.constant 1 : index
    %c0_21 = arith.constant 0 : index
    %c0_22 = arith.constant 0 : index
    %40 = vector.load %arg3[%c0_20, %c1, %c0_21, %c0_22] : memref<1x4x16x32xf32, #tpu.memory_space<vmem>>, vector<1x1x16x32xf32>
    %41 = vector.shape_cast %40 : vector<1x1x16x32xf32> to vector<16x32xf32>
    %42 = arith.mulf %38, %41 : vector<16x32xf32>
    %43 = arith.addf %35, %42 : vector<16x32xf32>
    %44 = vector.extract_strided_slice %18 {offsets = [32, 0], sizes = [16, 32], strides = [1, 1]} : vector<64x32xf32> to vector<16x32xf32>
    %45 = arith.subf %44, %25 : vector<16x32xf32>
    %46 = math.exp %45 : vector<16x32xf32>
    %47 = arith.addf %39, %46 : vector<16x32xf32>
    %c0_23 = arith.constant 0 : index
    %c2 = arith.constant 2 : index
    %c0_24 = arith.constant 0 : index
    %c0_25 = arith.constant 0 : index
    %48 = vector.load %arg3[%c0_23, %c2, %c0_24, %c0_25] : memref<1x4x16x32xf32, #tpu.memory_space<vmem>>, vector<1x1x16x32xf32>
    %49 = vector.shape_cast %48 : vector<1x1x16x32xf32> to vector<16x32xf32>
    %50 = arith.mulf %46, %49 : vector<16x32xf32>
    %51 = arith.addf %43, %50 : vector<16x32xf32>
    %52 = vector.extract_strided_slice %18 {offsets = [48, 0], sizes = [16, 32], strides = [1, 1]} : vector<64x32xf32> to vector<16x32xf32>
    %53 = arith.subf %52, %25 : vector<16x32xf32>
    %54 = math.exp %53 : vector<16x32xf32>
    %55 = arith.addf %47, %54 : vector<16x32xf32>
    %c0_26 = arith.constant 0 : index
    %c3 = arith.constant 3 : index
    %c0_27 = arith.constant 0 : index
    %c0_28 = arith.constant 0 : index
    %56 = vector.load %arg3[%c0_26, %c3, %c0_27, %c0_28] : memref<1x4x16x32xf32, #tpu.memory_space<vmem>>, vector<1x1x16x32xf32>
    %57 = vector.shape_cast %56 : vector<1x1x16x32xf32> to vector<16x32xf32>
    %58 = arith.mulf %54, %57 : vector<16x32xf32>
    %59 = arith.addf %51, %58 : vector<16x32xf32>
    %60 = tpu.reciprocal %55 {approx = true} : vector<16x32xf32> -> vector<16x32xf32>
    %61 = arith.mulf %59, %60 : vector<16x32xf32>
    %c0_29 = arith.constant 0 : index
    %c0_30 = arith.constant 0 : index
    %c0_31 = arith.constant 0 : index
    %62 = vector.load %arg8[%c0_29, %c0_30, %c0_31] : memref<1x16x32xf32, #tpu.memory_space<vmem>>, vector<1x16x32xf32>
    %63 = vector.shape_cast %62 : vector<1x16x32xf32> to vector<16x32xf32>
    %64 = vector.shape_cast %61 : vector<16x32xf32> to vector<1x16x32xf32>
    tpu.vector_store %arg8[%c0_29, %c0_30, %c0_31], %64 {strides = array<i32>} : memref<1x16x32xf32, #tpu.memory_space<vmem>>, vector<1x16x32xf32>,
    return
  }
  func.func @transform_0(%arg0: i32, %arg1: i32) -> (i32, i32, i32, i32) {
    %c0_i32 = arith.constant 0 : i32
    %c0_i32_0 = arith.constant 0 : i32
    %c0_i32_1 = arith.constant 0 : i32
    return %arg0, %c0_i32, %arg1, %c0_i32_0 : i32, i32, i32, i32
  }
  func.func @transform_1(%arg0: i32, %arg1: i32) -> (i32, i32, i32, i32) {
    %c0_i32 = arith.constant 0 : i32
    %c0_i32_0 = arith.constant 0 : i32
    %c0_i32_1 = arith.constant 0 : i32
    return %arg0, %c0_i32, %arg1, %c0_i32_0 : i32, i32, i32, i32
  }
  func.func @transform_2(%arg0: i32, %arg1: i32) -> (i32, i32) {
    %c0_i32 = arith.constant 0 : i32
    %c0_i32_0 = arith.constant 0 : i32
    %c0_i32_1 = arith.constant 0 : i32
    return %c0_i32, %c0_i32_0 : i32, i32
  }
  func.func @transform_3(%arg0: i32, %arg1: i32) -> (i32, i32) {
    %c0_i32 = arith.constant 0 : i32
    %c0_i32_0 = arith.constant 0 : i32
    %c0_i32_1 = arith.constant 0 : i32
    return %c0_i32, %c0_i32_0 : i32, i32
  }
  func.func @transform_4(%arg0: i32, %arg1: i32) -> (i32, i32) {
    %c0_i32 = arith.constant 0 : i32
    %c0_i32_0 = arith.constant 0 : i32
    %c0_i32_1 = arith.constant 0 : i32
    return %c0_i32, %c0_i32_0 : i32, i32
  }
  func.func @transform_5(%arg0: i32, %arg1: i32) -> (i32, i32) {
    %c0_i32 = arith.constant 0 : i32
    %c0_i32_0 = arith.constant 0 : i32
    %c0_i32_1 = arith.constant 0 : i32
    return %c0_i32, %c0_i32_0 : i32, i32
  }
  func.func @transform_6(%arg0: i32, %arg1: i32) -> (i32, i32, i32) {
    %c0_i32 = arith.constant 0 : i32
    %c0_i32_0 = arith.constant 0 : i32
    return %arg0, %arg1, %c0_i32 : i32, i32, i32
  }
}

module attributes {stable_mosaic.version = 11 : i64} {
  func.func @_mlp_kernel(%arg0: i32, %arg1: memref<32x32xbf16, #tpu.memory_space<vmem>>, %arg2: memref<32x64xbf16, #tpu.memory_space<vmem>>, %arg3: memref<1x64xf32, #tpu.memory_space<vmem>>, %arg4: memref<32x64xf32, #tpu.memory_space<vmem>>) attributes {dimension_semantics = [#tpu.dimension_semantics<parallel>], iteration_bounds = array<i64: 1>, scalar_prefetch = 0 : i64, scratch_operands = 0 : i64, tpu.core_type = #tpu.core_type<tc>, window_params = [{transform_indices = @transform_0, window_bounds = array<i64: 32, 32>}, {pipeline_mode = #tpu.pipeline_mode<synchronous>, transform_indices = @transform_1, window_bounds = array<i64: 32, 64>}, {pipeline_mode = #tpu.pipeline_mode<synchronous>, transform_indices = @transform_2, window_bounds = array<i64: 1, 64>}, {transform_indices = @transform_3, window_bounds = array<i64: 32, 64>}]} {
    %c0 = arith.constant 0 : index
    %c0_0 = arith.constant 0 : index
    %0 = vector.load %arg1[%c0, %c0_0] : memref<32x32xbf16, #tpu.memory_space<vmem>>, vector<32x32xbf16>
    %c0_1 = arith.constant 0 : index
    %c0_2 = arith.constant 0 : index
    %1 = vector.load %arg2[%c0_1, %c0_2] : memref<32x64xbf16, #tpu.memory_space<vmem>>, vector<32x64xbf16>
    %cst = arith.constant dense<0.000000e+00> : vector<32x64xf32>
    %2 = tpu.matmul %0, %1, %cst {dimension_numbers = #tpu.dot_dimension_numbers<[1], [0], [0], [1], [0, 0, 1, 1], [], []>} : vector<32x32xbf16>, vector<32x64xbf16>, vector<32x64xf32> -> vector<32x64xf32>
    %c0_3 = arith.constant 0 : index
    %c0_4 = arith.constant 0 : index
    %3 = vector.load %arg3[%c0_3, %c0_4] : memref<1x64xf32, #tpu.memory_space<vmem>>, vector<1x64xf32>
    %4 = vector.broadcast %3 : vector<1x64xf32> to vector<32x64xf32>
    %5 = arith.addf %2, %4 : vector<32x64xf32>
    %c0_5 = arith.constant 0 : index
    %c0_6 = arith.constant 0 : index
    %6 = vector.load %arg4[%c0_5, %c0_6] : memref<32x64xf32, #tpu.memory_space<vmem>>, vector<32x64xf32>
    tpu.vector_store %arg4[%c0_5, %c0_6], %5 {strides = array<i32>} : memref<32x64xf32, #tpu.memory_space<vmem>>, vector<32x64xf32>,
    return
  }
  func.func @transform_0(%arg0: i32) -> (i32, i32) {
    %c0_i32 = arith.constant 0 : i32
    %c0_i32_0 = arith.constant 0 : i32
    return %arg0, %c0_i32 : i32, i32
  }
  func.func @transform_1(%arg0: i32) -> (i32, i32) {
    %c0_i32 = arith.constant 0 : i32
    %c0_i32_0 = arith.constant 0 : i32
    %c0_i32_1 = arith.constant 0 : i32
    return %c0_i32, %c0_i32_0 : i32, i32
  }
  func.func @transform_2(%arg0: i32) -> (i32, i32) {
    %c0_i32 = arith.constant 0 : i32
    %c0_i32_0 = arith.constant 0 : i32
    %c0_i32_1 = arith.constant 0 : i32
    return %c0_i32, %c0_i32_0 : i32, i32
  }
  func.func @transform_3(%arg0: i32) -> (i32, i32) {
    %c0_i32 = arith.constant 0 : i32
    %c0_i32_0 = arith.constant 0 : i32
    return %arg0, %c0_i32 : i32, i32
  }
}

module attributes {stable_mosaic.version = 11 : i64} {
  func.func @_mlp_kernel(%arg0: i32, %arg1: memref<32x67xbf16, #tpu.memory_space<vmem>>, %arg2: memref<67x128xbf16, #tpu.memory_space<vmem>>, %arg3: memref<1x128xf32, #tpu.memory_space<vmem>>, %arg4: memref<32x128xf32, #tpu.memory_space<vmem>>) attributes {dimension_semantics = [#tpu.dimension_semantics<parallel>], iteration_bounds = array<i64: 1>, scalar_prefetch = 0 : i64, scratch_operands = 0 : i64, tpu.core_type = #tpu.core_type<tc>, window_params = [{transform_indices = @transform_0, window_bounds = array<i64: 32, 67>}, {pipeline_mode = #tpu.pipeline_mode<synchronous>, transform_indices = @transform_1, window_bounds = array<i64: 67, 128>}, {pipeline_mode = #tpu.pipeline_mode<synchronous>, transform_indices = @transform_2, window_bounds = array<i64: 1, 128>}, {transform_indices = @transform_3, window_bounds = array<i64: 32, 128>}]} {
    %c0 = arith.constant 0 : index
    %c0_0 = arith.constant 0 : index
    %0 = vector.load %arg1[%c0, %c0_0] : memref<32x67xbf16, #tpu.memory_space<vmem>>, vector<32x67xbf16>
    %c0_1 = arith.constant 0 : index
    %c0_2 = arith.constant 0 : index
    %1 = vector.load %arg2[%c0_1, %c0_2] : memref<67x128xbf16, #tpu.memory_space<vmem>>, vector<67x128xbf16>
    %cst = arith.constant dense<0.000000e+00> : vector<32x128xf32>
    %2 = tpu.matmul %0, %1, %cst {dimension_numbers = #tpu.dot_dimension_numbers<[1], [0], [0], [1], [0, 0, 1, 1], [], []>} : vector<32x67xbf16>, vector<67x128xbf16>, vector<32x128xf32> -> vector<32x128xf32>
    %c0_3 = arith.constant 0 : index
    %c0_4 = arith.constant 0 : index
    %3 = vector.load %arg3[%c0_3, %c0_4] : memref<1x128xf32, #tpu.memory_space<vmem>>, vector<1x128xf32>
    %4 = vector.broadcast %3 : vector<1x128xf32> to vector<32x128xf32>
    %5 = arith.addf %2, %4 : vector<32x128xf32>
    %c0_5 = arith.constant 0 : index
    %c0_6 = arith.constant 0 : index
    %6 = vector.load %arg4[%c0_5, %c0_6] : memref<32x128xf32, #tpu.memory_space<vmem>>, vector<32x128xf32>
    tpu.vector_store %arg4[%c0_5, %c0_6], %5 {strides = array<i32>} : memref<32x128xf32, #tpu.memory_space<vmem>>, vector<32x128xf32>,
    return
  }
  func.func @transform_0(%arg0: i32) -> (i32, i32) {
    %c0_i32 = arith.constant 0 : i32
    %c0_i32_0 = arith.constant 0 : i32
    return %arg0, %c0_i32 : i32, i32
  }
  func.func @transform_1(%arg0: i32) -> (i32, i32) {
    %c0_i32 = arith.constant 0 : i32
    %c0_i32_0 = arith.constant 0 : i32
    %c0_i32_1 = arith.constant 0 : i32
    return %c0_i32, %c0_i32_0 : i32, i32
  }
  func.func @transform_2(%arg0: i32) -> (i32, i32) {
    %c0_i32 = arith.constant 0 : i32
    %c0_i32_0 = arith.constant 0 : i32
    %c0_i32_1 = arith.constant 0 : i32
    return %c0_i32, %c0_i32_0 : i32, i32
  }
  func.func @transform_3(%arg0: i32) -> (i32, i32) {
    %c0_i32 = arith.constant 0 : i32
    %c0_i32_0 = arith.constant 0 : i32
    return %arg0, %c0_i32 : i32, i32
  }
}

module attributes {stable_mosaic.version = 11 : i64} {
  func.func @_mlp_kernel(%arg0: i32, %arg1: memref<32x128xbf16, #tpu.memory_space<vmem>>, %arg2: memref<128x128xbf16, #tpu.memory_space<vmem>>, %arg3: memref<1x128xf32, #tpu.memory_space<vmem>>, %arg4: memref<32x128xf32, #tpu.memory_space<vmem>>) attributes {dimension_semantics = [#tpu.dimension_semantics<parallel>], iteration_bounds = array<i64: 1>, scalar_prefetch = 0 : i64, scratch_operands = 0 : i64, tpu.core_type = #tpu.core_type<tc>, window_params = [{transform_indices = @transform_0, window_bounds = array<i64: 32, 128>}, {pipeline_mode = #tpu.pipeline_mode<synchronous>, transform_indices = @transform_1, window_bounds = array<i64: 128, 128>}, {pipeline_mode = #tpu.pipeline_mode<synchronous>, transform_indices = @transform_2, window_bounds = array<i64: 1, 128>}, {transform_indices = @transform_3, window_bounds = array<i64: 32, 128>}]} {
    %c0 = arith.constant 0 : index
    %c0_0 = arith.constant 0 : index
    %0 = vector.load %arg1[%c0, %c0_0] : memref<32x128xbf16, #tpu.memory_space<vmem>>, vector<32x128xbf16>
    %c0_1 = arith.constant 0 : index
    %c0_2 = arith.constant 0 : index
    %1 = vector.load %arg2[%c0_1, %c0_2] : memref<128x128xbf16, #tpu.memory_space<vmem>>, vector<128x128xbf16>
    %cst = arith.constant dense<0.000000e+00> : vector<32x128xf32>
    %2 = tpu.matmul %0, %1, %cst {dimension_numbers = #tpu.dot_dimension_numbers<[1], [0], [0], [1], [0, 0, 1, 1], [], []>} : vector<32x128xbf16>, vector<128x128xbf16>, vector<32x128xf32> -> vector<32x128xf32>
    %c0_3 = arith.constant 0 : index
    %c0_4 = arith.constant 0 : index
    %3 = vector.load %arg3[%c0_3, %c0_4] : memref<1x128xf32, #tpu.memory_space<vmem>>, vector<1x128xf32>
    %4 = vector.broadcast %3 : vector<1x128xf32> to vector<32x128xf32>
    %5 = arith.addf %2, %4 : vector<32x128xf32>
    %c0_5 = arith.constant 0 : index
    %c0_6 = arith.constant 0 : index
    %6 = vector.load %arg4[%c0_5, %c0_6] : memref<32x128xf32, #tpu.memory_space<vmem>>, vector<32x128xf32>
    tpu.vector_store %arg4[%c0_5, %c0_6], %5 {strides = array<i32>} : memref<32x128xf32, #tpu.memory_space<vmem>>, vector<32x128xf32>,
    return
  }
  func.func @transform_0(%arg0: i32) -> (i32, i32) {
    %c0_i32 = arith.constant 0 : i32
    %c0_i32_0 = arith.constant 0 : i32
    return %arg0, %c0_i32 : i32, i32
  }
  func.func @transform_1(%arg0: i32) -> (i32, i32) {
    %c0_i32 = arith.constant 0 : i32
    %c0_i32_0 = arith.constant 0 : i32
    %c0_i32_1 = arith.constant 0 : i32
    return %c0_i32, %c0_i32_0 : i32, i32
  }
  func.func @transform_2(%arg0: i32) -> (i32, i32) {
    %c0_i32 = arith.constant 0 : i32
    %c0_i32_0 = arith.constant 0 : i32
    %c0_i32_1 = arith.constant 0 : i32
    return %c0_i32, %c0_i32_0 : i32, i32
  }
  func.func @transform_3(%arg0: i32) -> (i32, i32) {
    %c0_i32 = arith.constant 0 : i32
    %c0_i32_0 = arith.constant 0 : i32
    return %arg0, %c0_i32 : i32, i32
  }
}

module attributes {stable_mosaic.version = 11 : i64} {
  func.func @_mlp_kernel(%arg0: i32, %arg1: memref<8x128xbf16, #tpu.memory_space<vmem>>, %arg2: memref<128x32xbf16, #tpu.memory_space<vmem>>, %arg3: memref<1x32xf32, #tpu.memory_space<vmem>>, %arg4: memref<32x96xbf16, #tpu.memory_space<vmem>>, %arg5: memref<8x96xf32, #tpu.memory_space<vmem>>) attributes {dimension_semantics = [#tpu.dimension_semantics<parallel>], iteration_bounds = array<i64: 1>, scalar_prefetch = 0 : i64, scratch_operands = 0 : i64, tpu.core_type = #tpu.core_type<tc>, window_params = [{transform_indices = @transform_0, window_bounds = array<i64: 8, 128>}, {pipeline_mode = #tpu.pipeline_mode<synchronous>, transform_indices = @transform_1, window_bounds = array<i64: 128, 32>}, {pipeline_mode = #tpu.pipeline_mode<synchronous>, transform_indices = @transform_2, window_bounds = array<i64: 1, 32>}, {pipeline_mode = #tpu.pipeline_mode<synchronous>, transform_indices = @transform_3, window_bounds = array<i64: 32, 96>}, {transform_indices = @transform_4, window_bounds = array<i64: 8, 96>}]} {
    %c0 = arith.constant 0 : index
    %c0_0 = arith.constant 0 : index
    %0 = vector.load %arg1[%c0, %c0_0] : memref<8x128xbf16, #tpu.memory_space<vmem>>, vector<8x128xbf16>
    %c0_1 = arith.constant 0 : index
    %c0_2 = arith.constant 0 : index
    %1 = vector.load %arg2[%c0_1, %c0_2] : memref<128x32xbf16, #tpu.memory_space<vmem>>, vector<128x32xbf16>
    %cst = arith.constant dense<0.000000e+00> : vector<8x32xf32>
    %2 = tpu.matmul %0, %1, %cst {dimension_numbers = #tpu.dot_dimension_numbers<[1], [0], [0], [1], [0, 0, 1, 1], [], []>} : vector<8x128xbf16>, vector<128x32xbf16>, vector<8x32xf32> -> vector<8x32xf32>
    %c0_3 = arith.constant 0 : index
    %c0_4 = arith.constant 0 : index
    %3 = vector.load %arg3[%c0_3, %c0_4] : memref<1x32xf32, #tpu.memory_space<vmem>>, vector<1x32xf32>
    %4 = vector.broadcast %3 : vector<1x32xf32> to vector<8x32xf32>
    %5 = arith.addf %2, %4 : vector<8x32xf32>
    %c0_5 = arith.constant 0 : index
    %c0_6 = arith.constant 0 : index
    %6 = vector.load %arg4[%c0_5, %c0_6] : memref<32x96xbf16, #tpu.memory_space<vmem>>, vector<32x96xbf16>
    %7 = arith.truncf %5 : vector<8x32xf32> to vector<8x32xbf16>
    %cst_7 = arith.constant dense<0.000000e+00> : vector<8x96xf32>
    %8 = tpu.matmul %7, %6, %cst_7 {dimension_numbers = #tpu.dot_dimension_numbers<[1], [0], [0], [1], [0, 0, 1, 1], [], []>} : vector<8x32xbf16>, vector<32x96xbf16>, vector<8x96xf32> -> vector<8x96xf32>
    %c0_8 = arith.constant 0 : index
    %c0_9 = arith.constant 0 : index
    %9 = vector.load %arg5[%c0_8, %c0_9] : memref<8x96xf32, #tpu.memory_space<vmem>>, vector<8x96xf32>
    tpu.vector_store %arg5[%c0_8, %c0_9], %8 {strides = array<i32>} : memref<8x96xf32, #tpu.memory_space<vmem>>, vector<8x96xf32>,
    return
  }
  func.func @transform_0(%arg0: i32) -> (i32, i32) {
    %c0_i32 = arith.constant 0 : i32
    %c0_i32_0 = arith.constant 0 : i32
    return %arg0, %c0_i32 : i32, i32
  }
  func.func @transform_1(%arg0: i32) -> (i32, i32) {
    %c0_i32 = arith.constant 0 : i32
    %c0_i32_0 = arith.constant 0 : i32
    %c0_i32_1 = arith.constant 0 : i32
    return %c0_i32, %c0_i32_0 : i32, i32
  }
  func.func @transform_2(%arg0: i32) -> (i32, i32) {
    %c0_i32 = arith.constant 0 : i32
    %c0_i32_0 = arith.constant 0 : i32
    %c0_i32_1 = arith.constant 0 : i32
    return %c0_i32, %c0_i32_0 : i32, i32
  }
  func.func @transform_3(%arg0: i32) -> (i32, i32) {
    %c0_i32 = arith.constant 0 : i32
    %c0_i32_0 = arith.constant 0 : i32
    %c0_i32_1 = arith.constant 0 : i32
    return %c0_i32, %c0_i32_0 : i32, i32
  }
  func.func @transform_4(%arg0: i32) -> (i32, i32) {
    %c0_i32 = arith.constant 0 : i32
    %c0_i32_0 = arith.constant 0 : i32
    return %arg0, %c0_i32 : i32, i32
  }
}

module attributes {stable_mosaic.version = 11 : i64} {
  func.func @_mlp_kernel(%arg0: i32, %arg1: memref<32x3xbf16, #tpu.memory_space<vmem>>, %arg2: memref<3x32xbf16, #tpu.memory_space<vmem>>, %arg3: memref<1x32xf32, #tpu.memory_space<vmem>>, %arg4: memref<32x32xbf16, #tpu.memory_space<vmem>>, %arg5: memref<1x32xf32, #tpu.memory_space<vmem>>, %arg6: memref<32x32xf32, #tpu.memory_space<vmem>>) attributes {dimension_semantics = [#tpu.dimension_semantics<parallel>], iteration_bounds = array<i64: 1>, scalar_prefetch = 0 : i64, scratch_operands = 0 : i64, tpu.core_type = #tpu.core_type<tc>, window_params = [{transform_indices = @transform_0, window_bounds = array<i64: 32, 3>}, {pipeline_mode = #tpu.pipeline_mode<synchronous>, transform_indices = @transform_1, window_bounds = array<i64: 3, 32>}, {pipeline_mode = #tpu.pipeline_mode<synchronous>, transform_indices = @transform_2, window_bounds = array<i64: 1, 32>}, {pipeline_mode = #tpu.pipeline_mode<synchronous>, transform_indices = @transform_3, window_bounds = array<i64: 32, 32>}, {pipeline_mode = #tpu.pipeline_mode<synchronous>, transform_indices = @transform_4, window_bounds = array<i64: 1, 32>}, {transform_indices = @transform_5, window_bounds = array<i64: 32, 32>}]} {
    %c0 = arith.constant 0 : index
    %c0_0 = arith.constant 0 : index
    %0 = vector.load %arg1[%c0, %c0_0] : memref<32x3xbf16, #tpu.memory_space<vmem>>, vector<32x3xbf16>
    %c0_1 = arith.constant 0 : index
    %c0_2 = arith.constant 0 : index
    %1 = vector.load %arg2[%c0_1, %c0_2] : memref<3x32xbf16, #tpu.memory_space<vmem>>, vector<3x32xbf16>
    %cst = arith.constant dense<0.000000e+00> : vector<32x32xf32>
    %2 = tpu.matmul %0, %1, %cst {dimension_numbers = #tpu.dot_dimension_numbers<[1], [0], [0], [1], [0, 0, 1, 1], [], []>} : vector<32x3xbf16>, vector<3x32xbf16>, vector<32x32xf32> -> vector<32x32xf32>
    %c0_3 = arith.constant 0 : index
    %c0_4 = arith.constant 0 : index
    %3 = vector.load %arg3[%c0_3, %c0_4] : memref<1x32xf32, #tpu.memory_space<vmem>>, vector<1x32xf32>
    %4 = vector.broadcast %3 : vector<1x32xf32> to vector<32x32xf32>
    %5 = arith.addf %2, %4 : vector<32x32xf32>
    %cst_5 = arith.constant 0.000000e+00 : f32
    %6 = vector.broadcast %cst_5 : f32 to vector<32x32xf32>
    %7 = arith.maximumf %5, %6 : vector<32x32xf32>
    %c0_6 = arith.constant 0 : index
    %c0_7 = arith.constant 0 : index
    %8 = vector.load %arg4[%c0_6, %c0_7] : memref<32x32xbf16, #tpu.memory_space<vmem>>, vector<32x32xbf16>
    %9 = arith.truncf %7 : vector<32x32xf32> to vector<32x32xbf16>
    %cst_8 = arith.constant dense<0.000000e+00> : vector<32x32xf32>
    %10 = tpu.matmul %9, %8, %cst_8 {dimension_numbers = #tpu.dot_dimension_numbers<[1], [0], [0], [1], [0, 0, 1, 1], [], []>} : vector<32x32xbf16>, vector<32x32xbf16>, vector<32x32xf32> -> vector<32x32xf32>
    %c0_9 = arith.constant 0 : index
    %c0_10 = arith.constant 0 : index
    %11 = vector.load %arg5[%c0_9, %c0_10] : memref<1x32xf32, #tpu.memory_space<vmem>>, vector<1x32xf32>
    %12 = vector.broadcast %11 : vector<1x32xf32> to vector<32x32xf32>
    %13 = arith.addf %10, %12 : vector<32x32xf32>
    %c0_11 = arith.constant 0 : index
    %c0_12 = arith.constant 0 : index
    %14 = vector.load %arg6[%c0_11, %c0_12] : memref<32x32xf32, #tpu.memory_space<vmem>>, vector<32x32xf32>
    tpu.vector_store %arg6[%c0_11, %c0_12], %13 {strides = array<i32>} : memref<32x32xf32, #tpu.memory_space<vmem>>, vector<32x32xf32>,
    return
  }
  func.func @transform_0(%arg0: i32) -> (i32, i32) {
    %c0_i32 = arith.constant 0 : i32
    %c0_i32_0 = arith.constant 0 : i32
    return %arg0, %c0_i32 : i32, i32
  }
  func.func @transform_1(%arg0: i32) -> (i32, i32) {
    %c0_i32 = arith.constant 0 : i32
    %c0_i32_0 = arith.constant 0 : i32
    %c0_i32_1 = arith.constant 0 : i32
    return %c0_i32, %c0_i32_0 : i32, i32
  }
  func.func @transform_2(%arg0: i32) -> (i32, i32) {
    %c0_i32 = arith.constant 0 : i32
    %c0_i32_0 = arith.constant 0 : i32
    %c0_i32_1 = arith.constant 0 : i32
    return %c0_i32, %c0_i32_0 : i32, i32
  }
  func.func @transform_3(%arg0: i32) -> (i32, i32) {
    %c0_i32 = arith.constant 0 : i32
    %c0_i32_0 = arith.constant 0 : i32
    %c0_i32_1 = arith.constant 0 : i32
    return %c0_i32, %c0_i32_0 : i32, i32
  }
  func.func @transform_4(%arg0: i32) -> (i32, i32) {
    %c0_i32 = arith.constant 0 : i32
    %c0_i32_0 = arith.constant 0 : i32
    %c0_i32_1 = arith.constant 0 : i32
    return %c0_i32, %c0_i32_0 : i32, i32
  }
  func.func @transform_5(%arg0: i32) -> (i32, i32) {
    %c0_i32 = arith.constant 0 : i32
    %c0_i32_0 = arith.constant 0 : i32
    return %arg0, %c0_i32 : i32, i32
  }
}

module attributes {stable_mosaic.version = 11 : i64} {
  func.func @_vec_attn_kernel(%arg0: i32, %arg1: i32, %arg2: memref<1x4x8x32xf32, #tpu.memory_space<vmem>>, %arg3: memref<1x4x8x32xf32, #tpu.memory_space<vmem>>, %arg4: memref<32x32xbf16, #tpu.memory_space<vmem>>, %arg5: memref<1x32xf32, #tpu.memory_space<vmem>>, %arg6: memref<32x32xbf16, #tpu.memory_space<vmem>>, %arg7: memref<1x32xf32, #tpu.memory_space<vmem>>, %arg8: memref<1x8x32xf32, #tpu.memory_space<vmem>>) attributes {dimension_semantics = [#tpu.dimension_semantics<parallel>, #tpu.dimension_semantics<parallel>], iteration_bounds = array<i64: 2, 1>, scalar_prefetch = 0 : i64, scratch_operands = 0 : i64, tpu.core_type = #tpu.core_type<tc>, window_params = [{transform_indices = @transform_0, window_bounds = array<i64: 1, 4, 8, 32>}, {transform_indices = @transform_1, window_bounds = array<i64: 1, 4, 8, 32>}, {pipeline_mode = #tpu.pipeline_mode<synchronous>, transform_indices = @transform_2, window_bounds = array<i64: 32, 32>}, {pipeline_mode = #tpu.pipeline_mode<synchronous>, transform_indices = @transform_3, window_bounds = array<i64: 1, 32>}, {pipeline_mode = #tpu.pipeline_mode<synchronous>, transform_indices = @transform_4, window_bounds = array<i64: 32, 32>}, {pipeline_mode = #tpu.pipeline_mode<synchronous>, transform_indices = @transform_5, window_bounds = array<i64: 1, 32>}, {transform_indices = @transform_6, window_bounds = array<i64: 1, 8, 32>}]} {
    %c0 = arith.constant 0 : index
    %c0_0 = arith.constant 0 : index
    %c0_1 = arith.constant 0 : index
    %c0_2 = arith.constant 0 : index
    %0 = vector.load %arg2[%c0, %c0_0, %c0_1, %c0_2] : memref<1x4x8x32xf32, #tpu.memory_space<vmem>>, vector<1x4x8x32xf32>
    %1 = vector.shape_cast %0 : vector<1x4x8x32xf32> to vector<4x8x32xf32>
    %2 = vector.shape_cast %1 : vector<4x8x32xf32> to vector<32x32xf32>
    %3 = arith.truncf %2 : vector<32x32xf32> to vector<32x32xbf16>
    %c0_3 = arith.constant 0 : index
    %c0_4 = arith.constant 0 : index
    %4 = vector.load %arg4[%c0_3, %c0_4] : memref<32x32xbf16, #tpu.memory_space<vmem>>, vector<32x32xbf16>
    %cst = arith.constant dense<0.000000e+00> : vector<32x32xf32>
    %5 = tpu.matmul %3, %4, %cst {dimension_numbers = #tpu.dot_dimension_numbers<[1], [0], [0], [1], [0, 0, 1, 1], [], []>} : vector<32x32xbf16>, vector<32x32xbf16>, vector<32x32xf32> -> vector<32x32xf32>
    %c0_5 = arith.constant 0 : index
    %c0_6 = arith.constant 0 : index
    %6 = vector.load %arg5[%c0_5, %c0_6] : memref<1x32xf32, #tpu.memory_space<vmem>>, vector<1x32xf32>
    %7 = vector.broadcast %6 : vector<1x32xf32> to vector<32x32xf32>
    %8 = arith.addf %5, %7 : vector<32x32xf32>
    %cst_7 = arith.constant 0.000000e+00 : f32
    %9 = vector.broadcast %cst_7 : f32 to vector<32x32xf32>
    %10 = arith.maximumf %8, %9 : vector<32x32xf32>
    %11 = arith.truncf %10 : vector<32x32xf32> to vector<32x32xbf16>
    %c0_8 = arith.constant 0 : index
    %c0_9 = arith.constant 0 : index
    %12 = vector.load %arg6[%c0_8, %c0_9] : memref<32x32xbf16, #tpu.memory_space<vmem>>, vector<32x32xbf16>
    %cst_10 = arith.constant dense<0.000000e+00> : vector<32x32xf32>
    %13 = tpu.matmul %11, %12, %cst_10 {dimension_numbers = #tpu.dot_dimension_numbers<[1], [0], [0], [1], [0, 0, 1, 1], [], []>} : vector<32x32xbf16>, vector<32x32xbf16>, vector<32x32xf32> -> vector<32x32xf32>
    %c0_11 = arith.constant 0 : index
    %c0_12 = arith.constant 0 : index
    %14 = vector.load %arg7[%c0_11, %c0_12] : memref<1x32xf32, #tpu.memory_space<vmem>>, vector<1x32xf32>
    %15 = vector.broadcast %14 : vector<1x32xf32> to vector<32x32xf32>
    %16 = arith.addf %13, %15 : vector<32x32xf32>
    %cst_13 = arith.constant 0.176776692 : f32
    %17 = vector.broadcast %cst_13 : f32 to vector<32x32xf32>
    %18 = arith.mulf %16, %17 : vector<32x32xf32>
    %19 = vector.extract_strided_slice %18 {offsets = [0, 0], sizes = [8, 32], strides = [1, 1]} : vector<32x32xf32> to vector<8x32xf32>
    %20 = vector.extract_strided_slice %18 {offsets = [8, 0], sizes = [8, 32], strides = [1, 1]} : vector<32x32xf32> to vector<8x32xf32>
    %21 = arith.maximumf %19, %20 : vector<8x32xf32>
    %22 = vector.extract_strided_slice %18 {offsets = [16, 0], sizes = [8, 32], strides = [1, 1]} : vector<32x32xf32> to vector<8x32xf32>
    %23 = arith.maximumf %21, %22 : vector<8x32xf32>
    %24 = vector.extract_strided_slice %18 {offsets = [24, 0], sizes = [8, 32], strides = [1, 1]} : vector<32x32xf32> to vector<8x32xf32>
    %25 = arith.maximumf %23, %24 : vector<8x32xf32>
    %cst_14 = arith.constant 0.000000e+00 : f32
    %26 = vector.broadcast %cst_14 : f32 to vector<8x32xf32>
    %cst_15 = arith.constant 0.000000e+00 : f32
    %27 = vector.broadcast %cst_15 : f32 to vector<8x32xf32>
    %28 = vector.extract_strided_slice %18 {offsets = [0, 0], sizes = [8, 32], strides = [1, 1]} : vector<32x32xf32> to vector<8x32xf32>
    %29 = arith.subf %28, %25 : vector<8x32xf32>
    %30 = math.exp %29 : vector<8x32xf32>
    %31 = arith.addf %27, %30 : vector<8x32xf32>
    %c0_16 = arith.constant 0 : index
    %c0_17 = arith.constant 0 : index
    %c0_18 = arith.constant 0 : index
    %c0_19 = arith.constant 0 : index
    %32 = vector.load %arg3[%c0_16, %c0_17, %c0_18, %c0_19] : memref<1x4x8x32xf32, #tpu.memory_space<vmem>>, vector<1x1x8x32xf32>
    %33 = vector.shape_cast %32 : vector<1x1x8x32xf32> to vector<8x32xf32>
    %34 = arith.mulf %30, %33 : vector<8x32xf32>
    %35 = arith.addf %26, %34 : vector<8x32xf32>
    %36 = vector.extract_strided_slice %18 {offsets = [8, 0], sizes = [8, 32], strides = [1, 1]} : vector<32x32xf32> to vector<8x32xf32>
    %37 = arith.subf %36, %25 : vector<8x32xf32>
    %38 = math.exp %37 : vector<8x32xf32>
    %39 = arith.addf %31, %38 : vector<8x32xf32>
    %c0_20 = arith.constant 0 : index
    %c1 = arith.constant 1 : index
    %c0_21 = arith.constant 0 : index
    %c0_22 = arith.constant 0 : index
    %40 = vector.load %arg3[%c0_20, %c1, %c0_21, %c0_22] : memref<1x4x8x32xf32, #tpu.memory_space<vmem>>, vector<1x1x8x32xf32>
    %41 = vector.shape_cast %40 : vector<1x1x8x32xf32> to vector<8x32xf32>
    %42 = arith.mulf %38, %41 : vector<8x32xf32>
    %43 = arith.addf %35, %42 : vector<8x32xf32>
    %44 = vector.extract_strided_slice %18 {offsets = [16, 0], sizes = [8, 32], strides = [1, 1]} : vector<32x32xf32> to vector<8x32xf32>
    %45 = arith.subf %44, %25 : vector<8x32xf32>
    %46 = math.exp %45 : vector<8x32xf32>
    %47 = arith.addf %39, %46 : vector<8x32xf32>
    %c0_23 = arith.constant 0 : index
    %c2 = arith.constant 2 : index
    %c0_24 = arith.constant 0 : index
    %c0_25 = arith.constant 0 : index
    %48 = vector.load %arg3[%c0_23, %c2, %c0_24, %c0_25] : memref<1x4x8x32xf32, #tpu.memory_space<vmem>>, vector<1x1x8x32xf32>
    %49 = vector.shape_cast %48 : vector<1x1x8x32xf32> to vector<8x32xf32>
    %50 = arith.mulf %46, %49 : vector<8x32xf32>
    %51 = arith.addf %43, %50 : vector<8x32xf32>
    %52 = vector.extract_strided_slice %18 {offsets = [24, 0], sizes = [8, 32], strides = [1, 1]} : vector<32x32xf32> to vector<8x32xf32>
    %53 = arith.subf %52, %25 : vector<8x32xf32>
    %54 = math.exp %53 : vector<8x32xf32>
    %55 = arith.addf %47, %54 : vector<8x32xf32>
    %c0_26 = arith.constant 0 : index
    %c3 = arith.constant 3 : index
    %c0_27 = arith.constant 0 : index
    %c0_28 = arith.constant 0 : index
    %56 = vector.load %arg3[%c0_26, %c3, %c0_27, %c0_28] : memref<1x4x8x32xf32, #tpu.memory_space<vmem>>, vector<1x1x8x32xf32>
    %57 = vector.shape_cast %56 : vector<1x1x8x32xf32> to vector<8x32xf32>
    %58 = arith.mulf %54, %57 : vector<8x32xf32>
    %59 = arith.addf %51, %58 : vector<8x32xf32>
    %60 = tpu.reciprocal %55 {approx = true} : vector<8x32xf32> -> vector<8x32xf32>
    %61 = arith.mulf %59, %60 : vector<8x32xf32>
    %c0_29 = arith.constant 0 : index
    %c0_30 = arith.constant 0 : index
    %c0_31 = arith.constant 0 : index
    %62 = vector.load %arg8[%c0_29, %c0_30, %c0_31] : memref<1x8x32xf32, #tpu.memory_space<vmem>>, vector<1x8x32xf32>
    %63 = vector.shape_cast %62 : vector<1x8x32xf32> to vector<8x32xf32>
    %64 = vector.shape_cast %61 : vector<8x32xf32> to vector<1x8x32xf32>
    tpu.vector_store %arg8[%c0_29, %c0_30, %c0_31], %64 {strides = array<i32>} : memref<1x8x32xf32, #tpu.memory_space<vmem>>, vector<1x8x32xf32>,
    return
  }
  func.func @transform_0(%arg0: i32, %arg1: i32) -> (i32, i32, i32, i32) {
    %c0_i32 = arith.constant 0 : i32
    %c0_i32_0 = arith.constant 0 : i32
    %c0_i32_1 = arith.constant 0 : i32
    return %arg0, %c0_i32, %arg1, %c0_i32_0 : i32, i32, i32, i32
  }
  func.func @transform_1(%arg0: i32, %arg1: i32) -> (i32, i32, i32, i32) {
    %c0_i32 = arith.constant 0 : i32
    %c0_i32_0 = arith.constant 0 : i32
    %c0_i32_1 = arith.constant 0 : i32
    return %arg0, %c0_i32, %arg1, %c0_i32_0 : i32, i32, i32, i32
  }
  func.func @transform_2(%arg0: i32, %arg1: i32) -> (i32, i32) {
    %c0_i32 = arith.constant 0 : i32
    %c0_i32_0 = arith.constant 0 : i32
    %c0_i32_1 = arith.constant 0 : i32
    return %c0_i32, %c0_i32_0 : i32, i32
  }
  func.func @transform_3(%arg0: i32, %arg1: i32) -> (i32, i32) {
    %c0_i32 = arith.constant 0 : i32
    %c0_i32_0 = arith.constant 0 : i32
    %c0_i32_1 = arith.constant 0 : i32
    return %c0_i32, %c0_i32_0 : i32, i32
  }
  func.func @transform_4(%arg0: i32, %arg1: i32) -> (i32, i32) {
    %c0_i32 = arith.constant 0 : i32
    %c0_i32_0 = arith.constant 0 : i32
    %c0_i32_1 = arith.constant 0 : i32
    return %c0_i32, %c0_i32_0 : i32, i32
  }
  func.func @transform_5(%arg0: i32, %arg1: i32) -> (i32, i32) {
    %c0_i32 = arith.constant 0 : i32
    %c0_i32_0 = arith.constant 0 : i32
    %c0_i32_1 = arith.constant 0 : i32
    return %c0_i32, %c0_i32_0 : i32, i32
  }
  func.func @transform_6(%arg0: i32, %arg1: i32) -> (i32, i32, i32) {
    %c0_i32 = arith.constant 0 : i32
    %c0_i32_0 = arith.constant 0 : i32
    return %arg0, %arg1, %c0_i32 : i32, i32, i32
  }
}

module attributes {stable_mosaic.version = 11 : i64} {
  func.func @_mlp_kernel(%arg0: i32, %arg1: memref<8x32xbf16, #tpu.memory_space<vmem>>, %arg2: memref<32x128xbf16, #tpu.memory_space<vmem>>, %arg3: memref<1x128xf32, #tpu.memory_space<vmem>>, %arg4: memref<8x128xf32, #tpu.memory_space<vmem>>) attributes {dimension_semantics = [#tpu.dimension_semantics<parallel>], iteration_bounds = array<i64: 1>, scalar_prefetch = 0 : i64, scratch_operands = 0 : i64, tpu.core_type = #tpu.core_type<tc>, window_params = [{transform_indices = @transform_0, window_bounds = array<i64: 8, 32>}, {pipeline_mode = #tpu.pipeline_mode<synchronous>, transform_indices = @transform_1, window_bounds = array<i64: 32, 128>}, {pipeline_mode = #tpu.pipeline_mode<synchronous>, transform_indices = @transform_2, window_bounds = array<i64: 1, 128>}, {transform_indices = @transform_3, window_bounds = array<i64: 8, 128>}]} {
    %c0 = arith.constant 0 : index
    %c0_0 = arith.constant 0 : index
    %0 = vector.load %arg1[%c0, %c0_0] : memref<8x32xbf16, #tpu.memory_space<vmem>>, vector<8x32xbf16>
    %c0_1 = arith.constant 0 : index
    %c0_2 = arith.constant 0 : index
    %1 = vector.load %arg2[%c0_1, %c0_2] : memref<32x128xbf16, #tpu.memory_space<vmem>>, vector<32x128xbf16>
    %cst = arith.constant dense<0.000000e+00> : vector<8x128xf32>
    %2 = tpu.matmul %0, %1, %cst {dimension_numbers = #tpu.dot_dimension_numbers<[1], [0], [0], [1], [0, 0, 1, 1], [], []>} : vector<8x32xbf16>, vector<32x128xbf16>, vector<8x128xf32> -> vector<8x128xf32>
    %c0_3 = arith.constant 0 : index
    %c0_4 = arith.constant 0 : index
    %3 = vector.load %arg3[%c0_3, %c0_4] : memref<1x128xf32, #tpu.memory_space<vmem>>, vector<1x128xf32>
    %4 = vector.broadcast %3 : vector<1x128xf32> to vector<8x128xf32>
    %5 = arith.addf %2, %4 : vector<8x128xf32>
    %c0_5 = arith.constant 0 : index
    %c0_6 = arith.constant 0 : index
    %6 = vector.load %arg4[%c0_5, %c0_6] : memref<8x128xf32, #tpu.memory_space<vmem>>, vector<8x128xf32>
    tpu.vector_store %arg4[%c0_5, %c0_6], %5 {strides = array<i32>} : memref<8x128xf32, #tpu.memory_space<vmem>>, vector<8x128xf32>,
    return
  }
  func.func @transform_0(%arg0: i32) -> (i32, i32) {
    %c0_i32 = arith.constant 0 : i32
    %c0_i32_0 = arith.constant 0 : i32
    return %arg0, %c0_i32 : i32, i32
  }
  func.func @transform_1(%arg0: i32) -> (i32, i32) {
    %c0_i32 = arith.constant 0 : i32
    %c0_i32_0 = arith.constant 0 : i32
    %c0_i32_1 = arith.constant 0 : i32
    return %c0_i32, %c0_i32_0 : i32, i32
  }
  func.func @transform_2(%arg0: i32) -> (i32, i32) {
    %c0_i32 = arith.constant 0 : i32
    %c0_i32_0 = arith.constant 0 : i32
    %c0_i32_1 = arith.constant 0 : i32
    return %c0_i32, %c0_i32_0 : i32, i32
  }
  func.func @transform_3(%arg0: i32) -> (i32, i32) {
    %c0_i32 = arith.constant 0 : i32
    %c0_i32_0 = arith.constant 0 : i32
    return %arg0, %c0_i32 : i32, i32
  }
}

module attributes {stable_mosaic.version = 11 : i64} {
  func.func @_mlp_kernel(%arg0: i32, %arg1: memref<2x128xbf16, #tpu.memory_space<vmem>>, %arg2: memref<128x256xbf16, #tpu.memory_space<vmem>>, %arg3: memref<1x256xf32, #tpu.memory_space<vmem>>, %arg4: memref<256x64xbf16, #tpu.memory_space<vmem>>, %arg5: memref<1x64xf32, #tpu.memory_space<vmem>>, %arg6: memref<64x5xbf16, #tpu.memory_space<vmem>>, %arg7: memref<1x5xf32, #tpu.memory_space<vmem>>, %arg8: memref<2x5xf32, #tpu.memory_space<vmem>>) attributes {dimension_semantics = [#tpu.dimension_semantics<parallel>], iteration_bounds = array<i64: 1>, scalar_prefetch = 0 : i64, scratch_operands = 0 : i64, tpu.core_type = #tpu.core_type<tc>, window_params = [{transform_indices = @transform_0, window_bounds = array<i64: 2, 128>}, {pipeline_mode = #tpu.pipeline_mode<synchronous>, transform_indices = @transform_1, window_bounds = array<i64: 128, 256>}, {pipeline_mode = #tpu.pipeline_mode<synchronous>, transform_indices = @transform_2, window_bounds = array<i64: 1, 256>}, {pipeline_mode = #tpu.pipeline_mode<synchronous>, transform_indices = @transform_3, window_bounds = array<i64: 256, 64>}, {pipeline_mode = #tpu.pipeline_mode<synchronous>, transform_indices = @transform_4, window_bounds = array<i64: 1, 64>}, {pipeline_mode = #tpu.pipeline_mode<synchronous>, transform_indices = @transform_5, window_bounds = array<i64: 64, 5>}, {pipeline_mode = #tpu.pipeline_mode<synchronous>, transform_indices = @transform_6, window_bounds = array<i64: 1, 5>}, {transform_indices = @transform_7, window_bounds = array<i64: 2, 5>}]} {
    %c0 = arith.constant 0 : index
    %c0_0 = arith.constant 0 : index
    %0 = vector.load %arg1[%c0, %c0_0] : memref<2x128xbf16, #tpu.memory_space<vmem>>, vector<2x128xbf16>
    %c0_1 = arith.constant 0 : index
    %c0_2 = arith.constant 0 : index
    %1 = vector.load %arg2[%c0_1, %c0_2] : memref<128x256xbf16, #tpu.memory_space<vmem>>, vector<128x256xbf16>
    %cst = arith.constant dense<0.000000e+00> : vector<2x256xf32>
    %2 = tpu.matmul %0, %1, %cst {dimension_numbers = #tpu.dot_dimension_numbers<[1], [0], [0], [1], [0, 0, 1, 1], [], []>} : vector<2x128xbf16>, vector<128x256xbf16>, vector<2x256xf32> -> vector<2x256xf32>
    %c0_3 = arith.constant 0 : index
    %c0_4 = arith.constant 0 : index
    %3 = vector.load %arg3[%c0_3, %c0_4] : memref<1x256xf32, #tpu.memory_space<vmem>>, vector<1x256xf32>
    %4 = vector.broadcast %3 : vector<1x256xf32> to vector<2x256xf32>
    %5 = arith.addf %2, %4 : vector<2x256xf32>
    %cst_5 = arith.constant 0.000000e+00 : f32
    %6 = vector.broadcast %cst_5 : f32 to vector<2x256xf32>
    %7 = arith.maximumf %5, %6 : vector<2x256xf32>
    %c0_6 = arith.constant 0 : index
    %c0_7 = arith.constant 0 : index
    %8 = vector.load %arg4[%c0_6, %c0_7] : memref<256x64xbf16, #tpu.memory_space<vmem>>, vector<256x64xbf16>
    %9 = arith.truncf %7 : vector<2x256xf32> to vector<2x256xbf16>
    %cst_8 = arith.constant dense<0.000000e+00> : vector<2x64xf32>
    %10 = tpu.matmul %9, %8, %cst_8 {dimension_numbers = #tpu.dot_dimension_numbers<[1], [0], [0], [1], [0, 0, 1, 1], [], []>} : vector<2x256xbf16>, vector<256x64xbf16>, vector<2x64xf32> -> vector<2x64xf32>
    %c0_9 = arith.constant 0 : index
    %c0_10 = arith.constant 0 : index
    %11 = vector.load %arg5[%c0_9, %c0_10] : memref<1x64xf32, #tpu.memory_space<vmem>>, vector<1x64xf32>
    %12 = vector.broadcast %11 : vector<1x64xf32> to vector<2x64xf32>
    %13 = arith.addf %10, %12 : vector<2x64xf32>
    %cst_11 = arith.constant 0.000000e+00 : f32
    %14 = vector.broadcast %cst_11 : f32 to vector<2x64xf32>
    %15 = arith.maximumf %13, %14 : vector<2x64xf32>
    %c0_12 = arith.constant 0 : index
    %c0_13 = arith.constant 0 : index
    %16 = vector.load %arg6[%c0_12, %c0_13] : memref<64x5xbf16, #tpu.memory_space<vmem>>, vector<64x5xbf16>
    %17 = arith.truncf %15 : vector<2x64xf32> to vector<2x64xbf16>
    %cst_14 = arith.constant dense<0.000000e+00> : vector<2x5xf32>
    %18 = tpu.matmul %17, %16, %cst_14 {dimension_numbers = #tpu.dot_dimension_numbers<[1], [0], [0], [1], [0, 0, 1, 1], [], []>} : vector<2x64xbf16>, vector<64x5xbf16>, vector<2x5xf32> -> vector<2x5xf32>
    %c0_15 = arith.constant 0 : index
    %c0_16 = arith.constant 0 : index
    %19 = vector.load %arg7[%c0_15, %c0_16] : memref<1x5xf32, #tpu.memory_space<vmem>>, vector<1x5xf32>
    %20 = vector.broadcast %19 : vector<1x5xf32> to vector<2x5xf32>
    %21 = arith.addf %18, %20 : vector<2x5xf32>
    %c0_17 = arith.constant 0 : index
    %c0_18 = arith.constant 0 : index
    %22 = vector.load %arg8[%c0_17, %c0_18] : memref<2x5xf32, #tpu.memory_space<vmem>>, vector<2x5xf32>
    tpu.vector_store %arg8[%c0_17, %c0_18], %21 {strides = array<i32>} : memref<2x5xf32, #tpu.memory_space<vmem>>, vector<2x5xf32>,
    return
  }
  func.func @transform_0(%arg0: i32) -> (i32, i32) {
    %c0_i32 = arith.constant 0 : i32
    %c0_i32_0 = arith.constant 0 : i32
    return %arg0, %c0_i32 : i32, i32
  }
  func.func @transform_1(%arg0: i32) -> (i32, i32) {
    %c0_i32 = arith.constant 0 : i32
    %c0_i32_0 = arith.constant 0 : i32
    %c0_i32_1 = arith.constant 0 : i32
    return %c0_i32, %c0_i32_0 : i32, i32
  }
  func.func @transform_2(%arg0: i32) -> (i32, i32) {
    %c0_i32 = arith.constant 0 : i32
    %c0_i32_0 = arith.constant 0 : i32
    %c0_i32_1 = arith.constant 0 : i32
    return %c0_i32, %c0_i32_0 : i32, i32
  }
  func.func @transform_3(%arg0: i32) -> (i32, i32) {
    %c0_i32 = arith.constant 0 : i32
    %c0_i32_0 = arith.constant 0 : i32
    %c0_i32_1 = arith.constant 0 : i32
    return %c0_i32, %c0_i32_0 : i32, i32
  }
  func.func @transform_4(%arg0: i32) -> (i32, i32) {
    %c0_i32 = arith.constant 0 : i32
    %c0_i32_0 = arith.constant 0 : i32
    %c0_i32_1 = arith.constant 0 : i32
    return %c0_i32, %c0_i32_0 : i32, i32
  }
  func.func @transform_5(%arg0: i32) -> (i32, i32) {
    %c0_i32 = arith.constant 0 : i32
    %c0_i32_0 = arith.constant 0 : i32
    %c0_i32_1 = arith.constant 0 : i32
    return %c0_i32, %c0_i32_0 : i32, i32
  }
  func.func @transform_6(%arg0: i32) -> (i32, i32) {
    %c0_i32 = arith.constant 0 : i32
    %c0_i32_0 = arith.constant 0 : i32
    %c0_i32_1 = arith.constant 0 : i32
    return %c0_i32, %c0_i32_0 : i32, i32
  }
  func.func @transform_7(%arg0: i32) -> (i32, i32) {
    %c0_i32 = arith.constant 0 : i32
    %c0_i32_0 = arith.constant 0 : i32
    return %arg0, %c0_i32 : i32, i32
  }
}

</mosaic_0001>

<bundles_post_ra>
// kernel: neg.5
= control target key start
LH: loop header
LB: loop body
LE: loop exit
PB: predicated region body
PF: predicated region fallthrough
CT: control target
= control target key end

     0   :  { %s264_s0 = inlined_call_operand.vmem [shape: f32[2,64,64], index: 0, kind: input, shape index: {}]   ;;  %s265_s1 = inlined_call_operand.vmem [shape: f32[2,64,64], index: 1, kind: output, shape index: {}]  }
   0x1   :  { %v2_v0 = vld [vmem:[%s264_s0] sm:$0xff]  ;;  %v130_v2 = vld [vmem:[%s264_s0 + $0x8] sm:$0xff]  ;;  %v134_v7 = vld [vmem:[%s264_s0 + $0x10] sm:$0xff] }
   0x2   :  { %v128_v1 = vld [vmem:[%s264_s0 + $0x40] sm:$0xff]  ;;  %v5_v3 = vxor.u32 2147483648, %v2_v0  ;;  %v20_v5 = vxor.u32 2147483648, %v130_v2  ;;  %v132_v6 = vld [vmem:[%s264_s0 + $0x48] sm:$0xff]  ;;  %v136_v8 = vld [vmem:[%s264_s0 + $0x50] sm:$0xff]  ;;  %v36_v11 = vxor.u32 2147483648, %v134_v7 }
   0x3   :  { %v12_v4 = vxor.u32 2147483648, %v128_v1  ;;  %v28_v9 = vxor.u32 2147483648, %v132_v6  ;;  %v138_v10 = vld [vmem:[%s264_s0 + $0x18] sm:$0xff]  ;;  %v44_v13 = vxor.u32 2147483648, %v136_v8  ;;  %v142_v14 = vld [vmem:[%s264_s0 + $0x20] sm:$0xff]  ;;  %v146_v18 = vld [vmem:[%s264_s0 + $0x28] sm:$0xff] }
   0x4   :  { %7 = vst [vmem:[%s265_s1] sm:$0xff] %v5_v3  ;;  %v140_v12 = vld [vmem:[%s264_s0 + $0x58] sm:$0xff]  ;;  %v52_v15 = vxor.u32 2147483648, %v138_v10  ;;  %v144_v16 = vld [vmem:[%s264_s0 + $0x60] sm:$0xff]  ;;  %v68_v19 = vxor.u32 2147483648, %v142_v14  ;;  %v148_v20 = vld [vmem:[%s264_s0 + $0x68] sm:$0xff]  ;;  %v84_v23 = vxor.u32 2147483648, %v146_v18 }
   0x5   :  { %129 = vst [vmem:[%s265_s1 + $0x40] sm:$0xff] %v12_v4  ;;  %v60_v17 = vxor.u32 2147483648, %v140_v12  ;;  %v76_v21 = vxor.u32 2147483648, %v144_v16  ;;  %v150_v22 = vld [vmem:[%s264_s0 + $0x30] sm:$0xff]  ;;  %v92_v25 = vxor.u32 2147483648, %v148_v20  ;;  %v154_v26 = vld [vmem:[%s264_s0 + $0x38] sm:$0xff] }
   0x6   :  { %131 = vst [vmem:[%s265_s1 + $0x8] sm:$0xff] %v20_v5  ;;  %v152_v24 = vld [vmem:[%s264_s0 + $0x70] sm:$0xff]  ;;  %v100_v27 = vxor.u32 2147483648, %v150_v22  ;;  %v156_v28 = vld [vmem:[%s264_s0 + $0x78] sm:$0xff]  ;;  %v116_v30 = vxor.u32 2147483648, %v154_v26 }
   0x7   :  { %133 = vst [vmem:[%s265_s1 + $0x48] sm:$0xff] %v28_v9  ;;  %v108_v29 = vxor.u32 2147483648, %v152_v24  ;;  %v124_v31 = vxor.u32 2147483648, %v156_v28 }
   0x8   :  { %135 = vst [vmem:[%s265_s1 + $0x10] sm:$0xff] %v36_v11 }
   0x9   :  { %137 = vst [vmem:[%s265_s1 + $0x50] sm:$0xff] %v44_v13 }
   0xa   :  { %139 = vst [vmem:[%s265_s1 + $0x18] sm:$0xff] %v52_v15 }
   0xb   :  { %141 = vst [vmem:[%s265_s1 + $0x58] sm:$0xff] %v60_v17 }
   0xc   :  { %143 = vst [vmem:[%s265_s1 + $0x20] sm:$0xff] %v68_v19 }
   0xd   :  { %145 = vst [vmem:[%s265_s1 + $0x60] sm:$0xff] %v76_v21 }
   0xe   :  { %147 = vst [vmem:[%s265_s1 + $0x28] sm:$0xff] %v84_v23 }
   0xf   :  { %149 = vst [vmem:[%s265_s1 + $0x68] sm:$0xff] %v92_v25 }
  0x10   :  { %151 = vst [vmem:[%s265_s1 + $0x30] sm:$0xff] %v100_v27 }
  0x11   :  { %153 = vst [vmem:[%s265_s1 + $0x70] sm:$0xff] %v108_v29 }
  0x12   :  { %155 = vst [vmem:[%s265_s1 + $0x38] sm:$0xff] %v116_v30 }
  0x13   :  { %157 = vst [vmem:[%s265_s1 + $0x78] sm:$0xff] %v124_v31 }

// kernel: _lambda_.18
= control target key start
LH: loop header
LB: loop body
LE: loop exit
PB: predicated region body
PF: predicated region fallthrough
CT: control target
= control target key end

     0   :  { %vm107_vm0 = vcmask 1040384   ;;  %vm108_vm1 = vcmask 1041408   ;;  %v373_v1 = vmov 65535   ;;  %vm82_vm2 = vcmask 23552   ;;  %s523_s1 = inlined_call_operand.vmem [shape: bf16[3,32], index: 1, kind: input, shape index: {}]   ;;  %s524_s0 = inlined_call_operand.vmem [shape: bf16[128,3], index: 0, kind: input, shape index: {}]   ;;  %s525_s2 = inlined_call_operand.vmem [shape: f32[1,32], index: 2, kind: input, shape index: {}]   ;;  %s526_s3 = inlined_call_operand.vmem [shape: bf16[32,32], index: 3, kind: input, shape index: {}]   ;;  %s527_s4 = inlined_call_operand.vmem [shape: f32[1,32], index: 4, kind: input, shape index: {}]   ;;  %s528_s5 = inlined_call_operand.vmem [shape: f32[128,32], index: 5, kind: output, shape index: {}]  }
   0x1   :  { %v37_v0 = vld [vmem:[%s523_s1] sm:$0x3]  ;;  %v109_v2 = vsel %vm107_vm0, 4294967295, %v373_v1  ;;  %v358_v6 = vld [vmem:[%s524_s0 + $0x8] sm:$0xff]  ;;  %v359_v7 = vld [vmem:[%s524_s0 + $0x10] sm:$0xff]  ;;  %vm207_vm3 = vcmask 261120  }
   0x2   :  { %v110_v3 = vsel %vm108_vm1, %v109_v2, 0  ;;  %v357_v5 = vld [vmem:[%s524_s0] sm:$0xff]  ;;  %v362_v8 = vld [vmem:[%s524_s0 + $0x28] sm:$0xff]  ;;  %v360_v9 = vld [vmem:[%s524_s0 + $0x18] sm:$0xff] }
   0x3   :  { %v112_v4 = vand.u32 %v110_v3, %v37_v0  ;;  %v363_v10 = vld [vmem:[%s524_s0 + $0x30] sm:$0xff]  ;;  %v361_v11 = vld [vmem:[%s524_s0 + $0x20] sm:$0xff]  ;;  %v364_v12 = vld [vmem:[%s524_s0 + $0x38] sm:$0xff] }
   0x4   :  { %v366_v13 = vld [vmem:[%s526_s3 + $0x8] sm:$0xff]  ;;  %v365_v14 = vld [vmem:[%s526_s3] sm:$0xff] }
   0x5   :  { %121 = vmatpush.bf16.msra.mxu0 %v112_v4  ;;  %367 = vmatpush.bf16.msra.mxu3 %v112_v4  ;;  %v371_v16 = vld [vmem:[%s525_s2] ss:$0 sm:$0xff] }
   0x6   :  { %238 = vmatpush.bf16.msra.mxu1 %v366_v13  ;;  %368 = vmatpush.bf16.msra.mxu2 %v366_v13 }
   0x8   :  { %333 = vmatmul.msk.bf16.vlgmr.msra.gmra.mxu0 %vm82_vm2, %v357_v5  ;;  %338 = vmatmul.msk.bf16.vlgmr.msra.gmra.mxu3 %vm82_vm2, %v362_v8  ;;  %v372_v8 = vld [vmem:[%s527_s4] ss:$0 sm:$0xff] }
   0xa   :  { %239 = vmatpush.bf16.msra.mxu1 %v365_v14  ;;  %369 = vmatpush.bf16.msra.mxu2 %v365_v14 }
  0x18   :  { %334 = vmatmul.msk.bf16.gmra.mxu0 %vm82_vm2, %v358_v6  ;;  %339 = vmatmul.msk.bf16.gmra.mxu3 %vm82_vm2, %v363_v10 }
  0x28   :  { %335 = vmatmul.msk.bf16.gmra.mxu0 %vm82_vm2, %v359_v7  ;;  %340 = vmatmul.msk.bf16.gmra.mxu3 %vm82_vm2, %v364_v12 }
  0x38   :  { %336 = vmatmul.msk.bf16.gmra.mxu0 %vm82_vm2, %v360_v9 }
  0x48   :  { %337 = vmatmul.msk.bf16.gmra.mxu0 %vm82_vm2, %v361_v11 }
  0x85   :  { %v123_v15 = vpop.f32.mrf.mxu0 }
  0x86   :  { %v124_v17 = vadd.f32 %v371_v16, %v123_v15 }
  0x88   :  { %v163_v20 = vmax.f32 %v124_v17, 0.0 }
  0x8b   :  { %v148_v45 = vpop.f32.mrf.mxu3 }
  0x8c   :  { %v149_v54 = vadd.f32 %v371_v16, %v148_v45 }
  0x8d   :  { %v125_v18 = vpop.f32.mrf.mxu0 }
  0x8e   :  { %v126_v19 = vadd.f32 %v371_v16, %v125_v18  ;;  %v173_v56 = vmax.f32 %v149_v54, 0.0 }
  0x90   :  { %v164_v21 = vmax.f32 %v126_v19, 0.0 }
  0x92   :  { %v183_v22 = vpack.c.bf16 %v164_v21, %v163_v20 }
  0x93   :  { %v150_v49 = vpop.f32.mrf.mxu3 }
  0x94   :  { %349 = vmatmul.msk.bf16.vlgmr.msra.gmra.mxu1 %vm207_vm3, %v183_v22  ;;  %v151_v55 = vadd.f32 %v371_v16, %v150_v49 }
  0x95   :  { %v128_v23 = vpop.f32.mrf.mxu0 }
  0x96   :  { %v129_v24 = vadd.f32 %v371_v16, %v128_v23  ;;  %v174_v57 = vmax.f32 %v151_v55, 0.0 }
  0x98   :  { %v165_v27 = vmax.f32 %v129_v24, 0.0  ;;  %v188_v58 = vpack.c.bf16 %v174_v57, %v173_v56 }
  0x9b   :  { %v153_v53 = vpop.f32.mrf.mxu3 }
  0x9c   :  { %v154_v60 = vadd.f32 %v371_v16, %v153_v53 }
  0x9d   :  { %v130_v25 = vpop.f32.mrf.mxu0 }
  0x9e   :  { %v131_v26 = vadd.f32 %v371_v16, %v130_v25  ;;  %v175_v63 = vmax.f32 %v154_v60, 0.0 }
  0xa0   :  { %v166_v28 = vmax.f32 %v131_v26, 0.0 }
  0xa2   :  { %v184_v29 = vpack.c.bf16 %v166_v28, %v165_v27 }
  0xa3   :  { %v155_v59 = vpop.f32.mrf.mxu3 }
  0xa4   :  { %350 = vmatmul.msk.bf16.gmra.mxu1 %vm207_vm3, %v184_v29  ;;  %v156_v61 = vadd.f32 %v371_v16, %v155_v59 }
  0xa5   :  { %v133_v30 = vpop.f32.mrf.mxu0 }
  0xa6   :  { %v134_v31 = vadd.f32 %v371_v16, %v133_v30  ;;  %v176_v0 = vmax.f32 %v156_v61, 0.0 }
  0xa8   :  { %v167_v34 = vmax.f32 %v134_v31, 0.0  ;;  %v189_v1 = vpack.c.bf16 %v176_v0, %v175_v63 }
  0xab   :  { %v158_v62 = vpop.f32.mrf.mxu3 }
  0xac   :  { %v159_v3 = vadd.f32 %v371_v16, %v158_v62 }
  0xad   :  { %v135_v32 = vpop.f32.mrf.mxu0 }
  0xae   :  { %v136_v33 = vadd.f32 %v371_v16, %v135_v32  ;;  %v177_v5 = vmax.f32 %v159_v3, 0.0 }
  0xb0   :  { %v168_v35 = vmax.f32 %v136_v33, 0.0 }
  0xb2   :  { %v185_v36 = vpack.c.bf16 %v168_v35, %v167_v34 }
  0xb3   :  { %v160_v2 = vpop.f32.mrf.mxu3 }
  0xb4   :  { %351 = vmatmul.msk.bf16.gmra.mxu1 %vm207_vm3, %v185_v36  ;;  %v161_v4 = vadd.f32 %v371_v16, %v160_v2 }
  0xb5   :  { %v138_v37 = vpop.f32.mrf.mxu0 }
  0xb6   :  { %v139_v38 = vadd.f32 %v371_v16, %v138_v37  ;;  %v178_v6 = vmax.f32 %v161_v4, 0.0 }
  0xb8   :  { %v169_v41 = vmax.f32 %v139_v38, 0.0  ;;  %v190_v7 = vpack.c.bf16 %v178_v6, %v177_v5 }
  0xbd   :  { %v140_v39 = vpop.f32.mrf.mxu0 }
  0xbe   :  { %v141_v40 = vadd.f32 %v371_v16, %v140_v39 }
  0xc0   :  { %v170_v42 = vmax.f32 %v141_v40, 0.0 }
  0xc2   :  { %v186_v43 = vpack.c.bf16 %v170_v42, %v169_v41 }
  0xc4   :  { %352 = vmatmul.msk.bf16.gmra.mxu1 %vm207_vm3, %v186_v43 }
  0xc5   :  { %v143_v44 = vpop.f32.mrf.mxu0 }
  0xc6   :  { %v144_v46 = vadd.f32 %v371_v16, %v143_v44 }
  0xc8   :  { %v171_v50 = vmax.f32 %v144_v46, 0.0 }
  0xcd   :  { %v145_v47 = vpop.f32.mrf.mxu0 }
  0xce   :  { %v146_v48 = vadd.f32 %v371_v16, %v145_v47 }
  0xd0   :  { %v172_v51 = vmax.f32 %v146_v48, 0.0 }
  0xd2   :  { %v187_v52 = vpack.c.bf16 %v172_v51, %v171_v50 }
  0xd4   :  { %353 = vmatmul.msk.bf16.vlgmr.msra.gmra.mxu2 %vm207_vm3, %v187_v52 }
  0xe4   :  { %354 = vmatmul.msk.bf16.gmra.mxu2 %vm207_vm3, %v188_v58 }
  0xf4   :  { %355 = vmatmul.msk.bf16.gmra.mxu2 %vm207_vm3, %v189_v1 }
 0x104   :  { %356 = vmatmul.msk.bf16.gmra.mxu2 %vm207_vm3, %v190_v7 }
 0x111   :  { %v241_v9 = vpop.f32.mrf.mxu1 }
 0x112   :  { %v242_v10 = vadd.f32 %v372_v8, %v241_v9 }
 0x114   :  { %281 = vst.msk [vmem:[%s528_s5] sm:$0xff] %vm207_vm3, %v242_v10 }
 0x119   :  { %v243_v11 = vpop.f32.mrf.mxu1 }
 0x11a   :  { %v244_v12 = vadd.f32 %v372_v8, %v243_v11 }
 0x11c   :  { %282 = vst.msk [vmem:[%s528_s5 + $0x8] sm:$0xff] %vm207_vm3, %v244_v12 }
 0x121   :  { %v246_v13 = vpop.f32.mrf.mxu1 }
 0x122   :  { %v247_v14 = vadd.f32 %v372_v8, %v246_v13 }
 0x124   :  { %283 = vst.msk [vmem:[%s528_s5 + $0x10] sm:$0xff] %vm207_vm3, %v247_v14 }
 0x129   :  { %v248_v15 = vpop.f32.mrf.mxu1 }
 0x12a   :  { %v249_v16 = vadd.f32 %v372_v8, %v248_v15 }
 0x12c   :  { %284 = vst.msk [vmem:[%s528_s5 + $0x18] sm:$0xff] %vm207_vm3, %v249_v16 }
 0x131   :  { %v251_v17 = vpop.f32.mrf.mxu1 }
 0x132   :  { %v252_v18 = vadd.f32 %v372_v8, %v251_v17 }
 0x134   :  { %285 = vst.msk [vmem:[%s528_s5 + $0x20] sm:$0xff] %vm207_vm3, %v252_v18 }
 0x139   :  { %v253_v19 = vpop.f32.mrf.mxu1 }
 0x13a   :  { %v254_v20 = vadd.f32 %v372_v8, %v253_v19 }
 0x13c   :  { %286 = vst.msk [vmem:[%s528_s5 + $0x28] sm:$0xff] %vm207_vm3, %v254_v20 }
 0x141   :  { %v256_v21 = vpop.f32.mrf.mxu1 }
 0x142   :  { %v257_v22 = vadd.f32 %v372_v8, %v256_v21 }
 0x144   :  { %287 = vst.msk [vmem:[%s528_s5 + $0x30] sm:$0xff] %vm207_vm3, %v257_v22 }
 0x149   :  { %v258_v23 = vpop.f32.mrf.mxu1 }
 0x14a   :  { %v259_v24 = vadd.f32 %v372_v8, %v258_v23 }
 0x14c   :  { %288 = vst.msk [vmem:[%s528_s5 + $0x38] sm:$0xff] %vm207_vm3, %v259_v24 }
 0x157   :  { %v261_v25 = vpop.f32.mrf.mxu2 }
 0x158   :  { %v262_v26 = vadd.f32 %v372_v8, %v261_v25 }
 0x15a   :  { %289 = vst.msk [vmem:[%s528_s5 + $0x40] sm:$0xff] %vm207_vm3, %v262_v26 }
 0x15f   :  { %v263_v27 = vpop.f32.mrf.mxu2 }
 0x160   :  { %v264_v28 = vadd.f32 %v372_v8, %v263_v27 }
 0x162   :  { %290 = vst.msk [vmem:[%s528_s5 + $0x48] sm:$0xff] %vm207_vm3, %v264_v28 }
 0x167   :  { %v266_v29 = vpop.f32.mrf.mxu2 }
 0x168   :  { %v267_v30 = vadd.f32 %v372_v8, %v266_v29 }
 0x16a   :  { %291 = vst.msk [vmem:[%s528_s5 + $0x50] sm:$0xff] %vm207_vm3, %v267_v30 }
 0x16f   :  { %v268_v31 = vpop.f32.mrf.mxu2 }
 0x170   :  { %v269_v32 = vadd.f32 %v372_v8, %v268_v31 }
 0x172   :  { %292 = vst.msk [vmem:[%s528_s5 + $0x58] sm:$0xff] %vm207_vm3, %v269_v32 }
 0x177   :  { %v271_v33 = vpop.f32.mrf.mxu2 }
 0x178   :  { %v272_v34 = vadd.f32 %v372_v8, %v271_v33 }
 0x17a   :  { %293 = vst.msk [vmem:[%s528_s5 + $0x60] sm:$0xff] %vm207_vm3, %v272_v34 }
 0x17f   :  { %v273_v35 = vpop.f32.mrf.mxu2 }
 0x180   :  { %v274_v36 = vadd.f32 %v372_v8, %v273_v35 }
 0x182   :  { %294 = vst.msk [vmem:[%s528_s5 + $0x68] sm:$0xff] %vm207_vm3, %v274_v36 }
 0x187   :  { %v276_v37 = vpop.f32.mrf.mxu2 }
 0x188   :  { %v277_v38 = vadd.f32 %v372_v8, %v276_v37 }
 0x18a   :  { %295 = vst.msk [vmem:[%s528_s5 + $0x70] sm:$0xff] %vm207_vm3, %v277_v38 }
 0x18f   :  { %v278_v39 = vpop.f32.mrf.mxu2 }
 0x190   :  { %v279_v40 = vadd.f32 %v372_v8, %v278_v39 }
 0x192   :  { %296 = vst.msk [vmem:[%s528_s5 + $0x78] sm:$0xff] %vm207_vm3, %v279_v40 }

// kernel: _lambda_.20
= control target key start
LH: loop header
LB: loop body
LE: loop exit
PB: predicated region body
PF: predicated region fallthrough
CT: control target
= control target key end

     0   :  { %vm347_vm0 = vcmask 1040384   ;;  %vm348_vm1 = vcmask 1041408   ;;  %v1213_v1 = vmov 65535   ;;  %vm250_vm2 = vcmask 23552   ;;  %s1807_s1 = inlined_call_operand.vmem [shape: bf16[3,32], index: 1, kind: input, shape index: {}]   ;;  %s1808_s0 = inlined_call_operand.vmem [shape: bf16[512,3], index: 0, kind: input, shape index: {}]   ;;  %s1809_s2 = inlined_call_operand.vmem [shape: f32[1,32], index: 2, kind: input, shape index: {}]   ;;  %s1810_s3 = inlined_call_operand.vmem [shape: bf16[32,32], index: 3, kind: input, shape index: {}]   ;;  %s1811_s4 = inlined_call_operand.vmem [shape: f32[1,32], index: 4, kind: input, shape index: {}]   ;;  %s1812_s5 = inlined_call_operand.vmem [shape: f32[512,32], index: 5, kind: output, shape index: {}]  }
   0x1   :  { %v85_v0 = vld [vmem:[%s1807_s1] sm:$0x3]  ;;  %v349_v2 = vsel %vm347_vm0, 4294967295, %v1213_v1  ;;  %v1174_v6 = vld [vmem:[%s1808_s0 + $0x8] sm:$0xff]  ;;  %v1175_v7 = vld [vmem:[%s1808_s0 + $0x10] sm:$0xff]  ;;  %vm639_vm3 = vcmask 261120  }
   0x2   :  { %v350_v3 = vsel %vm348_vm1, %v349_v2, 0  ;;  %v1173_v5 = vld [vmem:[%s1808_s0] sm:$0xff]  ;;  %v1176_v8 = vld [vmem:[%s1808_s0 + $0x18] sm:$0xff]  ;;  %v1178_v10 = vld [vmem:[%s1808_s0 + $0x28] sm:$0xff] }
   0x3   :  { %v352_v4 = vand.u32 %v350_v3, %v85_v0  ;;  %v1177_v9 = vld [vmem:[%s1808_s0 + $0x20] sm:$0xff]  ;;  %v1179_v11 = vld [vmem:[%s1808_s0 + $0x30] sm:$0xff]  ;;  %v1206_v12 = vld [vmem:[%s1810_s3 + $0x8] sm:$0xff] }
   0x4   :  { %742 = vmatpush.bf16.msra.mxu1 %v1206_v12  ;;  %1208 = vmatpush.bf16.msra.mxu2 %v1206_v12  ;;  %v1205_v13 = vld [vmem:[%s1810_s3] sm:$0xff]  ;;  %v1180_v14 = vld [vmem:[%s1808_s0 + $0x38] sm:$0xff]  ;;  %v1182_v24 = vld [vmem:[%s1808_s0 + $0x48] sm:$0xff] }
   0x5   :  { %361 = vmatpush.bf16.msra.mxu0 %v352_v4  ;;  %1207 = vmatpush.bf16.msra.mxu3 %v352_v4  ;;  %v1181_v15 = vld [vmem:[%s1808_s0 + $0x40] sm:$0xff]  ;;  %v1183_v32 = vld [vmem:[%s1808_s0 + $0x50] sm:$0xff]  ;;  %v1184_v40 = vld [vmem:[%s1808_s0 + $0x58] sm:$0xff] }
   0x6   :  { %v1291_v17 = vld [vmem:[%s1809_s2] ss:$0 sm:$0xff]  ;;  %v1186_v56 = vld [vmem:[%s1808_s0 + $0x68] sm:$0xff]  ;;  %v1187_v0 = vld [vmem:[%s1808_s0 + $0x70] sm:$0xff] }
   0x7   :  { %v1185_v48 = vld [vmem:[%s1808_s0 + $0x60] sm:$0xff]  ;;  %v1190_v2 = vld [vmem:[%s1808_s0 + $0x88] sm:$0xff] }
   0x8   :  { %1101 = vmatmul.msk.bf16.vlgmr.msra.gmra.mxu0 %vm250_vm2, %v1173_v5  ;;  %743 = vmatpush.bf16.msra.mxu1 %v1205_v13 }
   0x9   :  { %1209 = vmatpush.bf16.msra.mxu2 %v1205_v13  ;;  %1118 = vmatmul.msk.bf16.vlgmr.msra.gmra.mxu3 %vm250_vm2, %v1190_v2 }
  0x18   :  { %1102 = vmatmul.msk.bf16.gmra.mxu0 %vm250_vm2, %v1174_v6 }
  0x28   :  { %1103 = vmatmul.msk.bf16.gmra.mxu0 %vm250_vm2, %v1175_v7 }
  0x38   :  { %1104 = vmatmul.msk.bf16.gmra.mxu0 %vm250_vm2, %v1176_v8 }
  0x48   :  { %1105 = vmatmul.msk.bf16.gmra.mxu0 %vm250_vm2, %v1177_v9  ;;  %v1188_v9 = vld [vmem:[%s1808_s0 + $0x78] sm:$0xff] }
  0x58   :  { %1106 = vmatmul.msk.bf16.gmra.mxu0 %vm250_vm2, %v1178_v10 }
  0x68   :  { %1107 = vmatmul.msk.bf16.gmra.mxu0 %vm250_vm2, %v1179_v11  ;;  %v1191_v11 = vld [vmem:[%s1808_s0 + $0x90] sm:$0xff] }
  0x69   :  { %1119 = vmatmul.msk.bf16.gmra.mxu3 %vm250_vm2, %v1191_v11 }
  0x78   :  { %1108 = vmatmul.msk.bf16.gmra.mxu0 %vm250_vm2, %v1180_v14 }
  0x85   :  { %v363_v16 = vpop.f32.mrf.mxu0 }
  0x86   :  { %v364_v18 = vadd.f32 %v1291_v17, %v363_v16 }
  0x88   :  { %1109 = vmatmul.msk.bf16.gmra.mxu0 %vm250_vm2, %v1181_v15  ;;  %v523_v21 = vmax.f32 %v364_v18, 0.0 }
  0x8d   :  { %v365_v19 = vpop.f32.mrf.mxu0 }
  0x8e   :  { %v366_v20 = vadd.f32 %v1291_v17, %v365_v19  ;;  %v1189_v19 = vld [vmem:[%s1808_s0 + $0x80] sm:$0xff] }
  0x90   :  { %v524_v22 = vmax.f32 %v366_v20, 0.0 }
  0x92   :  { %v591_v23 = vpack.c.bf16 %v524_v22, %v523_v21  ;;  %v1192_v21 = vld [vmem:[%s1808_s0 + $0x98] sm:$0xff] }
  0x93   :  { %1120 = vmatmul.msk.bf16.gmra.mxu3 %vm250_vm2, %v1192_v21 }
  0x94   :  { %1141 = vmatmul.msk.bf16.vlgmr.msra.gmra.mxu1 %vm639_vm3, %v591_v23 }
  0x95   :  { %v368_v25 = vpop.f32.mrf.mxu0 }
  0x96   :  { %v369_v26 = vadd.f32 %v1291_v17, %v368_v25  ;;  %v1367_v25 = vld [vmem:[%s1811_s4] ss:$0 sm:$0xff] }
  0x98   :  { %1110 = vmatmul.msk.bf16.gmra.mxu0 %vm250_vm2, %v1182_v24  ;;  %v525_v29 = vmax.f32 %v369_v26, 0.0 }
  0x9d   :  { %v370_v27 = vpop.f32.mrf.mxu0 }
  0x9e   :  { %v371_v28 = vadd.f32 %v1291_v17, %v370_v27 }
  0xa0   :  { %v526_v30 = vmax.f32 %v371_v28, 0.0 }
  0xa2   :  { %v592_v31 = vpack.c.bf16 %v526_v30, %v525_v29 }
  0xa4   :  { %1142 = vmatmul.msk.bf16.gmra.mxu1 %vm639_vm3, %v592_v31 }
  0xa5   :  { %v373_v33 = vpop.f32.mrf.mxu0 }
  0xa6   :  { %v374_v34 = vadd.f32 %v1291_v17, %v373_v33 }
  0xa8   :  { %1111 = vmatmul.msk.bf16.gmra.mxu0 %vm250_vm2, %v1183_v32  ;;  %v527_v37 = vmax.f32 %v374_v34, 0.0  ;;  %v1193_v32 = vld [vmem:[%s1808_s0 + $0xa0] sm:$0xff] }
  0xa9   :  { %1121 = vmatmul.msk.bf16.gmra.mxu3 %vm250_vm2, %v1193_v32 }
  0xad   :  { %v375_v35 = vpop.f32.mrf.mxu0 }
  0xae   :  { %v376_v36 = vadd.f32 %v1291_v17, %v375_v35 }
  0xb0   :  { %v528_v38 = vmax.f32 %v376_v36, 0.0 }
  0xb2   :  { %v593_v39 = vpack.c.bf16 %v528_v38, %v527_v37 }
  0xb4   :  { %1143 = vmatmul.msk.bf16.gmra.mxu1 %vm639_vm3, %v593_v39 }
  0xb5   :  { %v378_v41 = vpop.f32.mrf.mxu0 }
  0xb6   :  { %v379_v42 = vadd.f32 %v1291_v17, %v378_v41 }
  0xb8   :  { %1112 = vmatmul.msk.bf16.gmra.mxu0 %vm250_vm2, %v1184_v40  ;;  %v529_v45 = vmax.f32 %v379_v42, 0.0 }
  0xbd   :  { %v380_v43 = vpop.f32.mrf.mxu0 }
  0xbe   :  { %v381_v44 = vadd.f32 %v1291_v17, %v380_v43 }
  0xc0   :  { %v530_v46 = vmax.f32 %v381_v44, 0.0  ;;  %v1194_v44 = vld [vmem:[%s1808_s0 + $0xa8] sm:$0xff] }
  0xc1   :  { %1122 = vmatmul.msk.bf16.gmra.mxu3 %vm250_vm2, %v1194_v44  ;;  %v1199_v44 = vld [vmem:[%s1808_s0 + $0xd0] sm:$0xff] }
  0xc2   :  { %v594_v47 = vpack.c.bf16 %v530_v46, %v529_v45 }
  0xc4   :  { %1144 = vmatmul.msk.bf16.gmra.mxu1 %vm639_vm3, %v594_v47 }
  0xc5   :  { %v383_v49 = vpop.f32.mrf.mxu0 }
  0xc6   :  { %v384_v50 = vadd.f32 %v1291_v17, %v383_v49 }
  0xc8   :  { %1113 = vmatmul.msk.bf16.gmra.mxu0 %vm250_vm2, %v1185_v48  ;;  %v531_v53 = vmax.f32 %v384_v50, 0.0 }
  0xcd   :  { %v385_v51 = vpop.f32.mrf.mxu0 }
  0xce   :  { %v386_v52 = vadd.f32 %v1291_v17, %v385_v51 }
  0xd0   :  { %v532_v54 = vmax.f32 %v386_v52, 0.0 }
  0xd2   :  { %v595_v55 = vpack.c.bf16 %v532_v54, %v531_v53 }
  0xd4   :  { %1145 = vmatmul.msk.bf16.gmra.mxu1 %vm639_vm3, %v595_v55 }
  0xd5   :  { %v388_v57 = vpop.f32.mrf.mxu0 }
  0xd6   :  { %v389_v58 = vadd.f32 %v1291_v17, %v388_v57 }
  0xd8   :  { %1114 = vmatmul.msk.bf16.gmra.mxu0 %vm250_vm2, %v1186_v56  ;;  %v533_v61 = vmax.f32 %v389_v58, 0.0  ;;  %v1195_v56 = vld [vmem:[%s1808_s0 + $0xb0] sm:$0xff] }
  0xd9   :  { %1123 = vmatmul.msk.bf16.gmra.mxu3 %vm250_vm2, %v1195_v56 }
  0xdd   :  { %v390_v59 = vpop.f32.mrf.mxu0 }
  0xde   :  { %v391_v60 = vadd.f32 %v1291_v17, %v390_v59 }
  0xe0   :  { %v534_v62 = vmax.f32 %v391_v60, 0.0 }
  0xe2   :  { %v596_v63 = vpack.c.bf16 %v534_v62, %v533_v61 }
  0xe4   :  { %1146 = vmatmul.msk.bf16.gmra.mxu1 %vm639_vm3, %v596_v63 }
  0xe5   :  { %v393_v1 = vpop.f32.mrf.mxu0 }
  0xe6   :  { %v394_v3 = vadd.f32 %v1291_v17, %v393_v1 }
  0xe8   :  { %1115 = vmatmul.msk.bf16.gmra.mxu0 %vm250_vm2, %v1187_v0  ;;  %v535_v6 = vmax.f32 %v394_v3, 0.0 }
  0xed   :  { %v395_v4 = vpop.f32.mrf.mxu0 }
  0xee   :  { %v396_v5 = vadd.f32 %v1291_v17, %v395_v4  ;;  %v1196_v4 = vld [vmem:[%s1808_s0 + $0xb8] sm:$0xff] }
  0xef   :  { %1124 = vmatmul.msk.bf16.gmra.mxu3 %vm250_vm2, %v1196_v4 }
  0xf0   :  { %v536_v7 = vmax.f32 %v396_v5, 0.0 }
  0xf2   :  { %v597_v8 = vpack.c.bf16 %v536_v7, %v535_v6 }
  0xf4   :  { %1147 = vmatmul.msk.bf16.gmra.mxu1 %vm639_vm3, %v597_v8 }
  0xf5   :  { %v398_v10 = vpop.f32.mrf.mxu0 }
  0xf6   :  { %v399_v12 = vadd.f32 %v1291_v17, %v398_v10 }
  0xf8   :  { %1116 = vmatmul.msk.bf16.gmra.mxu0 %vm250_vm2, %v1188_v9  ;;  %v537_v15 = vmax.f32 %v399_v12, 0.0 }
  0xfd   :  { %v400_v13 = vpop.f32.mrf.mxu0 }
  0xfe   :  { %v401_v14 = vadd.f32 %v1291_v17, %v400_v13 }
 0x100   :  { %v538_v16 = vmax.f32 %v401_v14, 0.0 }
 0x102   :  { %v598_v18 = vpack.c.bf16 %v538_v16, %v537_v15  ;;  %v1197_v16 = vld [vmem:[%s1808_s0 + $0xc0] sm:$0xff] }
 0x103   :  { %1125 = vmatmul.msk.bf16.gmra.mxu3 %vm250_vm2, %v1197_v16 }
 0x104   :  { %1148 = vmatmul.msk.bf16.gmra.mxu1 %vm639_vm3, %v598_v18 }
 0x105   :  { %v403_v20 = vpop.f32.mrf.mxu0 }
 0x106   :  { %v404_v22 = vadd.f32 %v1291_v17, %v403_v20 }
 0x108   :  { %1117 = vmatmul.msk.bf16.gmra.mxu0 %vm250_vm2, %v1189_v19  ;;  %v539_v26 = vmax.f32 %v404_v22, 0.0 }
 0x10d   :  { %v405_v23 = vpop.f32.mrf.mxu0 }
 0x10e   :  { %v406_v24 = vadd.f32 %v1291_v17, %v405_v23 }
 0x110   :  { %v540_v27 = vmax.f32 %v406_v24, 0.0 }
 0x111   :  { %v745_v28 = vpop.f32.mrf.mxu1 }
 0x112   :  { %v599_v29 = vpack.c.bf16 %v540_v27, %v539_v26  ;;  %v746_v30 = vadd.f32 %v1367_v25, %v745_v28 }
 0x114   :  { %905 = vst.msk [vmem:[%s1812_s5] sm:$0xff] %vm639_vm3, %v746_v30  ;;  %1149 = vmatmul.msk.bf16.gmra.mxu1 %vm639_vm3, %v599_v29  ;;  %v1198_v30 = vld [vmem:[%s1808_s0 + $0xc8] sm:$0xff] }
 0x115   :  { %v408_v31 = vpop.f32.mrf.mxu0  ;;  %1126 = vmatmul.msk.bf16.gmra.mxu3 %vm250_vm2, %v1198_v30 }
 0x116   :  { %v409_v35 = vadd.f32 %v1291_v17, %v408_v31 }
 0x118   :  { %v541_v38 = vmax.f32 %v409_v35, 0.0  ;;  %v448_v35 = vpop.f32.mrf.mxu3 }
 0x119   :  { %v747_v33 = vpop.f32.mrf.mxu1 }
 0x11a   :  { %v748_v34 = vadd.f32 %v1367_v25, %v747_v33 }
 0x11c   :  { %906 = vst.msk [vmem:[%s1812_s5 + $0x8] sm:$0xff] %vm639_vm3, %v748_v34 }
 0x11d   :  { %v410_v36 = vpop.f32.mrf.mxu0 }
 0x11e   :  { %v411_v37 = vadd.f32 %v1291_v17, %v410_v36 }
 0x120   :  { %v542_v39 = vmax.f32 %v411_v37, 0.0 }
 0x121   :  { %v750_v40 = vpop.f32.mrf.mxu1 }
 0x122   :  { %v600_v41 = vpack.c.bf16 %v542_v39, %v541_v38  ;;  %v751_v42 = vadd.f32 %v1367_v25, %v750_v40 }
 0x124   :  { %907 = vst.msk [vmem:[%s1812_s5 + $0x10] sm:$0xff] %vm639_vm3, %v751_v42  ;;  %1150 = vmatmul.msk.bf16.gmra.mxu1 %vm639_vm3, %v600_v41 }
 0x125   :  { %v413_v43 = vpop.f32.mrf.mxu0  ;;  %1127 = vmatmul.msk.bf16.gmra.mxu3 %vm250_vm2, %v1199_v44 }
 0x126   :  { %v414_v47 = vadd.f32 %v1291_v17, %v413_v43  ;;  %v450_v43 = vpop.f32.mrf.mxu3 }
 0x128   :  { %v543_v50 = vmax.f32 %v414_v47, 0.0 }
 0x129   :  { %v752_v45 = vpop.f32.mrf.mxu1 }
 0x12a   :  { %v753_v46 = vadd.f32 %v1367_v25, %v752_v45 }
 0x12c   :  { %908 = vst.msk [vmem:[%s1812_s5 + $0x18] sm:$0xff] %vm639_vm3, %v753_v46 }
 0x12d   :  { %v415_v48 = vpop.f32.mrf.mxu0 }
 0x12e   :  { %v416_v49 = vadd.f32 %v1291_v17, %v415_v48 }
 0x130   :  { %v544_v51 = vmax.f32 %v416_v49, 0.0  ;;  %v453_v49 = vpop.f32.mrf.mxu3 }
 0x131   :  { %v755_v52 = vpop.f32.mrf.mxu1 }
 0x132   :  { %v601_v53 = vpack.c.bf16 %v544_v51, %v543_v50  ;;  %v756_v54 = vadd.f32 %v1367_v25, %v755_v52 }
 0x134   :  { %909 = vst.msk [vmem:[%s1812_s5 + $0x20] sm:$0xff] %vm639_vm3, %v756_v54  ;;  %1151 = vmatmul.msk.bf16.gmra.mxu1 %vm639_vm3, %v601_v53 }
 0x135   :  { %v418_v55 = vpop.f32.mrf.mxu0 }
 0x136   :  { %v419_v59 = vadd.f32 %v1291_v17, %v418_v55 }
 0x138   :  { %v545_v62 = vmax.f32 %v419_v59, 0.0 }
 0x139   :  { %v757_v57 = vpop.f32.mrf.mxu1 }
 0x13a   :  { %v758_v58 = vadd.f32 %v1367_v25, %v757_v57  ;;  %v455_v57 = vpop.f32.mrf.mxu3 }
 0x13c   :  { %910 = vst.msk [vmem:[%s1812_s5 + $0x28] sm:$0xff] %vm639_vm3, %v758_v58  ;;  %v1200_v58 = vld [vmem:[%s1808_s0 + $0xd8] sm:$0xff] }
 0x13d   :  { %v420_v60 = vpop.f32.mrf.mxu0  ;;  %1128 = vmatmul.msk.bf16.gmra.mxu3 %vm250_vm2, %v1200_v58 }
 0x13e   :  { %v421_v61 = vadd.f32 %v1291_v17, %v420_v60 }
 0x140   :  { %v546_v63 = vmax.f32 %v421_v61, 0.0 }
 0x141   :  { %v760_v0 = vpop.f32.mrf.mxu1 }
 0x142   :  { %v602_v1 = vpack.c.bf16 %v546_v63, %v545_v62  ;;  %v761_v2 = vadd.f32 %v1367_v25, %v760_v0  ;;  %v458_v63 = vpop.f32.mrf.mxu3 }
 0x144   :  { %911 = vst.msk [vmem:[%s1812_s5 + $0x30] sm:$0xff] %vm639_vm3, %v761_v2  ;;  %1152 = vmatmul.msk.bf16.gmra.mxu1 %vm639_vm3, %v602_v1 }
 0x145   :  { %v423_v3 = vpop.f32.mrf.mxu0 }
 0x146   :  { %v424_v7 = vadd.f32 %v1291_v17, %v423_v3 }
 0x148   :  { %v547_v10 = vmax.f32 %v424_v7, 0.0  ;;  %v1201_v7 = vld [vmem:[%s1808_s0 + $0xe0] sm:$0xff] }
 0x149   :  { %v762_v5 = vpop.f32.mrf.mxu1 }
 0x14a   :  { %v763_v6 = vadd.f32 %v1367_v25, %v762_v5 }
 0x14c   :  { %912 = vst.msk [vmem:[%s1812_s5 + $0x38] sm:$0xff] %vm639_vm3, %v763_v6  ;;  %v460_v6 = vpop.f32.mrf.mxu3 }
 0x14d   :  { %v425_v8 = vpop.f32.mrf.mxu0  ;;  %1129 = vmatmul.msk.bf16.gmra.mxu3 %vm250_vm2, %v1201_v7 }
 0x14e   :  { %v426_v9 = vadd.f32 %v1291_v17, %v425_v8 }
 0x150   :  { %v548_v11 = vmax.f32 %v426_v9, 0.0  ;;  %v449_v9 = vadd.f32 %v1291_v17, %v448_v35  ;;  %v459_v35 = vadd.f32 %v1291_v17, %v458_v63 }
 0x151   :  { %v765_v12 = vpop.f32.mrf.mxu1 }
 0x152   :  { %v603_v13 = vpack.c.bf16 %v548_v11, %v547_v10  ;;  %v766_v14 = vadd.f32 %v1367_v25, %v765_v12  ;;  %v451_v10 = vadd.f32 %v1291_v17, %v450_v43 }
 0x154   :  { %913 = vst.msk [vmem:[%s1812_s5 + $0x40] sm:$0xff] %vm639_vm3, %v766_v14  ;;  %1153 = vmatmul.msk.bf16.gmra.mxu1 %vm639_vm3, %v603_v13  ;;  %v463_v12 = vpop.f32.mrf.mxu3  ;;  %v557_v13 = vmax.f32 %v449_v9, 0.0  ;;  %v558_v14 = vmax.f32 %v451_v10, 0.0 }
 0x155   :  { %v428_v15 = vpop.f32.mrf.mxu0 }
 0x156   :  { %v429_v20 = vadd.f32 %v1291_v17, %v428_v15 }
 0x158   :  { %v549_v23 = vmax.f32 %v429_v20, 0.0  ;;  %v1202_v20 = vld [vmem:[%s1808_s0 + $0xe8] sm:$0xff] }
 0x159   :  { %v767_v18 = vpop.f32.mrf.mxu1 }
 0x15a   :  { %v768_v19 = vadd.f32 %v1367_v25, %v767_v18  ;;  %v608_v18 = vpack.c.bf16 %v558_v14, %v557_v13 }
 0x15c   :  { %914 = vst.msk [vmem:[%s1812_s5 + $0x48] sm:$0xff] %vm639_vm3, %v768_v19  ;;  %v465_v19 = vpop.f32.mrf.mxu3 }
 0x15d   :  { %v430_v21 = vpop.f32.mrf.mxu0  ;;  %1130 = vmatmul.msk.bf16.gmra.mxu3 %vm250_vm2, %v1202_v20 }
 0x15e   :  { %v431_v22 = vadd.f32 %v1291_v17, %v430_v21 }
 0x160   :  { %v550_v24 = vmax.f32 %v431_v22, 0.0  ;;  %v454_v22 = vadd.f32 %v1291_v17, %v453_v49 }
 0x161   :  { %v770_v26 = vpop.f32.mrf.mxu1 }
 0x162   :  { %v604_v27 = vpack.c.bf16 %v550_v24, %v549_v23  ;;  %v771_v28 = vadd.f32 %v1367_v25, %v770_v26  ;;  %v456_v23 = vadd.f32 %v1291_v17, %v455_v57 }
 0x164   :  { %915 = vst.msk [vmem:[%s1812_s5 + $0x50] sm:$0xff] %vm639_vm3, %v771_v28  ;;  %1154 = vmatmul.msk.bf16.gmra.mxu1 %vm639_vm3, %v604_v27  ;;  %v468_v26 = vpop.f32.mrf.mxu3  ;;  %v559_v27 = vmax.f32 %v454_v22, 0.0  ;;  %v560_v28 = vmax.f32 %v456_v23, 0.0 }
 0x165   :  { %v433_v29 = vpop.f32.mrf.mxu0  ;;  %v469_v58 = vadd.f32 %v1291_v17, %v468_v26 }
 0x166   :  { %v434_v33 = vadd.f32 %v1291_v17, %v433_v29 }
 0x168   :  { %v551_v37 = vmax.f32 %v434_v33, 0.0  ;;  %v1203_v33 = vld [vmem:[%s1808_s0 + $0xf0] sm:$0xff] }
 0x169   :  { %v772_v31 = vpop.f32.mrf.mxu1 }
 0x16a   :  { %v773_v32 = vadd.f32 %v1367_v25, %v772_v31  ;;  %v609_v31 = vpack.c.bf16 %v560_v28, %v559_v27 }
 0x16c   :  { %916 = vst.msk [vmem:[%s1812_s5 + $0x58] sm:$0xff] %vm639_vm3, %v773_v32  ;;  %v470_v32 = vpop.f32.mrf.mxu3 }
 0x16d   :  { %v435_v34 = vpop.f32.mrf.mxu0  ;;  %1131 = vmatmul.msk.bf16.gmra.mxu3 %vm250_vm2, %v1203_v33 }
 0x16e   :  { %v436_v36 = vadd.f32 %v1291_v17, %v435_v34 }
 0x170   :  { %v552_v38 = vmax.f32 %v436_v36, 0.0  ;;  %v461_v36 = vadd.f32 %v1291_v17, %v460_v6 }
 0x171   :  { %v775_v39 = vpop.f32.mrf.mxu1 }
 0x172   :  { %v605_v40 = vpack.c.bf16 %v552_v38, %v551_v37  ;;  %v776_v41 = vadd.f32 %v1367_v25, %v775_v39  ;;  %v561_v39 = vmax.f32 %v459_v35, 0.0 }
 0x174   :  { %917 = vst.msk [vmem:[%s1812_s5 + $0x60] sm:$0xff] %vm639_vm3, %v776_v41  ;;  %1155 = vmatmul.msk.bf16.gmra.mxu1 %vm639_vm3, %v605_v40  ;;  %v473_v38 = vpop.f32.mrf.mxu3  ;;  %v562_v40 = vmax.f32 %v461_v36, 0.0 }
 0x175   :  { %v438_v42 = vpop.f32.mrf.mxu0 }
 0x176   :  { %v439_v47 = vadd.f32 %v1291_v17, %v438_v42  ;;  %v610_v43 = vpack.c.bf16 %v562_v40, %v561_v39 }
 0x178   :  { %v553_v51 = vmax.f32 %v439_v47, 0.0  ;;  %v464_v47 = vadd.f32 %v1291_v17, %v463_v12 }
 0x179   :  { %v777_v45 = vpop.f32.mrf.mxu1 }
 0x17a   :  { %v778_v46 = vadd.f32 %v1367_v25, %v777_v45  ;;  %v1204_v45 = vld [vmem:[%s1808_s0 + $0xf8] sm:$0xff] }
 0x17c   :  { %918 = vst.msk [vmem:[%s1812_s5 + $0x68] sm:$0xff] %vm639_vm3, %v778_v46  ;;  %v475_v44 = vpop.f32.mrf.mxu3 }
 0x17d   :  { %v440_v48 = vpop.f32.mrf.mxu0  ;;  %1132 = vmatmul.msk.bf16.gmra.mxu3 %vm250_vm2, %v1204_v45 }
 0x17e   :  { %v441_v50 = vadd.f32 %v1291_v17, %v440_v48  ;;  %v466_v48 = vadd.f32 %v1291_v17, %v465_v19 }
 0x180   :  { %v554_v52 = vmax.f32 %v441_v50, 0.0 }
 0x181   :  { %v780_v53 = vpop.f32.mrf.mxu1 }
 0x182   :  { %v606_v54 = vpack.c.bf16 %v554_v52, %v553_v51  ;;  %v781_v55 = vadd.f32 %v1367_v25, %v780_v53  ;;  %v563_v51 = vmax.f32 %v464_v47, 0.0  ;;  %v564_v52 = vmax.f32 %v466_v48, 0.0 }
 0x184   :  { %919 = vst.msk [vmem:[%s1812_s5 + $0x70] sm:$0xff] %vm639_vm3, %v781_v55  ;;  %1156 = vmatmul.msk.bf16.gmra.mxu1 %vm639_vm3, %v606_v54  ;;  %v478_v50 = vpop.f32.mrf.mxu3  ;;  %v611_v54 = vpack.c.bf16 %v564_v52, %v563_v51 }
 0x185   :  { %v443_v56 = vpop.f32.mrf.mxu0 }
 0x186   :  { %v444_v61 = vadd.f32 %v1291_v17, %v443_v56 }
 0x188   :  { %v555_v1 = vmax.f32 %v444_v61, 0.0  ;;  %v565_v61 = vmax.f32 %v469_v58, 0.0 }
 0x189   :  { %v782_v59 = vpop.f32.mrf.mxu1 }
 0x18a   :  { %v783_v60 = vadd.f32 %v1367_v25, %v782_v59  ;;  %v471_v59 = vadd.f32 %v1291_v17, %v470_v32 }
 0x18c   :  { %920 = vst.msk [vmem:[%s1812_s5 + $0x78] sm:$0xff] %vm639_vm3, %v783_v60  ;;  %v480_v56 = vpop.f32.mrf.mxu3 }
 0x18d   :  { %v445_v62 = vpop.f32.mrf.mxu0 }
 0x18e   :  { %v446_v0 = vadd.f32 %v1291_v17, %v445_v62  ;;  %v566_v62 = vmax.f32 %v471_v59, 0.0 }
 0x190   :  { %v556_v2 = vmax.f32 %v446_v0, 0.0 }
 0x191   :  { %v785_v3 = vpop.f32.mrf.mxu1 }
 0x192   :  { %v607_v4 = vpack.c.bf16 %v556_v2, %v555_v1  ;;  %v786_v5 = vadd.f32 %v1367_v25, %v785_v3  ;;  %v612_v1 = vpack.c.bf16 %v566_v62, %v565_v61 }
 0x194   :  { %921 = vst.msk [vmem:[%s1812_s5 + $0x80] sm:$0xff] %vm639_vm3, %v786_v5  ;;  %1157 = vmatmul.msk.bf16.vlgmr.msra.gmra.mxu2 %vm639_vm3, %v607_v4  ;;  %v483_v0 = vpop.f32.mrf.mxu3  ;;  %v474_v4 = vadd.f32 %v1291_v17, %v473_v38  ;;  %v476_v5 = vadd.f32 %v1291_v17, %v475_v44 }
 0x195   :  { %v484_v28 = vadd.f32 %v1291_v17, %v483_v0 }
 0x196   :  { %v568_v9 = vmax.f32 %v476_v5, 0.0 }
 0x199   :  { %v787_v8 = vpop.f32.mrf.mxu1 }
 0x19a   :  { %v788_v11 = vadd.f32 %v1367_v25, %v787_v8  ;;  %v567_v8 = vmax.f32 %v474_v4, 0.0 }
 0x19c   :  { %922 = vst.msk [vmem:[%s1812_s5 + $0x88] sm:$0xff] %vm639_vm3, %v788_v11  ;;  %v485_v7 = vpop.f32.mrf.mxu3  ;;  %v613_v11 = vpack.c.bf16 %v568_v9, %v567_v8 }
 0x1a1   :  { %v790_v15 = vpop.f32.mrf.mxu1 }
 0x1a2   :  { %v791_v16 = vadd.f32 %v1367_v25, %v790_v15  ;;  %v479_v15 = vadd.f32 %v1291_v17, %v478_v50 }
 0x1a4   :  { %923 = vst.msk [vmem:[%s1812_s5 + $0x90] sm:$0xff] %vm639_vm3, %v791_v16  ;;  %1158 = vmatmul.msk.bf16.gmra.mxu2 %vm639_vm3, %v608_v18  ;;  %v488_v13 = vpop.f32.mrf.mxu3  ;;  %v481_v16 = vadd.f32 %v1291_v17, %v480_v56  ;;  %v569_v19 = vmax.f32 %v479_v15, 0.0 }
 0x1a6   :  { %v570_v20 = vmax.f32 %v481_v16, 0.0 }
 0x1a8   :  { %v614_v23 = vpack.c.bf16 %v570_v20, %v569_v19 }
 0x1a9   :  { %v792_v21 = vpop.f32.mrf.mxu1 }
 0x1aa   :  { %v793_v24 = vadd.f32 %v1367_v25, %v792_v21 }
 0x1ac   :  { %924 = vst.msk [vmem:[%s1812_s5 + $0x98] sm:$0xff] %vm639_vm3, %v793_v24  ;;  %v490_v21 = vpop.f32.mrf.mxu3 }
 0x1ad   :  { %v491_v38 = vadd.f32 %v1291_v17, %v490_v21 }
 0x1b1   :  { %v795_v29 = vpop.f32.mrf.mxu1 }
 0x1b2   :  { %v796_v30 = vadd.f32 %v1367_v25, %v795_v29  ;;  %v486_v29 = vadd.f32 %v1291_v17, %v485_v7 }
 0x1b4   :  { %925 = vst.msk [vmem:[%s1812_s5 + $0xa0] sm:$0xff] %vm639_vm3, %v796_v30  ;;  %1159 = vmatmul.msk.bf16.gmra.mxu2 %vm639_vm3, %v609_v31  ;;  %v493_v27 = vpop.f32.mrf.mxu3  ;;  %v571_v31 = vmax.f32 %v484_v28, 0.0  ;;  %v572_v32 = vmax.f32 %v486_v29, 0.0 }
 0x1b5   :  { %v494_v48 = vadd.f32 %v1291_v17, %v493_v27 }
 0x1b6   :  { %v615_v33 = vpack.c.bf16 %v572_v32, %v571_v31 }
 0x1b7   :  { %v575_v50 = vmax.f32 %v494_v48, 0.0 }
 0x1b9   :  { %v797_v34 = vpop.f32.mrf.mxu1 }
 0x1ba   :  { %v798_v37 = vadd.f32 %v1367_v25, %v797_v34 }
 0x1bc   :  { %926 = vst.msk [vmem:[%s1812_s5 + $0xa8] sm:$0xff] %vm639_vm3, %v798_v37  ;;  %v495_v34 = vpop.f32.mrf.mxu3  ;;  %v489_v37 = vadd.f32 %v1291_v17, %v488_v13 }
 0x1be   :  { %v573_v40 = vmax.f32 %v489_v37, 0.0 }
 0x1c1   :  { %v800_v41 = vpop.f32.mrf.mxu1 }
 0x1c2   :  { %v801_v42 = vadd.f32 %v1367_v25, %v800_v41  ;;  %v574_v41 = vmax.f32 %v491_v38, 0.0 }
 0x1c4   :  { %927 = vst.msk [vmem:[%s1812_s5 + $0xb0] sm:$0xff] %vm639_vm3, %v801_v42  ;;  %1160 = vmatmul.msk.bf16.gmra.mxu2 %vm639_vm3, %v610_v43  ;;  %v498_v39 = vpop.f32.mrf.mxu3  ;;  %v616_v44 = vpack.c.bf16 %v574_v41, %v573_v40 }
 0x1c5   :  { %v499_v58 = vadd.f32 %v1291_v17, %v498_v39 }
 0x1c7   :  { %v577_v61 = vmax.f32 %v499_v58, 0.0 }
 0x1c9   :  { %v802_v46 = vpop.f32.mrf.mxu1 }
 0x1ca   :  { %v803_v49 = vadd.f32 %v1367_v25, %v802_v46 }
 0x1cc   :  { %928 = vst.msk [vmem:[%s1812_s5 + $0xb8] sm:$0xff] %vm639_vm3, %v803_v49  ;;  %v500_v46 = vpop.f32.mrf.mxu3  ;;  %v496_v49 = vadd.f32 %v1291_v17, %v495_v34 }
 0x1cd   :  { %v501_v59 = vadd.f32 %v1291_v17, %v500_v46 }
 0x1ce   :  { %v576_v51 = vmax.f32 %v496_v49, 0.0 }
 0x1cf   :  { %v578_v62 = vmax.f32 %v501_v59, 0.0 }
 0x1d1   :  { %v805_v53 = vpop.f32.mrf.mxu1 }
 0x1d2   :  { %v806_v55 = vadd.f32 %v1367_v25, %v805_v53 }
 0x1d4   :  { %929 = vst.msk [vmem:[%s1812_s5 + $0xc0] sm:$0xff] %vm639_vm3, %v806_v55  ;;  %1161 = vmatmul.msk.bf16.gmra.mxu2 %vm639_vm3, %v611_v54  ;;  %v503_v54 = vpop.f32.mrf.mxu3  ;;  %v617_v55 = vpack.c.bf16 %v576_v51, %v575_v50 }
 0x1d5   :  { %v504_v5 = vadd.f32 %v1291_v17, %v503_v54 }
 0x1d7   :  { %v579_v7 = vmax.f32 %v504_v5, 0.0 }
 0x1d9   :  { %v807_v57 = vpop.f32.mrf.mxu1 }
 0x1da   :  { %v808_v60 = vadd.f32 %v1367_v25, %v807_v57 }
 0x1dc   :  { %930 = vst.msk [vmem:[%s1812_s5 + $0xc8] sm:$0xff] %vm639_vm3, %v808_v60  ;;  %v505_v60 = vpop.f32.mrf.mxu3 }
 0x1e1   :  { %v810_v63 = vpop.f32.mrf.mxu1 }
 0x1e2   :  { %v811_v2 = vadd.f32 %v1367_v25, %v810_v63 }
 0x1e4   :  { %931 = vst.msk [vmem:[%s1812_s5 + $0xd0] sm:$0xff] %vm639_vm3, %v811_v2  ;;  %1162 = vmatmul.msk.bf16.gmra.mxu2 %vm639_vm3, %v612_v1  ;;  %v618_v1 = vpack.c.bf16 %v578_v62, %v577_v61  ;;  %v508_v2 = vpop.f32.mrf.mxu3 }
 0x1e5   :  { %v509_v16 = vadd.f32 %v1291_v17, %v508_v2 }
 0x1e7   :  { %v581_v19 = vmax.f32 %v509_v16, 0.0 }
 0x1e9   :  { %v812_v3 = vpop.f32.mrf.mxu1 }
 0x1ea   :  { %v813_v6 = vadd.f32 %v1367_v25, %v812_v3 }
 0x1ec   :  { %932 = vst.msk [vmem:[%s1812_s5 + $0xd8] sm:$0xff] %vm639_vm3, %v813_v6  ;;  %v506_v6 = vadd.f32 %v1291_v17, %v505_v60 }
 0x1ee   :  { %v580_v8 = vmax.f32 %v506_v6, 0.0 }
 0x1f1   :  { %v815_v10 = vpop.f32.mrf.mxu1 }
 0x1f2   :  { %v816_v12 = vadd.f32 %v1367_v25, %v815_v10  ;;  %v510_v10 = vpop.f32.mrf.mxu3 }
 0x1f4   :  { %933 = vst.msk [vmem:[%s1812_s5 + $0xe0] sm:$0xff] %vm639_vm3, %v816_v12  ;;  %1163 = vmatmul.msk.bf16.gmra.mxu2 %vm639_vm3, %v613_v11  ;;  %v619_v12 = vpack.c.bf16 %v580_v8, %v579_v7 }
 0x1f9   :  { %v817_v14 = vpop.f32.mrf.mxu1 }
 0x1fa   :  { %v818_v18 = vadd.f32 %v1367_v25, %v817_v14  ;;  %v513_v15 = vpop.f32.mrf.mxu3 }
 0x1fb   :  { %v514_v28 = vadd.f32 %v1291_v17, %v513_v15 }
 0x1fc   :  { %934 = vst.msk [vmem:[%s1812_s5 + $0xe8] sm:$0xff] %vm639_vm3, %v818_v18  ;;  %v511_v18 = vadd.f32 %v1291_v17, %v510_v10 }
 0x1fd   :  { %v583_v31 = vmax.f32 %v514_v28, 0.0 }
 0x1fe   :  { %v582_v20 = vmax.f32 %v511_v18, 0.0 }
 0x201   :  { %v820_v22 = vpop.f32.mrf.mxu1 }
 0x202   :  { %v821_v24 = vadd.f32 %v1367_v25, %v820_v22 }
 0x204   :  { %935 = vst.msk [vmem:[%s1812_s5 + $0xf0] sm:$0xff] %vm639_vm3, %v821_v24  ;;  %1164 = vmatmul.msk.bf16.gmra.mxu2 %vm639_vm3, %v614_v23  ;;  %v620_v23 = vpack.c.bf16 %v582_v20, %v581_v19  ;;  %v515_v24 = vpop.f32.mrf.mxu3 }
 0x205   :  { %v516_v29 = vadd.f32 %v1291_v17, %v515_v24 }
 0x207   :  { %v584_v32 = vmax.f32 %v516_v29, 0.0 }
 0x209   :  { %v822_v26 = vpop.f32.mrf.mxu1 }
 0x20a   :  { %v823_v30 = vadd.f32 %v1367_v25, %v822_v26 }
 0x20c   :  { %936 = vst.msk [vmem:[%s1812_s5 + $0xf8] sm:$0xff] %vm639_vm3, %v823_v30  ;;  %v518_v30 = vpop.f32.mrf.mxu3 }
 0x20d   :  { %v519_v39 = vadd.f32 %v1291_v17, %v518_v30 }
 0x20f   :  { %v585_v41 = vmax.f32 %v519_v39, 0.0 }
 0x214   :  { %1165 = vmatmul.msk.bf16.gmra.mxu2 %vm639_vm3, %v615_v33 }
 0x217   :  { %v825_v35 = vpop.f32.mrf.mxu2 }
 0x218   :  { %v826_v36 = vadd.f32 %v1367_v25, %v825_v35  ;;  %v621_v35 = vpack.c.bf16 %v584_v32, %v583_v31 }
 0x21a   :  { %937 = vst.msk [vmem:[%s1812_s5 + $0x100] sm:$0xff] %vm639_vm3, %v826_v36  ;;  %v520_v36 = vpop.f32.mrf.mxu3 }
 0x21b   :  { %v521_v40 = vadd.f32 %v1291_v17, %v520_v36 }
 0x21f   :  { %v827_v42 = vpop.f32.mrf.mxu2 }
 0x220   :  { %v828_v43 = vadd.f32 %v1367_v25, %v827_v42  ;;  %v586_v42 = vmax.f32 %v521_v40, 0.0 }
 0x222   :  { %938 = vst.msk [vmem:[%s1812_s5 + $0x108] sm:$0xff] %vm639_vm3, %v828_v43 }
 0x224   :  { %1166 = vmatmul.msk.bf16.gmra.mxu2 %vm639_vm3, %v616_v44 }
 0x227   :  { %v830_v45 = vpop.f32.mrf.mxu2 }
 0x228   :  { %v831_v47 = vadd.f32 %v1367_v25, %v830_v45  ;;  %v622_v45 = vpack.c.bf16 %v586_v42, %v585_v41 }
 0x22a   :  { %939 = vst.msk [vmem:[%s1812_s5 + $0x110] sm:$0xff] %vm639_vm3, %v831_v47 }
 0x22f   :  { %v832_v52 = vpop.f32.mrf.mxu2 }
 0x230   :  { %v833_v53 = vadd.f32 %v1367_v25, %v832_v52 }
 0x232   :  { %940 = vst.msk [vmem:[%s1812_s5 + $0x118] sm:$0xff] %vm639_vm3, %v833_v53 }
 0x234   :  { %1167 = vmatmul.msk.bf16.gmra.mxu2 %vm639_vm3, %v617_v55 }
 0x237   :  { %v835_v56 = vpop.f32.mrf.mxu2 }
 0x238   :  { %v836_v57 = vadd.f32 %v1367_v25, %v835_v56 }
 0x23a   :  { %941 = vst.msk [vmem:[%s1812_s5 + $0x120] sm:$0xff] %vm639_vm3, %v836_v57 }
 0x23f   :  { %v837_v63 = vpop.f32.mrf.mxu2 }
 0x240   :  { %v838_v0 = vadd.f32 %v1367_v25, %v837_v63 }
 0x242   :  { %942 = vst.msk [vmem:[%s1812_s5 + $0x128] sm:$0xff] %vm639_vm3, %v838_v0 }
 0x244   :  { %1168 = vmatmul.msk.bf16.gmra.mxu2 %vm639_vm3, %v618_v1 }
 0x247   :  { %v840_v3 = vpop.f32.mrf.mxu2 }
 0x248   :  { %v841_v4 = vadd.f32 %v1367_v25, %v840_v3 }
 0x24a   :  { %943 = vst.msk [vmem:[%s1812_s5 + $0x130] sm:$0xff] %vm639_vm3, %v841_v4 }
 0x24f   :  { %v842_v9 = vpop.f32.mrf.mxu2 }
 0x250   :  { %v843_v11 = vadd.f32 %v1367_v25, %v842_v9 }
 0x252   :  { %944 = vst.msk [vmem:[%s1812_s5 + $0x138] sm:$0xff] %vm639_vm3, %v843_v11 }
 0x254   :  { %1169 = vmatmul.msk.bf16.gmra.mxu2 %vm639_vm3, %v619_v12 }
 0x257   :  { %v845_v13 = vpop.f32.mrf.mxu2 }
 0x258   :  { %v846_v14 = vadd.f32 %v1367_v25, %v845_v13 }
 0x25a   :  { %945 = vst.msk [vmem:[%s1812_s5 + $0x140] sm:$0xff] %vm639_vm3, %v846_v14 }
 0x25f   :  { %v847_v21 = vpop.f32.mrf.mxu2 }
 0x260   :  { %v848_v22 = vadd.f32 %v1367_v25, %v847_v21 }
 0x262   :  { %946 = vst.msk [vmem:[%s1812_s5 + $0x148] sm:$0xff] %vm639_vm3, %v848_v22 }
 0x264   :  { %1170 = vmatmul.msk.bf16.gmra.mxu2 %vm639_vm3, %v620_v23 }
 0x267   :  { %v850_v26 = vpop.f32.mrf.mxu2 }
 0x268   :  { %v851_v27 = vadd.f32 %v1367_v25, %v850_v26 }
 0x26a   :  { %947 = vst.msk [vmem:[%s1812_s5 + $0x150] sm:$0xff] %vm639_vm3, %v851_v27 }
 0x26f   :  { %v852_v33 = vpop.f32.mrf.mxu2 }
 0x270   :  { %v853_v34 = vadd.f32 %v1367_v25, %v852_v33 }
 0x272   :  { %948 = vst.msk [vmem:[%s1812_s5 + $0x158] sm:$0xff] %vm639_vm3, %v853_v34 }
 0x274   :  { %1171 = vmatmul.msk.bf16.gmra.mxu2 %vm639_vm3, %v621_v35 }
 0x277   :  { %v855_v37 = vpop.f32.mrf.mxu2 }
 0x278   :  { %v856_v38 = vadd.f32 %v1367_v25, %v855_v37 }
 0x27a   :  { %949 = vst.msk [vmem:[%s1812_s5 + $0x160] sm:$0xff] %vm639_vm3, %v856_v38 }
 0x27f   :  { %v857_v43 = vpop.f32.mrf.mxu2 }
 0x280   :  { %v858_v44 = vadd.f32 %v1367_v25, %v857_v43 }
 0x282   :  { %950 = vst.msk [vmem:[%s1812_s5 + $0x168] sm:$0xff] %vm639_vm3, %v858_v44 }
 0x284   :  { %1172 = vmatmul.msk.bf16.gmra.mxu2 %vm639_vm3, %v622_v45 }
 0x287   :  { %v860_v46 = vpop.f32.mrf.mxu2 }
 0x288   :  { %v861_v17 = vadd.f32 %v1367_v25, %v860_v46 }
 0x28a   :  { %951 = vst.msk [vmem:[%s1812_s5 + $0x170] sm:$0xff] %vm639_vm3, %v861_v17 }
 0x28f   :  { %v862_v47 = vpop.f32.mrf.mxu2 }
 0x290   :  { %v863_v48 = vadd.f32 %v1367_v25, %v862_v47 }
 0x292   :  { %952 = vst.msk [vmem:[%s1812_s5 + $0x178] sm:$0xff] %vm639_vm3, %v863_v48 }
 0x297   :  { %v865_v49 = vpop.f32.mrf.mxu2 }
 0x298   :  { %v866_v50 = vadd.f32 %v1367_v25, %v865_v49 }
 0x29a   :  { %953 = vst.msk [vmem:[%s1812_s5 + $0x180] sm:$0xff] %vm639_vm3, %v866_v50 }
 0x29f   :  { %v867_v51 = vpop.f32.mrf.mxu2 }
 0x2a0   :  { %v868_v52 = vadd.f32 %v1367_v25, %v867_v51 }
 0x2a2   :  { %954 = vst.msk [vmem:[%s1812_s5 + $0x188] sm:$0xff] %vm639_vm3, %v868_v52 }
 0x2a7   :  { %v870_v53 = vpop.f32.mrf.mxu2 }
 0x2a8   :  { %v871_v54 = vadd.f32 %v1367_v25, %v870_v53 }
 0x2aa   :  { %955 = vst.msk [vmem:[%s1812_s5 + $0x190] sm:$0xff] %vm639_vm3, %v871_v54 }
 0x2af   :  { %v872_v55 = vpop.f32.mrf.mxu2 }
 0x2b0   :  { %v873_v56 = vadd.f32 %v1367_v25, %v872_v55 }
 0x2b2   :  { %956 = vst.msk [vmem:[%s1812_s5 + $0x198] sm:$0xff] %vm639_vm3, %v873_v56 }
 0x2b7   :  { %v875_v57 = vpop.f32.mrf.mxu2 }
 0x2b8   :  { %v876_v58 = vadd.f32 %v1367_v25, %v875_v57 }
 0x2ba   :  { %957 = vst.msk [vmem:[%s1812_s5 + $0x1a0] sm:$0xff] %vm639_vm3, %v876_v58 }
 0x2bf   :  { %v877_v59 = vpop.f32.mrf.mxu2 }
 0x2c0   :  { %v878_v60 = vadd.f32 %v1367_v25, %v877_v59 }
 0x2c2   :  { %958 = vst.msk [vmem:[%s1812_s5 + $0x1a8] sm:$0xff] %vm639_vm3, %v878_v60 }
 0x2c7   :  { %v880_v61 = vpop.f32.mrf.mxu2 }
 0x2c8   :  { %v881_v62 = vadd.f32 %v1367_v25, %v880_v61 }
 0x2ca   :  { %959 = vst.msk [vmem:[%s1812_s5 + $0x1b0] sm:$0xff] %vm639_vm3, %v881_v62 }
 0x2cf   :  { %v882_v63 = vpop.f32.mrf.mxu2 }
 0x2d0   :  { %v883_v0 = vadd.f32 %v1367_v25, %v882_v63 }
 0x2d2   :  { %960 = vst.msk [vmem:[%s1812_s5 + $0x1b8] sm:$0xff] %vm639_vm3, %v883_v0 }
 0x2d7   :  { %v885_v1 = vpop.f32.mrf.mxu2 }
 0x2d8   :  { %v886_v2 = vadd.f32 %v1367_v25, %v885_v1 }
 0x2da   :  { %961 = vst.msk [vmem:[%s1812_s5 + $0x1c0] sm:$0xff] %vm639_vm3, %v886_v2 }
 0x2df   :  { %v887_v3 = vpop.f32.mrf.mxu2 }
 0x2e0   :  { %v888_v4 = vadd.f32 %v1367_v25, %v887_v3 }
 0x2e2   :  { %962 = vst.msk [vmem:[%s1812_s5 + $0x1c8] sm:$0xff] %vm639_vm3, %v888_v4 }
 0x2e7   :  { %v890_v5 = vpop.f32.mrf.mxu2 }
 0x2e8   :  { %v891_v6 = vadd.f32 %v1367_v25, %v890_v5 }
 0x2ea   :  { %963 = vst.msk [vmem:[%s1812_s5 + $0x1d0] sm:$0xff] %vm639_vm3, %v891_v6 }
 0x2ef   :  { %v892_v7 = vpop.f32.mrf.mxu2 }
 0x2f0   :  { %v893_v8 = vadd.f32 %v1367_v25, %v892_v7 }
 0x2f2   :  { %964 = vst.msk [vmem:[%s1812_s5 + $0x1d8] sm:$0xff] %vm639_vm3, %v893_v8 }
 0x2f7   :  { %v895_v9 = vpop.f32.mrf.mxu2 }
 0x2f8   :  { %v896_v10 = vadd.f32 %v1367_v25, %v895_v9 }
 0x2fa   :  { %965 = vst.msk [vmem:[%s1812_s5 + $0x1e0] sm:$0xff] %vm639_vm3, %v896_v10 }
 0x2ff   :  { %v897_v11 = vpop.f32.mrf.mxu2 }
 0x300   :  { %v898_v12 = vadd.f32 %v1367_v25, %v897_v11 }
 0x302   :  { %966 = vst.msk [vmem:[%s1812_s5 + $0x1e8] sm:$0xff] %vm639_vm3, %v898_v12 }
 0x307   :  { %v900_v13 = vpop.f32.mrf.mxu2 }
 0x308   :  { %v901_v14 = vadd.f32 %v1367_v25, %v900_v13 }
 0x30a   :  { %967 = vst.msk [vmem:[%s1812_s5 + $0x1f0] sm:$0xff] %vm639_vm3, %v901_v14 }
 0x30f   :  { %v902_v15 = vpop.f32.mrf.mxu2 }
 0x310   :  { %v903_v16 = vadd.f32 %v1367_v25, %v902_v15 }
 0x312   :  { %968 = vst.msk [vmem:[%s1812_s5 + $0x1f8] sm:$0xff] %vm639_vm3, %v903_v16 }

// kernel: _lambda_.19
= control target key start
LH: loop header
LB: loop body
LE: loop exit
PB: predicated region body
PF: predicated region fallthrough
CT: control target
= control target key end

     0   :  { %vm94_vm0 = vcmask 261120   ;;  %vm265_vm1 = vcmask 785408   ;;  %s511_s1 = inlined_call_operand.vmem [shape: bf16[32,32], index: 1, kind: input, shape index: {}]   ;;  %s512_s2 = inlined_call_operand.vmem [shape: f32[1,32], index: 2, kind: input, shape index: {}]   ;;  %s513_s0 = inlined_call_operand.vmem [shape: bf16[128,32], index: 0, kind: input, shape index: {}]   ;;  %s514_s3 = inlined_call_operand.vmem [shape: bf16[32,96], index: 3, kind: input, shape index: {}]   ;;  %s515_s4 = inlined_call_operand.vmem [shape: f32[128,96], index: 4, kind: output, shape index: {}]  }
   0x1   :  { %v359_v0 = vld [vmem:[%s511_s1 + $0x8] sm:$0xff]  ;;  %v358_v1 = vld [vmem:[%s511_s1] sm:$0xff]  ;;  %v352_v6 = vld [vmem:[%s513_s0 + $0x10] sm:$0xff] }
   0x2   :  { %125 = vmatpush.bf16.msra.mxu0 %v359_v0  ;;  %362 = vmatpush.bf16.msra.mxu2 %v359_v0  ;;  %v350_v2 = vld [vmem:[%s513_s0] sm:$0xff]  ;;  %v351_v4 = vld [vmem:[%s513_s0 + $0x8] sm:$0xff]  ;;  %v356_v7 = vld [vmem:[%s513_s0 + $0x30] sm:$0xff] }
   0x3   :  { %v354_v3 = vld [vmem:[%s513_s0 + $0x20] sm:$0xff]  ;;  %v355_v5 = vld [vmem:[%s513_s0 + $0x28] sm:$0xff]  ;;  %v353_v8 = vld [vmem:[%s513_s0 + $0x18] sm:$0xff] }
   0x4   :  { %v357_v9 = vld [vmem:[%s513_s0 + $0x38] sm:$0xff]  ;;  %v361_v10 = vld [vmem:[%s514_s3 + $0x8] sm:$0xff]  ;;  %v360_v11 = vld [vmem:[%s514_s3] sm:$0xff] }
   0x5   :  { %222 = vmatpush.bf16.msra.mxu1 %v361_v10  ;;  %364 = vmatpush.bf16.msra.mxu3 %v361_v10  ;;  %v366_v13 = vld [vmem:[%s512_s2] ss:$0 sm:$0xff] }
   0x6   :  { %126 = vmatpush.bf16.msra.mxu0 %v358_v1  ;;  %363 = vmatpush.bf16.msra.mxu2 %v358_v1 }
   0x9   :  { %326 = vmatmul.msk.bf16.vlgmr.msra.gmra.mxu0 %vm94_vm0, %v350_v2  ;;  %330 = vmatmul.msk.bf16.vlgmr.msra.gmra.mxu2 %vm94_vm0, %v354_v3 }
   0xa   :  { %223 = vmatpush.bf16.msra.mxu1 %v360_v11  ;;  %365 = vmatpush.bf16.msra.mxu3 %v360_v11 }
  0x19   :  { %327 = vmatmul.msk.bf16.gmra.mxu0 %vm94_vm0, %v351_v4  ;;  %331 = vmatmul.msk.bf16.gmra.mxu2 %vm94_vm0, %v355_v5 }
  0x29   :  { %328 = vmatmul.msk.bf16.gmra.mxu0 %vm94_vm0, %v352_v6  ;;  %332 = vmatmul.msk.bf16.gmra.mxu2 %vm94_vm0, %v356_v7 }
  0x39   :  { %329 = vmatmul.msk.bf16.gmra.mxu0 %vm94_vm0, %v353_v8  ;;  %333 = vmatmul.msk.bf16.gmra.mxu2 %vm94_vm0, %v357_v9 }
  0x86   :  { %v128_v12 = vpop.f32.mrf.mxu0 }
  0x87   :  { %v129_v15 = vadd.f32 %v366_v13, %v128_v12 }
  0x8c   :  { %v148_v14 = vpop.f32.mrf.mxu2 }
  0x8d   :  { %v149_v20 = vadd.f32 %v366_v13, %v148_v14 }
  0x8e   :  { %v130_v16 = vpop.f32.mrf.mxu0 }
  0x8f   :  { %v131_v17 = vadd.f32 %v366_v13, %v130_v16 }
  0x91   :  { %v172_v18 = vpack.c.bf16 %v131_v17, %v129_v15 }
  0x93   :  { %342 = vmatmul.msk.bf16.vlgmr.msra.gmra.mxu1 %vm94_vm0, %v172_v18 }
  0x94   :  { %v150_v19 = vpop.f32.mrf.mxu2 }
  0x95   :  { %v151_v21 = vadd.f32 %v366_v13, %v150_v19 }
  0x96   :  { %v133_v22 = vpop.f32.mrf.mxu0 }
  0x97   :  { %v176_v23 = vpack.c.bf16 %v151_v21, %v149_v20  ;;  %v134_v25 = vadd.f32 %v366_v13, %v133_v22 }
  0x99   :  { %346 = vmatmul.msk.bf16.vlgmr.msra.gmra.mxu3 %vm94_vm0, %v176_v23 }
  0x9c   :  { %v153_v24 = vpop.f32.mrf.mxu2 }
  0x9d   :  { %v154_v30 = vadd.f32 %v366_v13, %v153_v24 }
  0x9e   :  { %v135_v26 = vpop.f32.mrf.mxu0 }
  0x9f   :  { %v136_v27 = vadd.f32 %v366_v13, %v135_v26 }
  0xa1   :  { %v173_v28 = vpack.c.bf16 %v136_v27, %v134_v25 }
  0xa3   :  { %343 = vmatmul.msk.bf16.gmra.mxu1 %vm94_vm0, %v173_v28 }
  0xa4   :  { %v155_v29 = vpop.f32.mrf.mxu2 }
  0xa5   :  { %v156_v31 = vadd.f32 %v366_v13, %v155_v29 }
  0xa6   :  { %v138_v32 = vpop.f32.mrf.mxu0 }
  0xa7   :  { %v177_v33 = vpack.c.bf16 %v156_v31, %v154_v30  ;;  %v139_v35 = vadd.f32 %v366_v13, %v138_v32 }
  0xa9   :  { %347 = vmatmul.msk.bf16.gmra.mxu3 %vm94_vm0, %v177_v33 }
  0xac   :  { %v158_v34 = vpop.f32.mrf.mxu2 }
  0xad   :  { %v159_v40 = vadd.f32 %v366_v13, %v158_v34 }
  0xae   :  { %v140_v36 = vpop.f32.mrf.mxu0 }
  0xaf   :  { %v141_v37 = vadd.f32 %v366_v13, %v140_v36 }
  0xb1   :  { %v174_v38 = vpack.c.bf16 %v141_v37, %v139_v35 }
  0xb3   :  { %344 = vmatmul.msk.bf16.gmra.mxu1 %vm94_vm0, %v174_v38 }
  0xb4   :  { %v160_v39 = vpop.f32.mrf.mxu2 }
  0xb5   :  { %v161_v41 = vadd.f32 %v366_v13, %v160_v39 }
  0xb6   :  { %v143_v42 = vpop.f32.mrf.mxu0 }
  0xb7   :  { %v178_v43 = vpack.c.bf16 %v161_v41, %v159_v40  ;;  %v144_v45 = vadd.f32 %v366_v13, %v143_v42 }
  0xb9   :  { %348 = vmatmul.msk.bf16.gmra.mxu3 %vm94_vm0, %v178_v43 }
  0xbc   :  { %v163_v44 = vpop.f32.mrf.mxu2 }
  0xbd   :  { %v164_v50 = vadd.f32 %v366_v13, %v163_v44 }
  0xbe   :  { %v145_v46 = vpop.f32.mrf.mxu0 }
  0xbf   :  { %v146_v47 = vadd.f32 %v366_v13, %v145_v46 }
  0xc1   :  { %v175_v48 = vpack.c.bf16 %v146_v47, %v144_v45 }
  0xc3   :  { %345 = vmatmul.msk.bf16.gmra.mxu1 %vm94_vm0, %v175_v48 }
  0xc4   :  { %v165_v49 = vpop.f32.mrf.mxu2 }
  0xc5   :  { %v166_v51 = vadd.f32 %v366_v13, %v165_v49 }
  0xc7   :  { %v179_v52 = vpack.c.bf16 %v166_v51, %v164_v50 }
  0xc9   :  { %349 = vmatmul.msk.bf16.gmra.mxu3 %vm94_vm0, %v179_v52 }
 0x110   :  { %v225_v53 = vpop.f32.mrf.mxu1 }
 0x111   :  { %266 = vst.msk [vmem:[%s515_s4] sm:$0xff] %vm265_vm1, %v225_v53 }
 0x118   :  { %v227_v54 = vpop.f32.mrf.mxu1 }
 0x119   :  { %267 = vst.msk [vmem:[%s515_s4 + $0x8] sm:$0xff] %vm265_vm1, %v227_v54 }
 0x11c   :  { %v245_v55 = vpop.f32.mrf.mxu3 }
 0x11d   :  { %274 = vst.msk [vmem:[%s515_s4 + $0x40] sm:$0xff] %vm265_vm1, %v245_v55 }
 0x120   :  { %v230_v56 = vpop.f32.mrf.mxu1 }
 0x121   :  { %268 = vst.msk [vmem:[%s515_s4 + $0x10] sm:$0xff] %vm265_vm1, %v230_v56 }
 0x124   :  { %v247_v57 = vpop.f32.mrf.mxu3 }
 0x125   :  { %275 = vst.msk [vmem:[%s515_s4 + $0x48] sm:$0xff] %vm265_vm1, %v247_v57 }
 0x128   :  { %v232_v58 = vpop.f32.mrf.mxu1 }
 0x129   :  { %269 = vst.msk [vmem:[%s515_s4 + $0x18] sm:$0xff] %vm265_vm1, %v232_v58 }
 0x12c   :  { %v250_v59 = vpop.f32.mrf.mxu3 }
 0x12d   :  { %276 = vst.msk [vmem:[%s515_s4 + $0x50] sm:$0xff] %vm265_vm1, %v250_v59 }
 0x130   :  { %v235_v60 = vpop.f32.mrf.mxu1 }
 0x131   :  { %270 = vst.msk [vmem:[%s515_s4 + $0x20] sm:$0xff] %vm265_vm1, %v235_v60 }
 0x134   :  { %v252_v61 = vpop.f32.mrf.mxu3 }
 0x135   :  { %277 = vst.msk [vmem:[%s515_s4 + $0x58] sm:$0xff] %vm265_vm1, %v252_v61 }
 0x138   :  { %v237_v62 = vpop.f32.mrf.mxu1 }
 0x139   :  { %271 = vst.msk [vmem:[%s515_s4 + $0x28] sm:$0xff] %vm265_vm1, %v237_v62 }
 0x13c   :  { %v255_v63 = vpop.f32.mrf.mxu3 }
 0x13d   :  { %278 = vst.msk [vmem:[%s515_s4 + $0x60] sm:$0xff] %vm265_vm1, %v255_v63 }
 0x140   :  { %v240_v0 = vpop.f32.mrf.mxu1 }
 0x141   :  { %272 = vst.msk [vmem:[%s515_s4 + $0x30] sm:$0xff] %vm265_vm1, %v240_v0 }
 0x144   :  { %v257_v1 = vpop.f32.mrf.mxu3 }
 0x145   :  { %279 = vst.msk [vmem:[%s515_s4 + $0x68] sm:$0xff] %vm265_vm1, %v257_v1 }
 0x148   :  { %v242_v2 = vpop.f32.mrf.mxu1 }
 0x149   :  { %273 = vst.msk [vmem:[%s515_s4 + $0x38] sm:$0xff] %vm265_vm1, %v242_v2 }
 0x14c   :  { %v260_v3 = vpop.f32.mrf.mxu3 }
 0x14d   :  { %280 = vst.msk [vmem:[%s515_s4 + $0x70] sm:$0xff] %vm265_vm1, %v260_v3 }
 0x154   :  { %v262_v4 = vpop.f32.mrf.mxu3 }
 0x155   :  { %281 = vst.msk [vmem:[%s515_s4 + $0x78] sm:$0xff] %vm265_vm1, %v262_v4 }

// kernel: _lambda_.21
= control target key start
LH: loop header
LB: loop body
LE: loop exit
PB: predicated region body
PF: predicated region fallthrough
CT: control target
= control target key end

     0   :  { %s1412_s21 = smov 0   ;;  %s1414_s22 = smov 0   ;;  %s1746_s0 = inlined_call_operand.vmem [shape: f32[2,4,64,32], index: 0, kind: input, shape index: {}]   ;;  %s1747_s1 = inlined_call_operand.vmem [shape: f32[2,4,64,32], index: 1, kind: input, shape index: {}]   ;;  %s1748_s2 = inlined_call_operand.vmem [shape: bf16[32,32], index: 2, kind: input, shape index: {}]   ;;  %s1749_s3 = inlined_call_operand.vmem [shape: f32[1,32], index: 3, kind: input, shape index: {}]   ;;  %s1750_s4 = inlined_call_operand.vmem [shape: bf16[32,32], index: 4, kind: input, shape index: {}]   ;;  %s1751_s5 = inlined_call_operand.vmem [shape: f32[1,32], index: 5, kind: input, shape index: {}]   ;;  %s1752_s6 = inlined_call_operand.vmem [shape: f32[2,64,32], index: 6, kind: output, shape index: {}]  }
   0x1   :  { %s1416_s23 = smov 0  }
   0x2 LB: > { %s28_s24 = sadd.s32 1, %s1371_s22  ;;  %p1155_p0 = scmp.ge.s32.totalorder %s1375_s23, 1  ;;  %s1375_s23 = sphi %s1416_s23, %s16_s23   ;;  %s1371_s22 = sphi %s1414_s22, %s1754_s22   ;;  %s1367_s21 = sphi %s1412_s21, %s1753_s21  }
   0x3   : > { %p30_p1 = scmp.ge.s32.totalorder %s28_s24, 2  ;;  %p250_p2 = scmp.lt.s32.totalorder %s1375_s23, 3 }
   0x5   : > { %s1756_s24 = smov (%p30_p1, %s28_s24), 0  ;;  %p251_p3 = pnand %p1155_p0, %p250_p2 }
   0x6   : > { %p298_p4 = scmp.lt.s32.totalorder (!%p251_p3), %s1367_s21, 1 }
   0x7   : > { %254 = sbr.rel (%p251_p3) target bundleno = 453 (0x1c5), region = 44 }
   0xc   : > { %v1240_v0 = vld [vmem:[%s1748_s2 + $0x8] sm:$0xff]  ;;  %v1239_v1 = vld [vmem:[%s1748_s2] sm:$0xff]  ;;  %s1758_s21 = smov (!%p298_p4, %s1367_s21), 1  ;;  %vm396_vm0 = vcmask 261120  }
   0xd   : > { %451 = vmatpush.bf16.msra.mxu0 %v1240_v0  ;;  %1243 = vmatpush.bf16.msra.mxu2 %v1240_v0  ;;  %s1236_s29 = sshll.u32 %s1758_s21, 8  ;;  %v1242_v44 = vld [vmem:[%s1750_s4 + $0x8] sm:$0xff]  ;;  %v1241_v45 = vld [vmem:[%s1750_s4] sm:$0xff]  ;;  %s1238_s20 = sshll.u32 %s1758_s21, 6 }
   0xe   : > { %s1444_s8 = scalar_lea.vmem %s1746_s0, %s1236_s29  ;;  %656 = vmatpush.bf16.msra.mxu1 %v1242_v44  ;;  %1245 = vmatpush.bf16.msra.mxu3 %v1242_v44  ;;  %v1503_v53 = vld [vmem:[%s1749_s3] ss:$0 sm:$0xff]  ;;  %s1589_s19 = scalar_lea.vmem %s1747_s1, %s1236_s29 }
   0xf   : > { %v328_v2 = vld [vmem:[%s1444_s8] sm:$0xff]  ;;  %v329_v3 = vld [vmem:[%s1444_s8 + $0x8] sm:$0xff]  ;;  %v330_v8 = vld [vmem:[%s1444_s8 + $0x10] sm:$0xff]  ;;  %s1651_s26 = scalar_lea.vmem %s1752_s6, %s1238_s20 }
  0x10   : > { %v344_v4 = vld [vmem:[%s1444_s8 + $0x80] sm:$0xff]  ;;  %v360_v5 = vpack.c.bf16 %v329_v3, %v328_v2  ;;  %v345_v6 = vld [vmem:[%s1444_s8 + $0x88] sm:$0xff]  ;;  %v331_v9 = vld [vmem:[%s1444_s8 + $0x18] sm:$0xff] }
  0x11   : > { %452 = vmatpush.bf16.msra.mxu0 %v1239_v1  ;;  %1244 = vmatpush.bf16.msra.mxu2 %v1239_v1  ;;  %v368_v7 = vpack.c.bf16 %v345_v6, %v344_v4  ;;  %v346_v10 = vld [vmem:[%s1444_s8 + $0x90] sm:$0xff]  ;;  %v347_v11 = vld [vmem:[%s1444_s8 + $0x98] sm:$0xff]  ;;  %v361_v12 = vpack.c.bf16 %v331_v9, %v330_v8  ;;  %v332_v14 = vld [vmem:[%s1444_s8 + $0x20] sm:$0xff] }
  0x12   : > { %v369_v13 = vpack.c.bf16 %v347_v11, %v346_v10  ;;  %v333_v15 = vld [vmem:[%s1444_s8 + $0x28] sm:$0xff]  ;;  %v348_v16 = vld [vmem:[%s1444_s8 + $0xa0] sm:$0xff]  ;;  %v334_v20 = vld [vmem:[%s1444_s8 + $0x30] sm:$0xff]  ;;  %657 = vmatpush.bf16.msra.mxu1 %v1241_v45  ;;  %1246 = vmatpush.bf16.msra.mxu3 %v1241_v45 }
  0x13   : > { %v349_v17 = vld [vmem:[%s1444_s8 + $0xa8] sm:$0xff]  ;;  %v362_v18 = vpack.c.bf16 %v333_v15, %v332_v14  ;;  %v335_v21 = vld [vmem:[%s1444_s8 + $0x38] sm:$0xff]  ;;  %v350_v22 = vld [vmem:[%s1444_s8 + $0xb0] sm:$0xff] }
  0x14   : > { %1170 = vmatmul.msk.bf16.vlgmr.msra.gmra.mxu0 %vm396_vm0, %v360_v5  ;;  %1178 = vmatmul.msk.bf16.vlgmr.msra.gmra.mxu2 %vm396_vm0, %v368_v7  ;;  %v370_v19 = vpack.c.bf16 %v349_v17, %v348_v16  ;;  %v351_v23 = vld [vmem:[%s1444_s8 + $0xb8] sm:$0xff]  ;;  %v363_v24 = vpack.c.bf16 %v335_v21, %v334_v20  ;;  %v336_v26 = vld [vmem:[%s1444_s8 + $0x40] sm:$0xff]  ;;  %v337_v27 = vld [vmem:[%s1444_s8 + $0x48] sm:$0xff] }
  0x15   : > { %v371_v25 = vpack.c.bf16 %v351_v23, %v350_v22  ;;  %v352_v28 = vld [vmem:[%s1444_s8 + $0xc0] sm:$0xff]  ;;  %v353_v29 = vld [vmem:[%s1444_s8 + $0xc8] sm:$0xff]  ;;  %v364_v30 = vpack.c.bf16 %v337_v27, %v336_v26  ;;  %v338_v32 = vld [vmem:[%s1444_s8 + $0x50] sm:$0xff] }
  0x16   : > { %v372_v31 = vpack.c.bf16 %v353_v29, %v352_v28  ;;  %v339_v33 = vld [vmem:[%s1444_s8 + $0x58] sm:$0xff]  ;;  %v354_v34 = vld [vmem:[%s1444_s8 + $0xd0] sm:$0xff]  ;;  %v340_v38 = vld [vmem:[%s1444_s8 + $0x60] sm:$0xff] }
  0x17   : > { %v355_v35 = vld [vmem:[%s1444_s8 + $0xd8] sm:$0xff]  ;;  %v365_v36 = vpack.c.bf16 %v339_v33, %v338_v32  ;;  %v341_v39 = vld [vmem:[%s1444_s8 + $0x68] sm:$0xff]  ;;  %v356_v40 = vld [vmem:[%s1444_s8 + $0xe0] sm:$0xff] }
  0x18   : > { %v373_v37 = vpack.c.bf16 %v355_v35, %v354_v34  ;;  %v357_v41 = vld [vmem:[%s1444_s8 + $0xe8] sm:$0xff]  ;;  %v366_v42 = vpack.c.bf16 %v341_v39, %v340_v38  ;;  %v342_v46 = vld [vmem:[%s1444_s8 + $0x70] sm:$0xff]  ;;  %v343_v47 = vld [vmem:[%s1444_s8 + $0x78] sm:$0xff] }
  0x19   : > { %v374_v43 = vpack.c.bf16 %v357_v41, %v356_v40  ;;  %v358_v48 = vld [vmem:[%s1444_s8 + $0xf0] sm:$0xff]  ;;  %v359_v49 = vld [vmem:[%s1444_s8 + $0xf8] sm:$0xff]  ;;  %v367_v50 = vpack.c.bf16 %v343_v47, %v342_v46 }
  0x1a   : > { %v375_v51 = vpack.c.bf16 %v359_v49, %v358_v48 }
  0x24   : > { %1171 = vmatmul.msk.bf16.gmra.mxu0 %vm396_vm0, %v361_v12  ;;  %1179 = vmatmul.msk.bf16.gmra.mxu2 %vm396_vm0, %v369_v13 }
  0x34   : > { %1172 = vmatmul.msk.bf16.gmra.mxu0 %vm396_vm0, %v362_v18  ;;  %1180 = vmatmul.msk.bf16.gmra.mxu2 %vm396_vm0, %v370_v19 }
  0x44   : > { %1173 = vmatmul.msk.bf16.gmra.mxu0 %vm396_vm0, %v363_v24  ;;  %1181 = vmatmul.msk.bf16.gmra.mxu2 %vm396_vm0, %v371_v25 }
  0x54   : > { %1174 = vmatmul.msk.bf16.gmra.mxu0 %vm396_vm0, %v364_v30  ;;  %1182 = vmatmul.msk.bf16.gmra.mxu2 %vm396_vm0, %v372_v31 }
  0x64   : > { %1175 = vmatmul.msk.bf16.gmra.mxu0 %vm396_vm0, %v365_v36  ;;  %1183 = vmatmul.msk.bf16.gmra.mxu2 %vm396_vm0, %v373_v37 }
  0x74   : > { %1176 = vmatmul.msk.bf16.gmra.mxu0 %vm396_vm0, %v366_v42  ;;  %1184 = vmatmul.msk.bf16.gmra.mxu2 %vm396_vm0, %v374_v43 }
  0x84   : > { %1177 = vmatmul.msk.bf16.gmra.mxu0 %vm396_vm0, %v367_v50  ;;  %1185 = vmatmul.msk.bf16.gmra.mxu2 %vm396_vm0, %v375_v51 }
  0x91   : > { %v454_v52 = vpop.f32.mrf.mxu0 }
  0x92   : > { %v455_v54 = vadd.f32 %v1503_v53, %v454_v52 }
  0x94   : > { %v534_v57 = vmax.f32 %v455_v54, 0.0 }
  0x97   : > { %v494_v55 = vpop.f32.mrf.mxu2 }
  0x98   : > { %v495_v61 = vadd.f32 %v1503_v53, %v494_v55 }
  0x99   : > { %v456_v56 = vpop.f32.mrf.mxu0 }
  0x9a   : > { %v457_v58 = vadd.f32 %v1503_v53, %v456_v56  ;;  %v550_v1 = vmax.f32 %v495_v61, 0.0 }
  0x9c   : > { %v535_v59 = vmax.f32 %v457_v58, 0.0 }
  0x9e   : > { %v566_v60 = vpack.c.bf16 %v535_v59, %v534_v57 }
  0x9f   : > { %v496_v62 = vpop.f32.mrf.mxu2 }
  0xa0   : > { %1194 = vmatmul.msk.bf16.vlgmr.msra.gmra.mxu1 %vm396_vm0, %v566_v60  ;;  %v497_v63 = vadd.f32 %v1503_v53, %v496_v62 }
  0xa1   : > { %v459_v0 = vpop.f32.mrf.mxu0 }
  0xa2   : > { %v551_v2 = vmax.f32 %v497_v63, 0.0  ;;  %v460_v4 = vadd.f32 %v1503_v53, %v459_v0 }
  0xa4   : > { %v574_v3 = vpack.c.bf16 %v551_v2, %v550_v1  ;;  %v536_v7 = vmax.f32 %v460_v4, 0.0 }
  0xa6   : > { %1202 = vmatmul.msk.bf16.vlgmr.msra.gmra.mxu3 %vm396_vm0, %v574_v3 }
  0xa7   : > { %v499_v5 = vpop.f32.mrf.mxu2 }
  0xa8   : > { %v500_v11 = vadd.f32 %v1503_v53, %v499_v5 }
  0xa9   : > { %v461_v6 = vpop.f32.mrf.mxu0 }
  0xaa   : > { %v462_v8 = vadd.f32 %v1503_v53, %v461_v6  ;;  %v552_v15 = vmax.f32 %v500_v11, 0.0 }
  0xac   : > { %v537_v9 = vmax.f32 %v462_v8, 0.0 }
  0xae   : > { %v567_v10 = vpack.c.bf16 %v537_v9, %v536_v7 }
  0xaf   : > { %v501_v12 = vpop.f32.mrf.mxu2 }
  0xb0   : > { %1195 = vmatmul.msk.bf16.gmra.mxu1 %vm396_vm0, %v567_v10  ;;  %v502_v13 = vadd.f32 %v1503_v53, %v501_v12 }
  0xb1   : > { %v464_v14 = vpop.f32.mrf.mxu0 }
  0xb2   : > { %v553_v16 = vmax.f32 %v502_v13, 0.0  ;;  %v465_v18 = vadd.f32 %v1503_v53, %v464_v14 }
  0xb4   : > { %v575_v17 = vpack.c.bf16 %v553_v16, %v552_v15  ;;  %v538_v21 = vmax.f32 %v465_v18, 0.0 }
  0xb6   : > { %1203 = vmatmul.msk.bf16.gmra.mxu3 %vm396_vm0, %v575_v17 }
  0xb7   : > { %v504_v19 = vpop.f32.mrf.mxu2 }
  0xb8   : > { %v505_v25 = vadd.f32 %v1503_v53, %v504_v19 }
  0xb9   : > { %v466_v20 = vpop.f32.mrf.mxu0 }
  0xba   : > { %v467_v22 = vadd.f32 %v1503_v53, %v466_v20  ;;  %v554_v29 = vmax.f32 %v505_v25, 0.0 }
  0xbc   : > { %v539_v23 = vmax.f32 %v467_v22, 0.0 }
  0xbe   : > { %v568_v24 = vpack.c.bf16 %v539_v23, %v538_v21 }
  0xbf   : > { %v506_v26 = vpop.f32.mrf.mxu2 }
  0xc0   : > { %1196 = vmatmul.msk.bf16.gmra.mxu1 %vm396_vm0, %v568_v24  ;;  %v507_v27 = vadd.f32 %v1503_v53, %v506_v26 }
  0xc1   : > { %v469_v28 = vpop.f32.mrf.mxu0 }
  0xc2   : > { %v555_v30 = vmax.f32 %v507_v27, 0.0  ;;  %v470_v32 = vadd.f32 %v1503_v53, %v469_v28 }
  0xc4   : > { %v576_v31 = vpack.c.bf16 %v555_v30, %v554_v29  ;;  %v540_v35 = vmax.f32 %v470_v32, 0.0 }
  0xc6   : > { %1204 = vmatmul.msk.bf16.gmra.mxu3 %vm396_vm0, %v576_v31 }
  0xc7   : > { %v509_v33 = vpop.f32.mrf.mxu2 }
  0xc8   : > { %v510_v39 = vadd.f32 %v1503_v53, %v509_v33 }
  0xc9   : > { %v471_v34 = vpop.f32.mrf.mxu0 }
  0xca   : > { %v472_v36 = vadd.f32 %v1503_v53, %v471_v34  ;;  %v556_v43 = vmax.f32 %v510_v39, 0.0 }
  0xcc   : > { %v541_v37 = vmax.f32 %v472_v36, 0.0 }
  0xce   : > { %v569_v38 = vpack.c.bf16 %v541_v37, %v540_v35 }
  0xcf   : > { %v511_v40 = vpop.f32.mrf.mxu2 }
  0xd0   : > { %1197 = vmatmul.msk.bf16.gmra.mxu1 %vm396_vm0, %v569_v38  ;;  %v512_v41 = vadd.f32 %v1503_v53, %v511_v40 }
  0xd1   : > { %v474_v42 = vpop.f32.mrf.mxu0 }
  0xd2   : > { %v557_v44 = vmax.f32 %v512_v41, 0.0  ;;  %v475_v46 = vadd.f32 %v1503_v53, %v474_v42 }
  0xd4   : > { %v577_v45 = vpack.c.bf16 %v557_v44, %v556_v43  ;;  %v542_v49 = vmax.f32 %v475_v46, 0.0 }
  0xd6   : > { %1205 = vmatmul.msk.bf16.gmra.mxu3 %vm396_vm0, %v577_v45 }
  0xd7   : > { %v514_v47 = vpop.f32.mrf.mxu2 }
  0xd8   : > { %v515_v54 = vadd.f32 %v1503_v53, %v514_v47 }
  0xd9   : > { %v476_v48 = vpop.f32.mrf.mxu0 }
  0xda   : > { %v477_v50 = vadd.f32 %v1503_v53, %v476_v48  ;;  %v558_v58 = vmax.f32 %v515_v54, 0.0  ;;  %v1566_v54 = vld [vmem:[%s1751_s5] ss:$0 sm:$0xff] }
  0xdc   : > { %v543_v51 = vmax.f32 %v477_v50, 0.0 }
  0xde   : > { %v570_v52 = vpack.c.bf16 %v543_v51, %v542_v49 }
  0xdf   : > { %v516_v55 = vpop.f32.mrf.mxu2 }
  0xe0   : > { %1198 = vmatmul.msk.bf16.gmra.mxu1 %vm396_vm0, %v570_v52  ;;  %v517_v56 = vadd.f32 %v1503_v53, %v516_v55 }
  0xe1   : > { %v479_v57 = vpop.f32.mrf.mxu0 }
  0xe2   : > { %v559_v59 = vmax.f32 %v517_v56, 0.0  ;;  %v480_v61 = vadd.f32 %v1503_v53, %v479_v57 }
  0xe4   : > { %v578_v60 = vpack.c.bf16 %v559_v59, %v558_v58  ;;  %v544_v0 = vmax.f32 %v480_v61, 0.0 }
  0xe6   : > { %1206 = vmatmul.msk.bf16.gmra.mxu3 %vm396_vm0, %v578_v60 }
  0xe7   : > { %v519_v62 = vpop.f32.mrf.mxu2 }
  0xe8   : > { %v520_v4 = vadd.f32 %v1503_v53, %v519_v62 }
  0xe9   : > { %v481_v63 = vpop.f32.mrf.mxu0 }
  0xea   : > { %v482_v1 = vadd.f32 %v1503_v53, %v481_v63  ;;  %v560_v8 = vmax.f32 %v520_v4, 0.0 }
  0xec   : > { %v545_v2 = vmax.f32 %v482_v1, 0.0 }
  0xee   : > { %v571_v3 = vpack.c.bf16 %v545_v2, %v544_v0 }
  0xef   : > { %v521_v5 = vpop.f32.mrf.mxu2 }
  0xf0   : > { %1199 = vmatmul.msk.bf16.gmra.mxu1 %vm396_vm0, %v571_v3  ;;  %v522_v6 = vadd.f32 %v1503_v53, %v521_v5 }
  0xf1   : > { %v484_v7 = vpop.f32.mrf.mxu0 }
  0xf2   : > { %v561_v9 = vmax.f32 %v522_v6, 0.0  ;;  %v485_v11 = vadd.f32 %v1503_v53, %v484_v7 }
  0xf4   : > { %v579_v10 = vpack.c.bf16 %v561_v9, %v560_v8  ;;  %v546_v14 = vmax.f32 %v485_v11, 0.0 }
  0xf6   : > { %1207 = vmatmul.msk.bf16.gmra.mxu3 %vm396_vm0, %v579_v10 }
  0xf7   : > { %v524_v12 = vpop.f32.mrf.mxu2 }
  0xf8   : > { %v525_v18 = vadd.f32 %v1503_v53, %v524_v12 }
  0xf9   : > { %v486_v13 = vpop.f32.mrf.mxu0 }
  0xfa   : > { %v487_v15 = vadd.f32 %v1503_v53, %v486_v13  ;;  %v562_v22 = vmax.f32 %v525_v18, 0.0 }
  0xfc   : > { %v547_v16 = vmax.f32 %v487_v15, 0.0 }
  0xfe   : > { %v572_v17 = vpack.c.bf16 %v547_v16, %v546_v14 }
  0xff   : > { %v526_v19 = vpop.f32.mrf.mxu2 }
 0x100   : > { %1200 = vmatmul.msk.bf16.gmra.mxu1 %vm396_vm0, %v572_v17  ;;  %v527_v20 = vadd.f32 %v1503_v53, %v526_v19 }
 0x101   : > { %v489_v21 = vpop.f32.mrf.mxu0 }
 0x102   : > { %v563_v23 = vmax.f32 %v527_v20, 0.0  ;;  %v490_v25 = vadd.f32 %v1503_v53, %v489_v21 }
 0x104   : > { %v580_v24 = vpack.c.bf16 %v563_v23, %v562_v22  ;;  %v548_v28 = vmax.f32 %v490_v25, 0.0 }
 0x106   : > { %1208 = vmatmul.msk.bf16.gmra.mxu3 %vm396_vm0, %v580_v24 }
 0x107   : > { %v529_v26 = vpop.f32.mrf.mxu2 }
 0x108   : > { %v530_v32 = vadd.f32 %v1503_v53, %v529_v26 }
 0x109   : > { %v491_v27 = vpop.f32.mrf.mxu0 }
 0x10a   : > { %v492_v29 = vadd.f32 %v1503_v53, %v491_v27  ;;  %v564_v35 = vmax.f32 %v530_v32, 0.0 }
 0x10c   : > { %v549_v30 = vmax.f32 %v492_v29, 0.0 }
 0x10e   : > { %v573_v31 = vpack.c.bf16 %v549_v30, %v548_v28 }
 0x10f   : > { %v531_v33 = vpop.f32.mrf.mxu2 }
 0x110   : > { %1201 = vmatmul.msk.bf16.gmra.mxu1 %vm396_vm0, %v573_v31  ;;  %v532_v34 = vadd.f32 %v1503_v53, %v531_v33 }
 0x112   : > { %v565_v36 = vmax.f32 %v532_v34, 0.0 }
 0x114   : > { %v581_v37 = vpack.c.bf16 %v565_v36, %v564_v35 }
 0x116   : > { %1209 = vmatmul.msk.bf16.gmra.mxu3 %vm396_vm0, %v581_v37 }
 0x11d   : > { %v659_v38 = vpop.f32.mrf.mxu1 }
 0x11e   : > { %v660_v57 = vadd.f32 %v1566_v54, %v659_v38 }
 0x120   : > { %v739_v60 = vmul.f32 0.17677669, %v660_v57 }
 0x125   : > { %v661_v39 = vpop.f32.mrf.mxu1 }
 0x126   : > { %v662_v0 = vadd.f32 %v1566_v54, %v661_v39 }
 0x128   : > { %v740_v8 = vmul.f32 0.17677669, %v662_v0 }
 0x129   : > { %v699_v40 = vpop.f32.mrf.mxu3 }
 0x12a   : > { %v700_v61 = vadd.f32 %v1566_v54, %v699_v40 }
 0x12c   : > { %v755_v2 = vmul.f32 0.17677669, %v700_v61 }
 0x12d   : > { %v664_v41 = vpop.f32.mrf.mxu1 }
 0x12e   : > { %v665_v16 = vadd.f32 %v1566_v54, %v664_v41  ;;  %v827_v41 = vld [vmem:[%s1589_s19] sm:$0xff] }
 0x130   : > { %v1595_v35 = vmul.f32 0.17677669, %v665_v16 }
 0x131   : > { %v701_v42 = vpop.f32.mrf.mxu3 }
 0x132   : > { %v702_v9 = vadd.f32 %v1566_v54, %v701_v42 }
 0x134   : > { %v756_v17 = vmul.f32 0.17677669, %v702_v9 }
 0x135   : > { %v666_v43 = vpop.f32.mrf.mxu1 }
 0x136   : > { %v667_v18 = vadd.f32 %v1566_v54, %v666_v43 }
 0x138   : > { %v1597_v36 = vmul.f32 0.17677669, %v667_v18 }
 0x139   : > { %v704_v44 = vpop.f32.mrf.mxu3 }
 0x13a   : > { %v705_v25 = vadd.f32 %v1566_v54, %v704_v44 }
 0x13c   : > { %v1599_v38 = vmul.f32 0.17677669, %v705_v25  ;;  %v1211_v25 = vld [vmem:[%s1589_s19 + $0x48] sm:$0xff] }
 0x13d   : > { %v669_v45 = vpop.f32.mrf.mxu1 }
 0x13e   : > { %v670_v26 = vadd.f32 %v1566_v54, %v669_v45 }
 0x140   : > { %v1601_v39 = vmul.f32 0.17677669, %v670_v26 }
 0x141   : > { %v706_v46 = vpop.f32.mrf.mxu3 }
 0x142   : > { %v707_v28 = vadd.f32 %v1566_v54, %v706_v46 }
 0x144   : > { %v1606_v46 = vmul.f32 0.17677669, %v707_v28 }
 0x145   : > { %v671_v47 = vpop.f32.mrf.mxu1 }
 0x146   : > { %v672_v32 = vadd.f32 %v1566_v54, %v671_v47 }
 0x148   : > { %v1608_v47 = vmul.f32 0.17677669, %v672_v32 }
 0x149   : > { %v1553_v48 = vpop.f32.mrf.mxu3 }
 0x14d   : > { %v1555_v49 = vpop.f32.mrf.mxu1 }
 0x151   : > { %v1557_v53 = vpop.f32.mrf.mxu3 }
 0x155   : > { %v1559_v50 = vpop.f32.mrf.mxu1 }
 0x159   : > { %v1561_v51 = vpop.f32.mrf.mxu3 }
 0x15d   : > { %v679_v52 = vpop.f32.mrf.mxu1 }
 0x15e   : > { %v680_v55 = vadd.f32 %v1566_v54, %v679_v52  ;;  %v1210_v52 = vld [vmem:[%s1589_s19 + $0x40] sm:$0xff] }
 0x160   : > { %v747_v58 = vmul.f32 0.17677669, %v680_v55  ;;  %v1218_v55 = vld [vmem:[%s1589_s19 + $0x80] sm:$0xff] }
 0x161   : > { %v1569_v56 = vpop.f32.mrf.mxu3 }
 0x162   : > { %v771_v63 = vmax.f32 %v739_v60, %v747_v58 }
 0x164   : > { %v779_v6 = vmax.f32 %v771_v63, %v755_v2 }
 0x165   : > { %v681_v59 = vpop.f32.mrf.mxu1 }
 0x166   : > { %v682_v62 = vadd.f32 %v1566_v54, %v681_v59 }
 0x168   : > { %v748_v4 = vmul.f32 0.17677669, %v682_v62 }
 0x169   : > { %v719_v1 = vpop.f32.mrf.mxu3 }
 0x16a   : > { %v720_v3 = vadd.f32 %v1566_v54, %v719_v1  ;;  %v772_v11 = vmax.f32 %v740_v8, %v748_v4  ;;  %v710_v1 = vadd.f32 %v1566_v54, %v1553_v48 }
 0x16c   : > { %v763_v5 = vmul.f32 0.17677669, %v720_v3  ;;  %v780_v30 = vmax.f32 %v772_v11, %v756_v17  ;;  %v1226_v3 = vld [vmem:[%s1589_s19 + $0xc0] sm:$0xff] }
 0x16d   : > { %v684_v7 = vpop.f32.mrf.mxu1 }
 0x16e   : > { %v787_v10 = vmax.f32 %v779_v6, %v763_v5  ;;  %v685_v19 = vadd.f32 %v1566_v54, %v684_v7 }
 0x170   : > { %v795_v12 = vsub.f32 %v739_v60, %v787_v10  ;;  %v851_v13 = vsub.f32 %v747_v58, %v787_v10  ;;  %v908_v14 = vsub.f32 %v755_v2, %v787_v10  ;;  %v965_v15 = vsub.f32 %v763_v5, %v787_v10 }
 0x171   : > { %v721_v20 = vpop.f32.mrf.mxu3  ;;  %v1592_v33 = vmul.f32 0.17677669, %v685_v19 }
 0x172   : > { %v803_v21 = vmul.f32 1.442695, %v795_v12  ;;  %v859_v22 = vmul.f32 1.442695, %v851_v13  ;;  %v916_v23 = vmul.f32 1.442695, %v908_v14  ;;  %v722_v24 = vadd.f32 %v1566_v54, %v721_v20 }
 0x173   : > { %v973_v27 = vmul.f32 1.442695, %v965_v15  ;;  %v773_v57 = vmax.f32 %v1595_v35, %v1592_v33  ;;  %v712_v20 = vadd.f32 %v1566_v54, %v1557_v53  ;;  %v1227_v53 = vld [vmem:[%s1589_s19 + $0xc8] sm:$0xff] }
 0x174   : > { %1273 = vpow2.f32 %v803_v21  ;;  %v764_v29 = vmul.f32 0.17677669, %v722_v24 }
 0x175   : > { %v686_v31 = vpop.f32.mrf.mxu1  ;;  %1275 = vpow2.f32 %v859_v22  ;;  %v781_v13 = vmax.f32 %v773_v57, %v1599_v38 }
 0x176   : > { %v687_v34 = vadd.f32 %v1566_v54, %v686_v31  ;;  %1277 = vpow2.f32 %v916_v23  ;;  %v788_v37 = vmax.f32 %v780_v30, %v764_v29  ;;  %v828_v23 = vld [vmem:[%s1589_s19 + $0x8] sm:$0xff] }
 0x177   : > { %1279 = vpow2.f32 %v973_v27 }
 0x178   : > { %v1603_v40 = vmul.f32 0.17677669, %v687_v34  ;;  %v796_v42 = vsub.f32 %v740_v8, %v788_v37  ;;  %v852_v43 = vsub.f32 %v748_v4, %v788_v37  ;;  %v909_v44 = vsub.f32 %v756_v17, %v788_v37  ;;  %v1219_v34 = vld [vmem:[%s1589_s19 + $0x88] sm:$0xff] }
 0x179   : > { %v966_v45 = vsub.f32 %v764_v29, %v788_v37  ;;  %v724_v58 = vpop.f32.mrf.mxu3  ;;  %v1622_v17 = vmul.f32 0.17677669, %v710_v1 }
 0x17a   : > { %v1274_v59 = vpop.eup %1273  ;;  %v805_v60 = vmul.f32 1.442695, %v796_v42  ;;  %v861_v61 = vmul.f32 1.442695, %v852_v43  ;;  %v918_v62 = vmul.f32 1.442695, %v909_v44  ;;  %v725_v63 = vadd.f32 %v1566_v54, %v724_v58 }
 0x17b   : > { %v1276_v0 = vpop.eup %1275  ;;  %v835_v2 = vmul.f32 %v1274_v59, %v827_v41  ;;  %v975_v4 = vmul.f32 1.442695, %v966_v45  ;;  %v774_v5 = vmax.f32 %v1597_v36, %v1603_v40 }
 0x17c   : > { %v1278_v6 = vpop.eup %1277  ;;  %v875_v7 = vadd.f32 %v1276_v0, %v1274_v59  ;;  %v892_v8 = vmul.f32 %v1276_v0, %v1210_v52  ;;  %1281 = vpow2.f32 %v805_v60  ;;  %v765_v9 = vmul.f32 0.17677669, %v725_v63 }
 0x17d   : > { %v689_v10 = vpop.f32.mrf.mxu1  ;;  %v1280_v11 = vpop.eup %1279  ;;  %v949_v12 = vmul.f32 %v1278_v6, %v1218_v55  ;;  %1283 = vpow2.f32 %v861_v61  ;;  %v782_v24 = vmax.f32 %v774_v5, %v1606_v46 }
 0x17e   : > { %v690_v48 = vadd.f32 %v1566_v54, %v689_v10  ;;  %v900_v14 = vadd.f32 %v892_v8, %v835_v2  ;;  %v932_v15 = vadd.f32 %v1278_v6, %v875_v7  ;;  %v1006_v16 = vmul.f32 %v1280_v11, %v1226_v3 }
 0x17f   : > { %1285 = vpow2.f32 %v918_v62  ;;  %v789_v18 = vmax.f32 %v781_v13, %v765_v9  ;;  %v675_v2 = vadd.f32 %v1566_v54, %v1555_v49  ;;  %v1646_v6 = vmul.f32 0.17677669, %v712_v20  ;;  %v829_v49 = vld [vmem:[%s1589_s19 + $0x10] sm:$0xff] }
 0x180   : > { %1287 = vpow2.f32 %v975_v4  ;;  %v1624_v19 = vmul.f32 0.17677669, %v690_v48  ;;  %v957_v21 = vadd.f32 %v949_v12, %v900_v14  ;;  %v989_v22 = vadd.f32 %v1280_v11, %v932_v15  ;;  %v1212_v14 = vld [vmem:[%s1589_s19 + $0x50] sm:$0xff] }
 0x181   : > { %v797_v26 = vsub.f32 %v1595_v35, %v789_v18  ;;  %v853_v27 = vsub.f32 %v1592_v33, %v789_v18  ;;  %v910_v28 = vsub.f32 %v1599_v38, %v789_v18  ;;  %v967_v29 = vsub.f32 %v765_v9, %v789_v18  ;;  %v726_v30 = vpop.f32.mrf.mxu3 }
 0x182   : > { %v1282_v31 = vpop.eup %1281  ;;  %v1014_v32 = vadd.f32 %v1006_v16, %v957_v21  ;;  %1289 = vrcp.f32 %v989_v22  ;;  %v775_v37 = vmax.f32 %v1601_v39, %v1624_v19  ;;  %v727_v41 = vadd.f32 %v1566_v54, %v726_v30 }
 0x183   : > { %v1284_v42 = vpop.eup %1283  ;;  %v836_v43 = vmul.f32 %v1282_v31, %v828_v23  ;;  %v807_v35 = vmul.f32 1.442695, %v797_v26  ;;  %v863_v44 = vmul.f32 1.442695, %v853_v27  ;;  %v920_v33 = vmul.f32 1.442695, %v910_v28 }
 0x184   : > { %v876_v38 = vadd.f32 %v1284_v42, %v1282_v31  ;;  %v893_v52 = vmul.f32 %v1284_v42, %v1211_v25  ;;  %v977_v55 = vmul.f32 1.442695, %v967_v29  ;;  %v766_v57 = vmul.f32 0.17677669, %v727_v41 }
 0x185   : > { %v1286_v45 = vpop.eup %1285  ;;  %v691_v58 = vpop.f32.mrf.mxu1  ;;  %1291 = vpow2.f32 %v807_v35  ;;  %v783_v62 = vmax.f32 %v775_v37, %v1622_v17  ;;  %v715_v20 = vadd.f32 %v1566_v54, %v1561_v51 }
 0x186   : > { %v1288_v59 = vpop.eup %1287  ;;  %v950_v60 = vmul.f32 %v1286_v45, %v1219_v34  ;;  %v692_v61 = vadd.f32 %v1566_v54, %v691_v58  ;;  %v901_v63 = vadd.f32 %v893_v52, %v836_v43  ;;  %v933_v0 = vadd.f32 %v1286_v45, %v876_v38  ;;  %v830_v58 = vld [vmem:[%s1589_s19 + $0x18] sm:$0xff] }
 0x187   : > { %v1007_v1 = vmul.f32 %v1288_v59, %v1227_v53  ;;  %1293 = vpow2.f32 %v863_v44  ;;  %v790_v3 = vmax.f32 %v782_v24, %v766_v57  ;;  %v1228_v24 = vld [vmem:[%s1589_s19 + $0xd0] sm:$0xff]  ;;  %v1668_v34 = vmul.f32 0.17677669, %v675_v2  ;;  %v1221_v2 = vld [vmem:[%s1589_s19 + $0x98] sm:$0xff] }
 0x188   : > { %1295 = vpow2.f32 %v920_v33  ;;  %v1644_v4 = vmul.f32 0.17677669, %v692_v61  ;;  %v1290_v5 = vpop.eup %1289  ;;  %v958_v7 = vadd.f32 %v950_v60, %v901_v63  ;;  %v990_v8 = vadd.f32 %v1288_v59, %v933_v0  ;;  %v1213_v60 = vld [vmem:[%s1589_s19 + $0x58] sm:$0xff] }
 0x189   : > { %1297 = vpow2.f32 %v977_v55  ;;  %v1030_v9 = vmul.f32 %v1290_v5, %v1014_v32  ;;  %v798_v10 = vsub.f32 %v1597_v36, %v790_v3  ;;  %v854_v11 = vsub.f32 %v1603_v40, %v790_v3  ;;  %v729_v13 = vpop.f32.mrf.mxu3  ;;  %v1220_v36 = vld [vmem:[%s1589_s19 + $0x90] sm:$0xff] }
 0x18a   : > { %v911_v12 = vsub.f32 %v1606_v46, %v790_v3  ;;  %v1015_v48 = vadd.f32 %v1007_v1, %v958_v7  ;;  %1299 = vrcp.f32 %v990_v8  ;;  %v968_v15 = vsub.f32 %v766_v57, %v790_v3  ;;  %v1229_v3 = vld [vmem:[%s1589_s19 + $0xd8] sm:$0xff] }
 0x18b   : > { %v776_v16 = vmax.f32 %v1608_v47, %v1644_v4  ;;  %v1292_v18 = vpop.eup %1291  ;;  %1038 = vst.msk [vmem:[%s1651_s26] sm:$0xff] %vm396_vm0, %v1030_v9  ;;  %v809_v21 = vmul.f32 1.442695, %v798_v10  ;;  %v865_v40 = vmul.f32 1.442695, %v854_v11  ;;  %v730_v46 = vadd.f32 %v1566_v54, %v729_v13 }
 0x18c   : > { %v837_v23 = vmul.f32 %v1292_v18, %v829_v49  ;;  %v922_v25 = vmul.f32 1.442695, %v911_v12  ;;  %v979_v26 = vmul.f32 1.442695, %v968_v15  ;;  %v677_v44 = vadd.f32 %v1566_v54, %v1559_v50 }
 0x18d   : > { %v1294_v22 = vpop.eup %1293  ;;  %v694_v27 = vpop.f32.mrf.mxu1  ;;  %v784_v28 = vmax.f32 %v776_v16, %v1646_v6  ;;  %1301 = vpow2.f32 %v809_v21  ;;  %v767_v51 = vmul.f32 0.17677669, %v730_v46  ;;  %v1675_v38 = vmul.f32 0.17677669, %v715_v20 }
 0x18e   : > { %v1296_v29 = vpop.eup %1295  ;;  %v877_v30 = vadd.f32 %v1294_v22, %v1292_v18  ;;  %v894_v31 = vmul.f32 %v1294_v22, %v1212_v14  ;;  %1303 = vpow2.f32 %v865_v40  ;;  %v695_v37 = vadd.f32 %v1566_v54, %v694_v27  ;;  %v831_v27 = vld [vmem:[%s1589_s19 + $0x20] sm:$0xff] }
 0x18f   : > { %v1298_v32 = vpop.eup %1297  ;;  %v951_v53 = vmul.f32 %v1296_v29, %v1220_v36  ;;  %1305 = vpow2.f32 %v922_v25  ;;  %v791_v33 = vmax.f32 %v783_v62, %v767_v51  ;;  %v1691_v22 = vmul.f32 0.17677669, %v677_v44 }
 0x190   : > { %v902_v41 = vadd.f32 %v894_v31, %v837_v23  ;;  %v934_v42 = vadd.f32 %v1296_v29, %v877_v30  ;;  %v1008_v43 = vmul.f32 %v1298_v32, %v1228_v24  ;;  %v1300_v35 = vpop.eup %1299  ;;  %1307 = vpow2.f32 %v979_v26 }
 0x191   : > { %v1673_v45 = vmul.f32 0.17677669, %v695_v37  ;;  %v1031_v52 = vmul.f32 %v1300_v35, %v1015_v48  ;;  %v731_v59 = vpop.f32.mrf.mxu3  ;;  %v799_v61 = vsub.f32 %v1601_v39, %v791_v33  ;;  %v855_v63 = vsub.f32 %v1624_v19, %v791_v33 }
 0x192   : > { %v959_v55 = vadd.f32 %v951_v53, %v902_v41  ;;  %v991_v57 = vadd.f32 %v1298_v32, %v934_v42  ;;  %v912_v50 = vsub.f32 %v1622_v17, %v791_v33  ;;  %v969_v0 = vsub.f32 %v767_v51, %v791_v33  ;;  %v1222_v41 = vld [vmem:[%s1589_s19 + $0xa0] sm:$0xff] }
 0x193   : > { %v1302_v62 = vpop.eup %1301  ;;  %1039 = vst.msk [vmem:[%s1651_s26 + $0x8] sm:$0xff] %vm396_vm0, %v1031_v52  ;;  %v777_v5 = vmax.f32 %v1668_v34, %v1673_v45  ;;  %v732_v7 = vadd.f32 %v1566_v54, %v731_v59  ;;  %v811_v39 = vmul.f32 1.442695, %v799_v61  ;;  %v867_v49 = vmul.f32 1.442695, %v855_v63 }
 0x194   : > { %v1016_v1 = vadd.f32 %v1008_v43, %v959_v55  ;;  %1309 = vrcp.f32 %v991_v57  ;;  %v1304_v8 = vpop.eup %1303  ;;  %v838_v9 = vmul.f32 %v1302_v62, %v830_v58  ;;  %v924_v19 = vmul.f32 1.442695, %v912_v50 }
 0x195   : > { %v696_v10 = vpop.f32.mrf.mxu1  ;;  %v1306_v17 = vpop.eup %1305  ;;  %v878_v11 = vadd.f32 %v1304_v8, %v1302_v62  ;;  %v895_v12 = vmul.f32 %v1304_v8, %v1213_v60  ;;  %v981_v13 = vmul.f32 1.442695, %v969_v0  ;;  %v768_v48 = vmul.f32 0.17677669, %v732_v7 }
 0x196   : > { %v1308_v14 = vpop.eup %1307  ;;  %v952_v15 = vmul.f32 %v1306_v17, %v1221_v2  ;;  %1311 = vpow2.f32 %v811_v39  ;;  %v697_v16 = vadd.f32 %v1566_v54, %v696_v10  ;;  %v785_v18 = vmax.f32 %v777_v5, %v1675_v38 }
 0x197   : > { %v903_v20 = vadd.f32 %v895_v12, %v838_v9  ;;  %v935_v36 = vadd.f32 %v1306_v17, %v878_v11  ;;  %v1009_v21 = vmul.f32 %v1308_v14, %v1229_v3  ;;  %1313 = vpow2.f32 %v867_v49  ;;  %v832_v9 = vld [vmem:[%s1589_s19 + $0x28] sm:$0xff] }
 0x198   : > { %1315 = vpow2.f32 %v924_v19  ;;  %v792_v40 = vmax.f32 %v784_v28, %v768_v48  ;;  %v1214_v28 = vld [vmem:[%s1589_s19 + $0x60] sm:$0xff]  ;;  %v1698_v53 = vmul.f32 0.17677669, %v697_v16  ;;  %v1215_v49 = vld [vmem:[%s1589_s19 + $0x68] sm:$0xff] }
 0x199   : > { %v960_v23 = vadd.f32 %v952_v15, %v903_v20  ;;  %v992_v24 = vadd.f32 %v1308_v14, %v935_v36  ;;  %1317 = vpow2.f32 %v981_v13  ;;  %v734_v25 = vpop.f32.mrf.mxu3  ;;  %v1231_v14 = vld [vmem:[%s1589_s19 + $0xe8] sm:$0xff] }
 0x19a   : > { %v1310_v46 = vpop.eup %1309  ;;  %v800_v29 = vsub.f32 %v1608_v47, %v792_v40  ;;  %v856_v30 = vsub.f32 %v1644_v4, %v792_v40  ;;  %v913_v31 = vsub.f32 %v1646_v6, %v792_v40  ;;  %v970_v32 = vsub.f32 %v768_v48, %v792_v40  ;;  %v1230_v6 = vld [vmem:[%s1589_s19 + $0xe0] sm:$0xff]  ;;  %v1223_v48 = vld [vmem:[%s1589_s19 + $0xa8] sm:$0xff] }
 0x19b   : > { %v1032_v26 = vmul.f32 %v1310_v46, %v1016_v1  ;;  %v1017_v51 = vadd.f32 %v1009_v21, %v960_v23  ;;  %1319 = vrcp.f32 %v992_v24  ;;  %v735_v35 = vadd.f32 %v1566_v54, %v734_v25 }
 0x19c   : > { %v1312_v37 = vpop.eup %1311  ;;  %v813_v42 = vmul.f32 1.442695, %v800_v29  ;;  %v869_v43 = vmul.f32 1.442695, %v856_v30  ;;  %v717_v4 = vadd.f32 %v1566_v54, %v1569_v56  ;;  %v926_v33 = vmul.f32 1.442695, %v913_v31 }
 0x19d   : > { %1040 = vst.msk [vmem:[%s1651_s26 + $0x10] sm:$0xff] %vm396_vm0, %v1032_v26  ;;  %v1314_v47 = vpop.eup %1313  ;;  %v839_v44 = vmul.f32 %v1312_v37, %v831_v27  ;;  %v983_v52 = vmul.f32 1.442695, %v970_v32  ;;  %v769_v59 = vmul.f32 0.17677669, %v735_v35  ;;  %v778_v63 = vmax.f32 %v1691_v22, %v1698_v53 }
 0x19e   : > { %v1316_v55 = vpop.eup %1315  ;;  %v879_v57 = vadd.f32 %v1314_v47, %v1312_v37  ;;  %v896_v58 = vmul.f32 %v1314_v47, %v1214_v28  ;;  %1321 = vpow2.f32 %v813_v42  ;;  %v762_v1 = vmul.f32 0.17677669, %v717_v4  ;;  %v833_v37 = vld [vmem:[%s1589_s19 + $0x30] sm:$0xff] }
 0x19f   : > { %v1318_v60 = vpop.eup %1317  ;;  %v953_v61 = vmul.f32 %v1316_v55, %v1222_v41  ;;  %1323 = vpow2.f32 %v869_v43  ;;  %v793_v2 = vmax.f32 %v785_v18, %v769_v59 }
 0x1a0   : > { %v904_v50 = vadd.f32 %v896_v58, %v839_v44  ;;  %v936_v0 = vadd.f32 %v1316_v55, %v879_v57  ;;  %v1010_v56 = vmul.f32 %v1318_v60, %v1230_v6  ;;  %1325 = vpow2.f32 %v926_v33  ;;  %v1216_v44 = vld [vmem:[%s1589_s19 + $0x70] sm:$0xff] }
 0x1a1   : > { %v1320_v62 = vpop.eup %1319  ;;  %1327 = vpow2.f32 %v983_v52  ;;  %v736_v3 = vpop.f32.mrf.mxu3  ;;  %v801_v19 = vsub.f32 %v1668_v34, %v793_v2  ;;  %v857_v10 = vsub.f32 %v1673_v45, %v793_v2  ;;  %v914_v17 = vsub.f32 %v1675_v38, %v793_v2  ;;  %v1232_v55 = vld [vmem:[%s1589_s19 + $0xf0] sm:$0xff] }
 0x1a2   : > { %v1033_v5 = vmul.f32 %v1320_v62, %v1017_v51  ;;  %v961_v7 = vadd.f32 %v953_v61, %v904_v50  ;;  %v993_v8 = vadd.f32 %v1318_v60, %v936_v0  ;;  %v737_v39 = vadd.f32 %v1566_v54, %v736_v3 }
 0x1a3   : > { %v971_v11 = vsub.f32 %v769_v59, %v793_v2  ;;  %v786_v16 = vmax.f32 %v778_v63, %v762_v1  ;;  %v815_v54 = vmul.f32 1.442695, %v801_v19  ;;  %v871_v36 = vmul.f32 1.442695, %v857_v10 }
 0x1a4   : > { %v1322_v12 = vpop.eup %1321  ;;  %1041 = vst.msk [vmem:[%s1651_s26 + $0x18] sm:$0xff] %vm396_vm0, %v1033_v5  ;;  %v1018_v13 = vadd.f32 %v1010_v56, %v961_v7  ;;  %1329 = vrcp.f32 %v993_v8  ;;  %v770_v15 = vmul.f32 0.17677669, %v737_v39  ;;  %v928_v21 = vmul.f32 1.442695, %v914_v17  ;;  %v834_v56 = vld [vmem:[%s1589_s19 + $0x38] sm:$0xff] }
 0x1a5   : > { %v1324_v18 = vpop.eup %1323  ;;  %v840_v20 = vmul.f32 %v1322_v12, %v832_v9  ;;  %v985_v46 = vmul.f32 1.442695, %v971_v11  ;;  %1331 = vpow2.f32 %v815_v54  ;;  %v1225_v8 = vld [vmem:[%s1589_s19 + $0xb8] sm:$0xff] }
 0x1a6   : > { %v1326_v34 = vpop.eup %1325  ;;  %v880_v40 = vadd.f32 %v1324_v18, %v1322_v12  ;;  %v897_v45 = vmul.f32 %v1324_v18, %v1215_v49  ;;  %v794_v38 = vmax.f32 %v786_v16, %v770_v15  ;;  %1333 = vpow2.f32 %v871_v36  ;;  %v1233_v49 = vld [vmem:[%s1589_s19 + $0xf8] sm:$0xff] }
 0x1a7   : > { %v1328_v23 = vpop.eup %1327  ;;  %v954_v24 = vmul.f32 %v1326_v34, %v1223_v48  ;;  %1335 = vpow2.f32 %v928_v21 }
 0x1a8   : > { %v905_v25 = vadd.f32 %v897_v45, %v840_v20  ;;  %v937_v26 = vadd.f32 %v1326_v34, %v880_v40  ;;  %v1011_v27 = vmul.f32 %v1328_v23, %v1231_v14  ;;  %v802_v29 = vsub.f32 %v1691_v22, %v794_v38 }
 0x1a9   : > { %v858_v30 = vsub.f32 %v1698_v53, %v794_v38  ;;  %v915_v31 = vsub.f32 %v762_v1, %v794_v38  ;;  %1337 = vpow2.f32 %v985_v46  ;;  %v972_v41 = vsub.f32 %v770_v15, %v794_v38  ;;  %v1224_v53 = vld [vmem:[%s1589_s19 + $0xb0] sm:$0xff]  ;;  %v1217_v1 = vld [vmem:[%s1589_s19 + $0x78] sm:$0xff] }
 0x1aa   : > { %v1330_v51 = vpop.eup %1329  ;;  %v962_v28 = vadd.f32 %v954_v24, %v905_v25  ;;  %v994_v32 = vadd.f32 %v1328_v23, %v937_v26  ;;  %v817_v43 = vmul.f32 1.442695, %v802_v29 }
 0x1ab   : > { %v1034_v42 = vmul.f32 %v1330_v51, %v1018_v13  ;;  %v873_v35 = vmul.f32 1.442695, %v858_v30  ;;  %v930_v47 = vmul.f32 1.442695, %v915_v31  ;;  %v987_v22 = vmul.f32 1.442695, %v972_v41  ;;  %v1332_v6 = vpop.eup %1331 }
 0x1ac   : > { %v1019_v4 = vadd.f32 %v1011_v27, %v962_v28  ;;  %1339 = vrcp.f32 %v994_v32  ;;  %v1334_v33 = vpop.eup %1333  ;;  %v841_v52 = vmul.f32 %v1332_v6, %v833_v37 }
 0x1ad   : > { %1042 = vst.msk [vmem:[%s1651_s26 + $0x20] sm:$0xff] %vm396_vm0, %v1034_v42  ;;  %1341 = vpow2.f32 %v817_v43  ;;  %v1336_v57 = vpop.eup %1335  ;;  %v881_v58 = vadd.f32 %v1334_v33, %v1332_v6  ;;  %v898_v59 = vmul.f32 %v1334_v33, %v1216_v44 }
 0x1ae   : > { %1343 = vpow2.f32 %v873_v35  ;;  %v955_v61 = vmul.f32 %v1336_v57, %v1224_v53 }
 0x1af   : > { %1345 = vpow2.f32 %v930_v47  ;;  %v1338_v60 = vpop.eup %1337  ;;  %v906_v63 = vadd.f32 %v898_v59, %v841_v52  ;;  %v938_v50 = vadd.f32 %v1336_v57, %v881_v58 }
 0x1b0   : > { %1347 = vpow2.f32 %v987_v22  ;;  %v1012_v0 = vmul.f32 %v1338_v60, %v1232_v55 }
 0x1b1   : > { %v963_v5 = vadd.f32 %v955_v61, %v906_v63  ;;  %v995_v7 = vadd.f32 %v1338_v60, %v938_v50 }
 0x1b2   : > { %v1340_v62 = vpop.eup %1339 }
 0x1b3   : > { %v1342_v2 = vpop.eup %1341  ;;  %v1035_v3 = vmul.f32 %v1340_v62, %v1019_v4  ;;  %v1020_v10 = vadd.f32 %v1012_v0, %v963_v5  ;;  %1349 = vrcp.f32 %v995_v7 }
 0x1b4   : > { %v1344_v9 = vpop.eup %1343  ;;  %v842_v39 = vmul.f32 %v1342_v2, %v834_v56 }
 0x1b5   : > { %v1346_v19 = vpop.eup %1345  ;;  %1043 = vst.msk [vmem:[%s1651_s26 + $0x28] sm:$0xff] %vm396_vm0, %v1035_v3  ;;  %v882_v17 = vadd.f32 %v1344_v9, %v1342_v2  ;;  %v899_v11 = vmul.f32 %v1344_v9, %v1217_v1 }
 0x1b6   : > { %v1348_v12 = vpop.eup %1347  ;;  %v956_v13 = vmul.f32 %v1346_v19, %v1225_v8 }
 0x1b7   : > { %v907_v48 = vadd.f32 %v899_v11, %v842_v39  ;;  %v939_v14 = vadd.f32 %v1346_v19, %v882_v17  ;;  %v1013_v15 = vmul.f32 %v1348_v12, %v1233_v49 }
 0x1b9   : > { %v964_v16 = vadd.f32 %v956_v13, %v907_v48  ;;  %v996_v18 = vadd.f32 %v1348_v12, %v939_v14  ;;  %v1350_v20 = vpop.eup %1349 }
 0x1ba   : > { %v1036_v36 = vmul.f32 %v1350_v20, %v1020_v10 }
 0x1bb   : > { %v1021_v54 = vadd.f32 %v1013_v15, %v964_v16  ;;  %1351 = vrcp.f32 %v996_v18 }
 0x1bc   : > { %1044 = vst.msk [vmem:[%s1651_s26 + $0x30] sm:$0xff] %vm396_vm0, %v1036_v36 }
 0x1c1   : > { %v1352_v21 = vpop.eup %1351 }
 0x1c2   : > { %v1037_v34 = vmul.f32 %v1352_v21, %v1021_v54 }
 0x1c4   : > { %1045 = vst.msk [vmem:[%s1651_s26 + $0x38] sm:$0xff] %vm396_vm0, %v1037_v34 }
 0x1c5 PF: > { %s16_s23 = sadd.s32 1, %s1375_s23   ;;  %s1753_s21 = smov %s1371_s22 }
 0x1c6   : > { %p13_p5 = scmp.ge.s32.totalorder %s16_s23, 4   ;;  %s1754_s22 = smov %s1756_s24 }
 0x1c8   :  { %15 = sbr.rel (!%p13_p5) target bundleno = 2 (0x2), region = 80 }

// kernel: custom-call.34
= control target key start
LH: loop header
LB: loop body
LE: loop exit
PB: predicated region body
PF: predicated region fallthrough
CT: control target
= control target key end

     0   :  { %s6_s0 = inlined_call_operand.vmem [shape: f32[2,64], index: 0, kind: output, shape index: {}]  }

// kernel: _lambda_.22
= control target key start
LH: loop header
LB: loop body
LE: loop exit
PB: predicated region body
PF: predicated region fallthrough
CT: control target
= control target key end

     0   :  { %vm91_vm0 = vcmask 261120   ;;  %s375_s1 = inlined_call_operand.vmem [shape: bf16[32,32], index: 1, kind: input, shape index: {}]   ;;  %s376_s0 = inlined_call_operand.vmem [shape: bf16[128,32], index: 0, kind: input, shape index: {}]   ;;  %s377_s2 = inlined_call_operand.vmem [shape: f32[1,32], index: 2, kind: input, shape index: {}]   ;;  %s378_s3 = inlined_call_operand.vmem [shape: f32[128,32], index: 3, kind: output, shape index: {}]  }
   0x1   :  { %v242_v0 = vld [vmem:[%s375_s1 + $0x8] sm:$0xff]  ;;  %v241_v1 = vld [vmem:[%s375_s1] sm:$0xff]  ;;  %v235_v3 = vld [vmem:[%s376_s0 + $0x10] sm:$0xff] }
   0x2   :  { %122 = vmatpush.bf16.msra.mxu0 %v242_v0  ;;  %243 = vmatpush.bf16.msra.mxu1 %v242_v0  ;;  %v233_v2 = vld [vmem:[%s376_s0] sm:$0xff]  ;;  %v239_v5 = vld [vmem:[%s376_s0 + $0x30] sm:$0xff]  ;;  %v234_v6 = vld [vmem:[%s376_s0 + $0x8] sm:$0xff] }
   0x3   :  { %244 = vmatpush.bf16.msra.mxu2 %v242_v0  ;;  %245 = vmatpush.bf16.msra.mxu3 %v242_v0  ;;  %v237_v4 = vld [vmem:[%s376_s0 + $0x20] sm:$0xff]  ;;  %v236_v7 = vld [vmem:[%s376_s0 + $0x18] sm:$0xff]  ;;  %v238_v8 = vld [vmem:[%s376_s0 + $0x28] sm:$0xff] }
   0x4   :  { %v240_v9 = vld [vmem:[%s376_s0 + $0x38] sm:$0xff]  ;;  %v249_v10 = vld [vmem:[%s377_s2] ss:$0 sm:$0xff] }
   0x6   :  { %123 = vmatpush.bf16.msra.mxu0 %v241_v1  ;;  %246 = vmatpush.bf16.msra.mxu1 %v241_v1 }
   0x7   :  { %247 = vmatpush.bf16.msra.mxu2 %v241_v1  ;;  %248 = vmatpush.bf16.msra.mxu3 %v241_v1 }
   0x9   :  { %225 = vmatmul.msk.bf16.vlgmr.msra.gmra.mxu0 %vm91_vm0, %v233_v2  ;;  %227 = vmatmul.msk.bf16.vlgmr.msra.gmra.mxu1 %vm91_vm0, %v235_v3 }
   0xa   :  { %229 = vmatmul.msk.bf16.vlgmr.msra.gmra.mxu2 %vm91_vm0, %v237_v4  ;;  %231 = vmatmul.msk.bf16.vlgmr.msra.gmra.mxu3 %vm91_vm0, %v239_v5 }
  0x19   :  { %226 = vmatmul.msk.bf16.gmra.mxu0 %vm91_vm0, %v234_v6  ;;  %228 = vmatmul.msk.bf16.gmra.mxu1 %vm91_vm0, %v236_v7 }
  0x1a   :  { %230 = vmatmul.msk.bf16.gmra.mxu2 %vm91_vm0, %v238_v8  ;;  %232 = vmatmul.msk.bf16.gmra.mxu3 %vm91_vm0, %v240_v9 }
  0x86   :  { %v125_v11 = vpop.f32.mrf.mxu0  ;;  %v135_v12 = vpop.f32.mrf.mxu1 }
  0x87   :  { %v126_v13 = vadd.f32 %v249_v10, %v125_v11  ;;  %v136_v14 = vadd.f32 %v249_v10, %v135_v12 }
  0x89   :  { %165 = vst.msk [vmem:[%s378_s3] sm:$0xff] %vm91_vm0, %v126_v13 }
  0x8a   :  { %169 = vst.msk [vmem:[%s378_s3 + $0x20] sm:$0xff] %vm91_vm0, %v136_v14 }
  0x8d   :  { %v145_v15 = vpop.f32.mrf.mxu2  ;;  %v155_v16 = vpop.f32.mrf.mxu3 }
  0x8e   :  { %v146_v17 = vadd.f32 %v249_v10, %v145_v15  ;;  %v156_v18 = vadd.f32 %v249_v10, %v155_v16  ;;  %v127_v19 = vpop.f32.mrf.mxu0  ;;  %v137_v20 = vpop.f32.mrf.mxu1 }
  0x8f   :  { %v128_v21 = vadd.f32 %v249_v10, %v127_v19  ;;  %v138_v22 = vadd.f32 %v249_v10, %v137_v20 }
  0x90   :  { %173 = vst.msk [vmem:[%s378_s3 + $0x40] sm:$0xff] %vm91_vm0, %v146_v17 }
  0x91   :  { %177 = vst.msk [vmem:[%s378_s3 + $0x60] sm:$0xff] %vm91_vm0, %v156_v18 }
  0x92   :  { %166 = vst.msk [vmem:[%s378_s3 + $0x8] sm:$0xff] %vm91_vm0, %v128_v21 }
  0x93   :  { %170 = vst.msk [vmem:[%s378_s3 + $0x28] sm:$0xff] %vm91_vm0, %v138_v22 }
  0x95   :  { %v147_v23 = vpop.f32.mrf.mxu2  ;;  %v157_v24 = vpop.f32.mrf.mxu3 }
  0x96   :  { %v148_v25 = vadd.f32 %v249_v10, %v147_v23  ;;  %v158_v26 = vadd.f32 %v249_v10, %v157_v24  ;;  %v130_v27 = vpop.f32.mrf.mxu0  ;;  %v140_v28 = vpop.f32.mrf.mxu1 }
  0x97   :  { %v131_v29 = vadd.f32 %v249_v10, %v130_v27  ;;  %v141_v30 = vadd.f32 %v249_v10, %v140_v28 }
  0x98   :  { %174 = vst.msk [vmem:[%s378_s3 + $0x48] sm:$0xff] %vm91_vm0, %v148_v25 }
  0x99   :  { %178 = vst.msk [vmem:[%s378_s3 + $0x68] sm:$0xff] %vm91_vm0, %v158_v26 }
  0x9a   :  { %167 = vst.msk [vmem:[%s378_s3 + $0x10] sm:$0xff] %vm91_vm0, %v131_v29 }
  0x9b   :  { %171 = vst.msk [vmem:[%s378_s3 + $0x30] sm:$0xff] %vm91_vm0, %v141_v30 }
  0x9d   :  { %v150_v31 = vpop.f32.mrf.mxu2  ;;  %v160_v32 = vpop.f32.mrf.mxu3 }
  0x9e   :  { %v151_v33 = vadd.f32 %v249_v10, %v150_v31  ;;  %v161_v34 = vadd.f32 %v249_v10, %v160_v32  ;;  %v132_v35 = vpop.f32.mrf.mxu0  ;;  %v142_v36 = vpop.f32.mrf.mxu1 }
  0x9f   :  { %v133_v37 = vadd.f32 %v249_v10, %v132_v35  ;;  %v143_v38 = vadd.f32 %v249_v10, %v142_v36 }
  0xa0   :  { %175 = vst.msk [vmem:[%s378_s3 + $0x50] sm:$0xff] %vm91_vm0, %v151_v33 }
  0xa1   :  { %179 = vst.msk [vmem:[%s378_s3 + $0x70] sm:$0xff] %vm91_vm0, %v161_v34 }
  0xa2   :  { %168 = vst.msk [vmem:[%s378_s3 + $0x18] sm:$0xff] %vm91_vm0, %v133_v37 }
  0xa3   :  { %172 = vst.msk [vmem:[%s378_s3 + $0x38] sm:$0xff] %vm91_vm0, %v143_v38 }
  0xa5   :  { %v152_v39 = vpop.f32.mrf.mxu2  ;;  %v162_v40 = vpop.f32.mrf.mxu3 }
  0xa6   :  { %v153_v41 = vadd.f32 %v249_v10, %v152_v39  ;;  %v163_v42 = vadd.f32 %v249_v10, %v162_v40 }
  0xa8   :  { %176 = vst.msk [vmem:[%s378_s3 + $0x58] sm:$0xff] %vm91_vm0, %v153_v41 }
  0xa9   :  { %180 = vst.msk [vmem:[%s378_s3 + $0x78] sm:$0xff] %vm91_vm0, %v163_v42 }

// kernel: neg.6
= control target key start
LH: loop header
LB: loop body
LE: loop exit
PB: predicated region body
PF: predicated region fallthrough
CT: control target
= control target key end

     0   :  { %s72_s0 = inlined_call_operand.vmem [shape: f32[2,16,64], index: 0, kind: input, shape index: {}]   ;;  %s73_s1 = inlined_call_operand.vmem [shape: f32[2,16,64], index: 1, kind: output, shape index: {}]  }
   0x1   :  { %v2_v0 = vld [vmem:[%s72_s0] sm:$0xff]  ;;  %v32_v1 = vld [vmem:[%s72_s0 + $0x10] sm:$0xff]  ;;  %v34_v2 = vld [vmem:[%s72_s0 + $0x8] sm:$0xff] }
   0x2   :  { %v5_v3 = vxor.u32 2147483648, %v2_v0  ;;  %v12_v4 = vxor.u32 2147483648, %v32_v1  ;;  %v20_v5 = vxor.u32 2147483648, %v34_v2  ;;  %v36_v6 = vld [vmem:[%s72_s0 + $0x18] sm:$0xff] }
   0x3   :  { %v28_v7 = vxor.u32 2147483648, %v36_v6 }
   0x4   :  { %7 = vst [vmem:[%s73_s1] sm:$0xff] %v5_v3 }
   0x5   :  { %33 = vst [vmem:[%s73_s1 + $0x10] sm:$0xff] %v12_v4 }
   0x6   :  { %35 = vst [vmem:[%s73_s1 + $0x8] sm:$0xff] %v20_v5 }
   0x7   :  { %37 = vst [vmem:[%s73_s1 + $0x18] sm:$0xff] %v28_v7 }

// kernel: _lambda_.23
= control target key start
LH: loop header
LB: loop body
LE: loop exit
PB: predicated region body
PF: predicated region fallthrough
CT: control target
= control target key end

     0   :  { %vm120_vm0 = vcmask 1040384   ;;  %vm121_vm1 = vcmask 1041408   ;;  %v266_v1 = vmov 65535   ;;  %vm95_vm2 = vcmask 285696   ;;  %s395_s1 = inlined_call_operand.vmem [shape: bf16[35,64], index: 1, kind: input, shape index: {}]   ;;  %s396_s2 = inlined_call_operand.vmem [shape: f32[1,64], index: 2, kind: input, shape index: {}]   ;;  %s397_s0 = inlined_call_operand.vmem [shape: bf16[128,35], index: 0, kind: input, shape index: {}]   ;;  %s398_s3 = inlined_call_operand.vmem [shape: f32[128,64], index: 3, kind: output, shape index: {}]  }
   0x1   :  { %v35_v0 = vld [vmem:[%s395_s1 + $0x10] sm:$0x3]  ;;  %v122_v2 = vsel %vm120_vm0, 4294967295, %v266_v1  ;;  %v254_v7 = vld [vmem:[%s395_s1 + $0x8] sm:$0xff]  ;;  %v253_v8 = vld [vmem:[%s395_s1] sm:$0xff]  ;;  %vm176_vm3 = vcmask 523264  }
   0x2   :  { %v89_v3 = vunpack.c.l.b16 %v35_v0  ;;  %v123_v4 = vsel %vm121_vm1, %v122_v2, 0  ;;  %v245_v9 = vld [vmem:[%s397_s0] sm:$0xff]  ;;  %v247_v10 = vld [vmem:[%s397_s0 + $0x10] sm:$0xff]  ;;  %v246_v13 = vld [vmem:[%s397_s0 + $0x8] sm:$0xff] }
   0x3   :  { %v249_v11 = vld [vmem:[%s397_s0 + $0x20] sm:$0xff]  ;;  %v251_v12 = vld [vmem:[%s397_s0 + $0x30] sm:$0xff]  ;;  %v248_v14 = vld [vmem:[%s397_s0 + $0x18] sm:$0xff] }
   0x4   :  { %v92_v5 = vpack.c.b16 %v89_v3, %v89_v3  ;;  %v250_v15 = vld [vmem:[%s397_s0 + $0x28] sm:$0xff]  ;;  %v252_v16 = vld [vmem:[%s397_s0 + $0x38] sm:$0xff]  ;;  %v265_v17 = vld [vmem:[%s396_s2] ss:$0 sm:$0xff] }
   0x6   :  { %v125_v6 = vand.u32 %v123_v4, %v92_v5 }
   0x8   :  { %132 = vmatpush.bf16.msra.mxu0 %v125_v6  ;;  %255 = vmatpush.bf16.msra.mxu1 %v125_v6 }
   0x9   :  { %256 = vmatpush.bf16.msra.mxu2 %v125_v6  ;;  %257 = vmatpush.bf16.msra.mxu3 %v125_v6 }
   0xc   :  { %133 = vmatpush.bf16.msra.mxu0 %v254_v7  ;;  %258 = vmatpush.bf16.msra.mxu1 %v254_v7 }
   0xd   :  { %259 = vmatpush.bf16.msra.mxu2 %v254_v7  ;;  %260 = vmatpush.bf16.msra.mxu3 %v254_v7 }
  0x10   :  { %134 = vmatpush.bf16.msra.mxu0 %v253_v8  ;;  %261 = vmatpush.bf16.msra.mxu1 %v253_v8 }
  0x11   :  { %262 = vmatpush.bf16.msra.mxu2 %v253_v8  ;;  %263 = vmatpush.bf16.msra.mxu3 %v253_v8 }
  0x13   :  { %237 = vmatmul.msk.bf16.vlgmr.msra.gmra.mxu0 %vm95_vm2, %v245_v9  ;;  %239 = vmatmul.msk.bf16.vlgmr.msra.gmra.mxu1 %vm95_vm2, %v247_v10 }
  0x14   :  { %241 = vmatmul.msk.bf16.vlgmr.msra.gmra.mxu2 %vm95_vm2, %v249_v11  ;;  %243 = vmatmul.msk.bf16.vlgmr.msra.gmra.mxu3 %vm95_vm2, %v251_v12 }
  0x23   :  { %238 = vmatmul.msk.bf16.gmra.mxu0 %vm95_vm2, %v246_v13  ;;  %240 = vmatmul.msk.bf16.gmra.mxu1 %vm95_vm2, %v248_v14 }
  0x24   :  { %242 = vmatmul.msk.bf16.gmra.mxu2 %vm95_vm2, %v250_v15  ;;  %244 = vmatmul.msk.bf16.gmra.mxu3 %vm95_vm2, %v252_v16 }
  0x90   :  { %v136_v18 = vpop.f32.mrf.mxu0  ;;  %v146_v19 = vpop.f32.mrf.mxu1 }
  0x91   :  { %v137_v20 = vadd.f32 %v265_v17, %v136_v18  ;;  %v147_v21 = vadd.f32 %v265_v17, %v146_v19 }
  0x93   :  { %177 = vst.msk [vmem:[%s398_s3] sm:$0xff] %vm176_vm3, %v137_v20 }
  0x94   :  { %181 = vst.msk [vmem:[%s398_s3 + $0x20] sm:$0xff] %vm176_vm3, %v147_v21 }
  0x97   :  { %v156_v22 = vpop.f32.mrf.mxu2  ;;  %v166_v23 = vpop.f32.mrf.mxu3 }
  0x98   :  { %v157_v24 = vadd.f32 %v265_v17, %v156_v22  ;;  %v167_v25 = vadd.f32 %v265_v17, %v166_v23  ;;  %v138_v26 = vpop.f32.mrf.mxu0  ;;  %v148_v27 = vpop.f32.mrf.mxu1 }
  0x99   :  { %v139_v28 = vadd.f32 %v265_v17, %v138_v26  ;;  %v149_v29 = vadd.f32 %v265_v17, %v148_v27 }
  0x9a   :  { %185 = vst.msk [vmem:[%s398_s3 + $0x40] sm:$0xff] %vm176_vm3, %v157_v24 }
  0x9b   :  { %189 = vst.msk [vmem:[%s398_s3 + $0x60] sm:$0xff] %vm176_vm3, %v167_v25 }
  0x9c   :  { %178 = vst.msk [vmem:[%s398_s3 + $0x8] sm:$0xff] %vm176_vm3, %v139_v28 }
  0x9d   :  { %182 = vst.msk [vmem:[%s398_s3 + $0x28] sm:$0xff] %vm176_vm3, %v149_v29 }
  0x9f   :  { %v158_v30 = vpop.f32.mrf.mxu2  ;;  %v168_v31 = vpop.f32.mrf.mxu3 }
  0xa0   :  { %v159_v32 = vadd.f32 %v265_v17, %v158_v30  ;;  %v169_v33 = vadd.f32 %v265_v17, %v168_v31  ;;  %v141_v34 = vpop.f32.mrf.mxu0  ;;  %v151_v35 = vpop.f32.mrf.mxu1 }
  0xa1   :  { %v142_v36 = vadd.f32 %v265_v17, %v141_v34  ;;  %v152_v37 = vadd.f32 %v265_v17, %v151_v35 }
  0xa2   :  { %186 = vst.msk [vmem:[%s398_s3 + $0x48] sm:$0xff] %vm176_vm3, %v159_v32 }
  0xa3   :  { %190 = vst.msk [vmem:[%s398_s3 + $0x68] sm:$0xff] %vm176_vm3, %v169_v33 }
  0xa4   :  { %179 = vst.msk [vmem:[%s398_s3 + $0x10] sm:$0xff] %vm176_vm3, %v142_v36 }
  0xa5   :  { %183 = vst.msk [vmem:[%s398_s3 + $0x30] sm:$0xff] %vm176_vm3, %v152_v37 }
  0xa7   :  { %v161_v38 = vpop.f32.mrf.mxu2  ;;  %v171_v39 = vpop.f32.mrf.mxu3 }
  0xa8   :  { %v162_v40 = vadd.f32 %v265_v17, %v161_v38  ;;  %v172_v41 = vadd.f32 %v265_v17, %v171_v39  ;;  %v143_v42 = vpop.f32.mrf.mxu0  ;;  %v153_v43 = vpop.f32.mrf.mxu1 }
  0xa9   :  { %v144_v44 = vadd.f32 %v265_v17, %v143_v42  ;;  %v154_v45 = vadd.f32 %v265_v17, %v153_v43 }
  0xaa   :  { %187 = vst.msk [vmem:[%s398_s3 + $0x50] sm:$0xff] %vm176_vm3, %v162_v40 }
  0xab   :  { %191 = vst.msk [vmem:[%s398_s3 + $0x70] sm:$0xff] %vm176_vm3, %v172_v41 }
  0xac   :  { %180 = vst.msk [vmem:[%s398_s3 + $0x18] sm:$0xff] %vm176_vm3, %v144_v44 }
  0xad   :  { %184 = vst.msk [vmem:[%s398_s3 + $0x38] sm:$0xff] %vm176_vm3, %v154_v45 }
  0xaf   :  { %v163_v46 = vpop.f32.mrf.mxu2  ;;  %v173_v47 = vpop.f32.mrf.mxu3 }
  0xb0   :  { %v164_v48 = vadd.f32 %v265_v17, %v163_v46  ;;  %v174_v49 = vadd.f32 %v265_v17, %v173_v47 }
  0xb2   :  { %188 = vst.msk [vmem:[%s398_s3 + $0x58] sm:$0xff] %vm176_vm3, %v164_v48 }
  0xb3   :  { %192 = vst.msk [vmem:[%s398_s3 + $0x78] sm:$0xff] %vm176_vm3, %v174_v49 }

// kernel: neg.7
= control target key start
LH: loop header
LB: loop body
LE: loop exit
PB: predicated region body
PF: predicated region fallthrough
CT: control target
= control target key end

     0   :  { %s72_s0 = inlined_call_operand.vmem [shape: f32[2,16,16], index: 0, kind: input, shape index: {}]   ;;  %s73_s1 = inlined_call_operand.vmem [shape: f32[2,16,16], index: 1, kind: output, shape index: {}]  }
   0x1   :  { %v2_v0 = vld [vmem:[%s72_s0] sm:$0xff]  ;;  %v32_v1 = vld [vmem:[%s72_s0 + $0x10] sm:$0xff]  ;;  %v34_v2 = vld [vmem:[%s72_s0 + $0x8] sm:$0xff] }
   0x2   :  { %v5_v3 = vxor.u32 2147483648, %v2_v0  ;;  %v12_v4 = vxor.u32 2147483648, %v32_v1  ;;  %v20_v5 = vxor.u32 2147483648, %v34_v2  ;;  %v36_v6 = vld [vmem:[%s72_s0 + $0x18] sm:$0xff] }
   0x3   :  { %v28_v7 = vxor.u32 2147483648, %v36_v6 }
   0x4   :  { %7 = vst [vmem:[%s73_s1] sm:$0xff] %v5_v3 }
   0x5   :  { %33 = vst [vmem:[%s73_s1 + $0x10] sm:$0xff] %v12_v4 }
   0x6   :  { %35 = vst [vmem:[%s73_s1 + $0x8] sm:$0xff] %v20_v5 }
   0x7   :  { %37 = vst [vmem:[%s73_s1 + $0x18] sm:$0xff] %v28_v7 }

// kernel: _lambda_.24
= control target key start
LH: loop header
LB: loop body
LE: loop exit
PB: predicated region body
PF: predicated region fallthrough
CT: control target
= control target key end

     0   :  { %vm107_vm0 = vcmask 523264   ;;  %s413_s1 = inlined_call_operand.vmem [shape: bf16[64,64], index: 1, kind: input, shape index: {}]   ;;  %s414_s2 = inlined_call_operand.vmem [shape: f32[1,64], index: 2, kind: input, shape index: {}]   ;;  %s415_s0 = inlined_call_operand.vmem [shape: bf16[128,64], index: 0, kind: input, shape index: {}]   ;;  %s416_s3 = inlined_call_operand.vmem [shape: f32[128,64], index: 3, kind: output, shape index: {}]  }
   0x1   :  { %v268_v0 = vld [vmem:[%s413_s1 + $0x18] sm:$0xff]  ;;  %v267_v1 = vld [vmem:[%s413_s1 + $0x10] sm:$0xff]  ;;  %v266_v2 = vld [vmem:[%s413_s1 + $0x8] sm:$0xff] }
   0x2   :  { %136 = vmatpush.bf16.msra.mxu0 %v268_v0  ;;  %269 = vmatpush.bf16.msra.mxu1 %v268_v0  ;;  %v265_v3 = vld [vmem:[%s413_s1] sm:$0xff]  ;;  %v259_v5 = vld [vmem:[%s415_s0 + $0x10] sm:$0xff]  ;;  %v258_v8 = vld [vmem:[%s415_s0 + $0x8] sm:$0xff] }
   0x3   :  { %270 = vmatpush.bf16.msra.mxu2 %v268_v0  ;;  %271 = vmatpush.bf16.msra.mxu3 %v268_v0  ;;  %v257_v4 = vld [vmem:[%s415_s0] sm:$0xff]  ;;  %v263_v7 = vld [vmem:[%s415_s0 + $0x30] sm:$0xff]  ;;  %v260_v9 = vld [vmem:[%s415_s0 + $0x18] sm:$0xff] }
   0x4   :  { %v261_v6 = vld [vmem:[%s415_s0 + $0x20] sm:$0xff]  ;;  %v262_v10 = vld [vmem:[%s415_s0 + $0x28] sm:$0xff]  ;;  %v264_v11 = vld [vmem:[%s415_s0 + $0x38] sm:$0xff] }
   0x5   :  { %v281_v12 = vld [vmem:[%s414_s2] ss:$0 sm:$0xff] }
   0x6   :  { %137 = vmatpush.bf16.msra.mxu0 %v267_v1  ;;  %272 = vmatpush.bf16.msra.mxu1 %v267_v1 }
   0x7   :  { %273 = vmatpush.bf16.msra.mxu2 %v267_v1  ;;  %274 = vmatpush.bf16.msra.mxu3 %v267_v1 }
   0xa   :  { %138 = vmatpush.bf16.msra.mxu0 %v266_v2  ;;  %275 = vmatpush.bf16.msra.mxu1 %v266_v2 }
   0xb   :  { %276 = vmatpush.bf16.msra.mxu2 %v266_v2  ;;  %277 = vmatpush.bf16.msra.mxu3 %v266_v2 }
   0xe   :  { %139 = vmatpush.bf16.msra.mxu0 %v265_v3  ;;  %278 = vmatpush.bf16.msra.mxu1 %v265_v3 }
   0xf   :  { %279 = vmatpush.bf16.msra.mxu2 %v265_v3  ;;  %280 = vmatpush.bf16.msra.mxu3 %v265_v3 }
  0x11   :  { %249 = vmatmul.msk.bf16.vlgmr.msra.gmra.mxu0 %vm107_vm0, %v257_v4  ;;  %251 = vmatmul.msk.bf16.vlgmr.msra.gmra.mxu1 %vm107_vm0, %v259_v5 }
  0x12   :  { %253 = vmatmul.msk.bf16.vlgmr.msra.gmra.mxu2 %vm107_vm0, %v261_v6  ;;  %255 = vmatmul.msk.bf16.vlgmr.msra.gmra.mxu3 %vm107_vm0, %v263_v7 }
  0x21   :  { %250 = vmatmul.msk.bf16.gmra.mxu0 %vm107_vm0, %v258_v8  ;;  %252 = vmatmul.msk.bf16.gmra.mxu1 %vm107_vm0, %v260_v9 }
  0x22   :  { %254 = vmatmul.msk.bf16.gmra.mxu2 %vm107_vm0, %v262_v10  ;;  %256 = vmatmul.msk.bf16.gmra.mxu3 %vm107_vm0, %v264_v11 }
  0x8e   :  { %v141_v13 = vpop.f32.mrf.mxu0  ;;  %v151_v14 = vpop.f32.mrf.mxu1 }
  0x8f   :  { %v142_v15 = vadd.f32 %v281_v12, %v141_v13  ;;  %v152_v16 = vadd.f32 %v281_v12, %v151_v14 }
  0x91   :  { %181 = vst.msk [vmem:[%s416_s3] sm:$0xff] %vm107_vm0, %v142_v15 }
  0x92   :  { %185 = vst.msk [vmem:[%s416_s3 + $0x20] sm:$0xff] %vm107_vm0, %v152_v16 }
  0x95   :  { %v161_v17 = vpop.f32.mrf.mxu2  ;;  %v171_v18 = vpop.f32.mrf.mxu3 }
  0x96   :  { %v162_v19 = vadd.f32 %v281_v12, %v161_v17  ;;  %v172_v20 = vadd.f32 %v281_v12, %v171_v18  ;;  %v143_v21 = vpop.f32.mrf.mxu0  ;;  %v153_v22 = vpop.f32.mrf.mxu1 }
  0x97   :  { %v144_v23 = vadd.f32 %v281_v12, %v143_v21  ;;  %v154_v24 = vadd.f32 %v281_v12, %v153_v22 }
  0x98   :  { %189 = vst.msk [vmem:[%s416_s3 + $0x40] sm:$0xff] %vm107_vm0, %v162_v19 }
  0x99   :  { %193 = vst.msk [vmem:[%s416_s3 + $0x60] sm:$0xff] %vm107_vm0, %v172_v20 }
  0x9a   :  { %182 = vst.msk [vmem:[%s416_s3 + $0x8] sm:$0xff] %vm107_vm0, %v144_v23 }
  0x9b   :  { %186 = vst.msk [vmem:[%s416_s3 + $0x28] sm:$0xff] %vm107_vm0, %v154_v24 }
  0x9d   :  { %v163_v25 = vpop.f32.mrf.mxu2  ;;  %v173_v26 = vpop.f32.mrf.mxu3 }
  0x9e   :  { %v164_v27 = vadd.f32 %v281_v12, %v163_v25  ;;  %v174_v28 = vadd.f32 %v281_v12, %v173_v26  ;;  %v146_v29 = vpop.f32.mrf.mxu0  ;;  %v156_v30 = vpop.f32.mrf.mxu1 }
  0x9f   :  { %v147_v31 = vadd.f32 %v281_v12, %v146_v29  ;;  %v157_v32 = vadd.f32 %v281_v12, %v156_v30 }
  0xa0   :  { %190 = vst.msk [vmem:[%s416_s3 + $0x48] sm:$0xff] %vm107_vm0, %v164_v27 }
  0xa1   :  { %194 = vst.msk [vmem:[%s416_s3 + $0x68] sm:$0xff] %vm107_vm0, %v174_v28 }
  0xa2   :  { %183 = vst.msk [vmem:[%s416_s3 + $0x10] sm:$0xff] %vm107_vm0, %v147_v31 }
  0xa3   :  { %187 = vst.msk [vmem:[%s416_s3 + $0x30] sm:$0xff] %vm107_vm0, %v157_v32 }
  0xa5   :  { %v166_v33 = vpop.f32.mrf.mxu2  ;;  %v176_v34 = vpop.f32.mrf.mxu3 }
  0xa6   :  { %v167_v35 = vadd.f32 %v281_v12, %v166_v33  ;;  %v177_v36 = vadd.f32 %v281_v12, %v176_v34  ;;  %v148_v37 = vpop.f32.mrf.mxu0  ;;  %v158_v38 = vpop.f32.mrf.mxu1 }
  0xa7   :  { %v149_v39 = vadd.f32 %v281_v12, %v148_v37  ;;  %v159_v40 = vadd.f32 %v281_v12, %v158_v38 }
  0xa8   :  { %191 = vst.msk [vmem:[%s416_s3 + $0x50] sm:$0xff] %vm107_vm0, %v167_v35 }
  0xa9   :  { %195 = vst.msk [vmem:[%s416_s3 + $0x70] sm:$0xff] %vm107_vm0, %v177_v36 }
  0xaa   :  { %184 = vst.msk [vmem:[%s416_s3 + $0x18] sm:$0xff] %vm107_vm0, %v149_v39 }
  0xab   :  { %188 = vst.msk [vmem:[%s416_s3 + $0x38] sm:$0xff] %vm107_vm0, %v159_v40 }
  0xad   :  { %v168_v41 = vpop.f32.mrf.mxu2  ;;  %v178_v42 = vpop.f32.mrf.mxu3 }
  0xae   :  { %v169_v43 = vadd.f32 %v281_v12, %v168_v41  ;;  %v179_v44 = vadd.f32 %v281_v12, %v178_v42 }
  0xb0   :  { %192 = vst.msk [vmem:[%s416_s3 + $0x58] sm:$0xff] %vm107_vm0, %v169_v43 }
  0xb1   :  { %196 = vst.msk [vmem:[%s416_s3 + $0x78] sm:$0xff] %vm107_vm0, %v179_v44 }

// kernel: _lambda_.25
= control target key start
LH: loop header
LB: loop body
LE: loop exit
PB: predicated region body
PF: predicated region fallthrough
CT: control target
= control target key end

     0   :  { %vm68_vm0 = vcmask 523264   ;;  %vm112_vm1 = vcmask 261120   ;;  %vm138_vm2 = vcmask 785408   ;;  %s262_s1 = inlined_call_operand.vmem [shape: bf16[64,32], index: 1, kind: input, shape index: {}]   ;;  %s263_s2 = inlined_call_operand.vmem [shape: f32[1,32], index: 2, kind: input, shape index: {}]   ;;  %s264_s0 = inlined_call_operand.vmem [shape: bf16[32,64], index: 0, kind: input, shape index: {}]   ;;  %s265_s3 = inlined_call_operand.vmem [shape: bf16[32,96], index: 3, kind: input, shape index: {}]   ;;  %s266_s4 = inlined_call_operand.vmem [shape: f32[32,96], index: 4, kind: output, shape index: {}]  }
   0x1   :  { %v188_v0 = vld [vmem:[%s262_s1 + $0x18] sm:$0xff]  ;;  %v187_v1 = vld [vmem:[%s262_s1 + $0x10] sm:$0xff]  ;;  %v186_v2 = vld [vmem:[%s262_s1 + $0x8] sm:$0xff] }
   0x2   :  { %79 = vmatpush.bf16.msra.mxu0 %v188_v0  ;;  %191 = vmatpush.bf16.msra.mxu2 %v188_v0  ;;  %v185_v3 = vld [vmem:[%s262_s1] sm:$0xff]  ;;  %v184_v5 = vld [vmem:[%s264_s0 + $0x8] sm:$0xff] }
   0x3   :  { %v183_v4 = vld [vmem:[%s264_s0] sm:$0xff]  ;;  %v190_v6 = vld [vmem:[%s265_s3 + $0x8] sm:$0xff] }
   0x4   :  { %125 = vmatpush.bf16.msra.mxu1 %v190_v6  ;;  %195 = vmatpush.bf16.msra.mxu3 %v190_v6  ;;  %v189_v7 = vld [vmem:[%s265_s3] sm:$0xff] }
   0x5   :  { %v197_v9 = vld [vmem:[%s263_s2] ss:$0 sm:$0xff] }
   0x6   :  { %80 = vmatpush.bf16.msra.mxu0 %v187_v1  ;;  %192 = vmatpush.bf16.msra.mxu2 %v187_v1 }
   0x8   :  { %126 = vmatpush.bf16.msra.mxu1 %v189_v7  ;;  %196 = vmatpush.bf16.msra.mxu3 %v189_v7 }
   0xa   :  { %81 = vmatpush.bf16.msra.mxu0 %v186_v2  ;;  %193 = vmatpush.bf16.msra.mxu2 %v186_v2 }
   0xe   :  { %82 = vmatpush.bf16.msra.mxu0 %v185_v3  ;;  %194 = vmatpush.bf16.msra.mxu2 %v185_v3 }
  0x11   :  { %171 = vmatmul.msk.bf16.vlgmr.msra.gmra.mxu0 %vm68_vm0, %v183_v4  ;;  %172 = vmatmul.msk.bf16.vlgmr.msra.gmra.mxu2 %vm68_vm0, %v184_v5 }
  0x8e   :  { %v84_v8 = vpop.f32.mrf.mxu0 }
  0x8f   :  { %v85_v11 = vadd.f32 %v197_v9, %v84_v8 }
  0x94   :  { %v89_v10 = vpop.f32.mrf.mxu2 }
  0x95   :  { %v90_v16 = vadd.f32 %v197_v9, %v89_v10 }
  0x96   :  { %v86_v12 = vpop.f32.mrf.mxu0 }
  0x97   :  { %v87_v13 = vadd.f32 %v197_v9, %v86_v12 }
  0x99   :  { %v98_v14 = vpack.c.bf16 %v87_v13, %v85_v11 }
  0x9b   :  { %181 = vmatmul.msk.bf16.vlgmr.msra.gmra.mxu1 %vm112_vm1, %v98_v14 }
  0x9c   :  { %v91_v15 = vpop.f32.mrf.mxu2 }
  0x9d   :  { %v92_v17 = vadd.f32 %v197_v9, %v91_v15 }
  0x9f   :  { %v99_v18 = vpack.c.bf16 %v92_v17, %v90_v16 }
  0xa1   :  { %182 = vmatmul.msk.bf16.vlgmr.msra.gmra.mxu3 %vm112_vm1, %v99_v18 }
 0x118   :  { %v128_v19 = vpop.f32.mrf.mxu1 }
 0x119   :  { %139 = vst.msk [vmem:[%s266_s4] sm:$0xff] %vm138_vm2, %v128_v19 }
 0x120   :  { %v130_v20 = vpop.f32.mrf.mxu1 }
 0x121   :  { %140 = vst.msk [vmem:[%s266_s4 + $0x8] sm:$0xff] %vm138_vm2, %v130_v20 }
 0x124   :  { %v133_v21 = vpop.f32.mrf.mxu3 }
 0x125   :  { %141 = vst.msk [vmem:[%s266_s4 + $0x10] sm:$0xff] %vm138_vm2, %v133_v21 }
 0x12c   :  { %v135_v22 = vpop.f32.mrf.mxu3 }
 0x12d   :  { %142 = vst.msk [vmem:[%s266_s4 + $0x18] sm:$0xff] %vm138_vm2, %v135_v22 }

// kernel: custom-call.35
= control target key start
LH: loop header
LB: loop body
LE: loop exit
PB: predicated region body
PF: predicated region fallthrough
CT: control target
= control target key end

     0   :  { %s6_s0 = inlined_call_operand.vmem [shape: f32[2,16], index: 0, kind: output, shape index: {}]  }

// kernel: neg.8
= control target key start
LH: loop header
LB: loop body
LE: loop exit
PB: predicated region body
PF: predicated region fallthrough
CT: control target
= control target key end

     0   :  { %s40_s0 = inlined_call_operand.vmem [shape: f32[2,4,16], index: 0, kind: input, shape index: {}]   ;;  %s41_s1 = inlined_call_operand.vmem [shape: f32[2,4,16], index: 1, kind: output, shape index: {}]  }
   0x1   :  { %v2_v0 = vld [vmem:[%s40_s0] sm:$0xf]  ;;  %v16_v1 = vld [vmem:[%s40_s0 + $0x4] sm:$0xf] }
   0x2   :  { %v5_v2 = vxor.u32 2147483648, %v2_v0  ;;  %v12_v3 = vxor.u32 2147483648, %v16_v1 }
   0x4   :  { %7 = vst [vmem:[%s41_s1] sm:$0xf] %v5_v2 }
   0x5   :  { %17 = vst [vmem:[%s41_s1 + $0x4] sm:$0xf] %v12_v3 }

// kernel: _lambda_.28
= control target key start
LH: loop header
LB: loop body
LE: loop exit
PB: predicated region body
PF: predicated region fallthrough
CT: control target
= control target key end

     0   :  { %vm49_vm0 = vcmask 261120   ;;  %vm75_vm1 = vcmask 523264   ;;  %s156_s1 = inlined_call_operand.vmem [shape: bf16[32,64], index: 1, kind: input, shape index: {}]   ;;  %s157_s2 = inlined_call_operand.vmem [shape: f32[1,64], index: 2, kind: input, shape index: {}]   ;;  %s158_s0 = inlined_call_operand.vmem [shape: bf16[32,32], index: 0, kind: input, shape index: {}]   ;;  %s159_s3 = inlined_call_operand.vmem [shape: f32[32,64], index: 3, kind: output, shape index: {}]  }
   0x1   :  { %v105_v0 = vld [vmem:[%s156_s1 + $0x8] sm:$0xff]  ;;  %v104_v1 = vld [vmem:[%s156_s1] sm:$0xff] }
   0x2   :  { %62 = vmatpush.bf16.msra.mxu0 %v105_v0  ;;  %106 = vmatpush.bf16.msra.mxu1 %v105_v0  ;;  %v102_v2 = vld [vmem:[%s158_s0] sm:$0xff]  ;;  %v103_v3 = vld [vmem:[%s158_s0 + $0x8] sm:$0xff] }
   0x3   :  { %v108_v4 = vld [vmem:[%s157_s2] ss:$0 sm:$0xff] }
   0x6   :  { %63 = vmatpush.bf16.msra.mxu0 %v104_v1  ;;  %107 = vmatpush.bf16.msra.mxu1 %v104_v1 }
   0x9   :  { %100 = vmatmul.msk.bf16.vlgmr.msra.gmra.mxu0 %vm49_vm0, %v102_v2  ;;  %101 = vmatmul.msk.bf16.vlgmr.msra.gmra.mxu1 %vm49_vm0, %v103_v3 }
  0x86   :  { %v65_v5 = vpop.f32.mrf.mxu0  ;;  %v70_v6 = vpop.f32.mrf.mxu1 }
  0x87   :  { %v66_v7 = vadd.f32 %v108_v4, %v65_v5  ;;  %v71_v8 = vadd.f32 %v108_v4, %v70_v6 }
  0x89   :  { %76 = vst.msk [vmem:[%s159_s3] sm:$0xff] %vm75_vm1, %v66_v7 }
  0x8a   :  { %78 = vst.msk [vmem:[%s159_s3 + $0x10] sm:$0xff] %vm75_vm1, %v71_v8 }
  0x8e   :  { %v67_v9 = vpop.f32.mrf.mxu0  ;;  %v72_v10 = vpop.f32.mrf.mxu1 }
  0x8f   :  { %v68_v11 = vadd.f32 %v108_v4, %v67_v9  ;;  %v73_v12 = vadd.f32 %v108_v4, %v72_v10 }
  0x91   :  { %77 = vst.msk [vmem:[%s159_s3 + $0x8] sm:$0xff] %vm75_vm1, %v68_v11 }
  0x92   :  { %79 = vst.msk [vmem:[%s159_s3 + $0x18] sm:$0xff] %vm75_vm1, %v73_v12 }

// kernel: _lambda_.27
= control target key start
LH: loop header
LB: loop body
LE: loop exit
PB: predicated region body
PF: predicated region fallthrough
CT: control target
= control target key end

     0   :  { %s818_s21 = smov 0   ;;  %s820_s22 = smov 0   ;;  %s900_s0 = inlined_call_operand.vmem [shape: f32[2,4,16,32], index: 0, kind: input, shape index: {}]   ;;  %s901_s1 = inlined_call_operand.vmem [shape: f32[2,4,16,32], index: 1, kind: input, shape index: {}]   ;;  %s902_s2 = inlined_call_operand.vmem [shape: bf16[32,32], index: 2, kind: input, shape index: {}]   ;;  %s903_s3 = inlined_call_operand.vmem [shape: f32[1,32], index: 3, kind: input, shape index: {}]   ;;  %s904_s4 = inlined_call_operand.vmem [shape: bf16[32,32], index: 4, kind: input, shape index: {}]   ;;  %s905_s5 = inlined_call_operand.vmem [shape: f32[1,32], index: 5, kind: input, shape index: {}]   ;;  %s906_s6 = inlined_call_operand.vmem [shape: f32[2,16,32], index: 6, kind: output, shape index: {}]  }
   0x1   :  { %s822_s23 = smov 0  }
   0x2 LB: > { %s28_s24 = sadd.s32 1, %s777_s22  ;;  %p663_p0 = scmp.ge.s32.totalorder %s781_s23, 1  ;;  %s781_s23 = sphi %s822_s23, %s16_s23   ;;  %s777_s22 = sphi %s820_s22, %s908_s22   ;;  %s773_s21 = sphi %s818_s21, %s907_s21  }
   0x3   : > { %p30_p1 = scmp.ge.s32.totalorder %s28_s24, 2  ;;  %p250_p2 = scmp.lt.s32.totalorder %s781_s23, 3 }
   0x5   : > { %s910_s24 = smov (%p30_p1, %s28_s24), 0  ;;  %p251_p3 = pnand %p663_p0, %p250_p2 }
   0x6   : > { %p298_p4 = scmp.lt.s32.totalorder (!%p251_p3), %s773_s21, 1 }
   0x7   : > { %254 = sbr.rel (%p251_p3) target bundleno = 356 (0x164), region = 44 }
   0xc   : > { %v706_v0 = vld [vmem:[%s902_s2 + $0x8] sm:$0xff]  ;;  %v705_v1 = vld [vmem:[%s902_s2] sm:$0xff]  ;;  %s912_s21 = smov (!%p298_p4, %s773_s21), 1  ;;  %vm360_vm0 = vcmask 261120  }
   0xd   : > { %379 = vmatpush.bf16.msra.mxu0 %v706_v0  ;;  %709 = vmatpush.bf16.msra.mxu2 %v706_v0  ;;  %s702_s29 = sshll.u32 %s912_s21, 6  ;;  %v708_v14 = vld [vmem:[%s904_s4 + $0x8] sm:$0xff]  ;;  %v707_v15 = vld [vmem:[%s904_s4] sm:$0xff]  ;;  %s704_s20 = sshll.u32 %s912_s21, 4 }
   0xe   : > { %s305_s8 = scalar_lea.vmem %s900_s0, %s702_s29  ;;  %452 = vmatpush.bf16.msra.mxu1 %v708_v14  ;;  %711 = vmatpush.bf16.msra.mxu3 %v708_v14  ;;  %v737_v17 = vld [vmem:[%s903_s3] ss:$0 sm:$0xff]  ;;  %s875_s19 = scalar_lea.vmem %s901_s1, %s702_s29 }
   0xf   : > { %v328_v2 = vld [vmem:[%s305_s8] sm:$0xff]  ;;  %v329_v3 = vld [vmem:[%s305_s8 + $0x8] sm:$0xff]  ;;  %v330_v8 = vld [vmem:[%s305_s8 + $0x10] sm:$0xff]  ;;  %s325_s27 = scalar_lea.vmem %s906_s6, %s704_s20 }
  0x10   : > { %v332_v4 = vld [vmem:[%s305_s8 + $0x20] sm:$0xff]  ;;  %v336_v5 = vpack.c.bf16 %v329_v3, %v328_v2  ;;  %v333_v6 = vld [vmem:[%s305_s8 + $0x28] sm:$0xff]  ;;  %v331_v9 = vld [vmem:[%s305_s8 + $0x18] sm:$0xff] }
  0x11   : > { %380 = vmatpush.bf16.msra.mxu0 %v705_v1  ;;  %710 = vmatpush.bf16.msra.mxu2 %v705_v1  ;;  %v338_v7 = vpack.c.bf16 %v333_v6, %v332_v4  ;;  %v334_v10 = vld [vmem:[%s305_s8 + $0x30] sm:$0xff]  ;;  %v335_v11 = vld [vmem:[%s305_s8 + $0x38] sm:$0xff]  ;;  %v337_v12 = vpack.c.bf16 %v331_v9, %v330_v8  ;;  %v738_v49 = vld [vmem:[%s905_s5] ss:$0 sm:$0xff] }
  0x12   : > { %v339_v13 = vpack.c.bf16 %v335_v11, %v334_v10  ;;  %453 = vmatpush.bf16.msra.mxu1 %v707_v15  ;;  %712 = vmatpush.bf16.msra.mxu3 %v707_v15 }
  0x14   : > { %678 = vmatmul.msk.bf16.vlgmr.msra.gmra.mxu0 %vm360_vm0, %v336_v5  ;;  %680 = vmatmul.msk.bf16.vlgmr.msra.gmra.mxu2 %vm360_vm0, %v338_v7 }
  0x24   : > { %679 = vmatmul.msk.bf16.gmra.mxu0 %vm360_vm0, %v337_v12  ;;  %681 = vmatmul.msk.bf16.gmra.mxu2 %vm360_vm0, %v339_v13 }
  0x91   : > { %v382_v16 = vpop.f32.mrf.mxu0 }
  0x92   : > { %v383_v18 = vadd.f32 %v737_v17, %v382_v16 }
  0x94   : > { %v402_v21 = vmax.f32 %v383_v18, 0.0 }
  0x97   : > { %v392_v19 = vpop.f32.mrf.mxu2 }
  0x98   : > { %v393_v25 = vadd.f32 %v737_v17, %v392_v19 }
  0x99   : > { %v384_v20 = vpop.f32.mrf.mxu0 }
  0x9a   : > { %v385_v22 = vadd.f32 %v737_v17, %v384_v20  ;;  %v406_v29 = vmax.f32 %v393_v25, 0.0  ;;  %v497_v20 = vld [vmem:[%s875_s19] sm:$0xff] }
  0x9c   : > { %v403_v23 = vmax.f32 %v385_v22, 0.0 }
  0x9e   : > { %v410_v24 = vpack.c.bf16 %v403_v23, %v402_v21 }
  0x9f   : > { %v394_v26 = vpop.f32.mrf.mxu2 }
  0xa0   : > { %690 = vmatmul.msk.bf16.vlgmr.msra.gmra.mxu1 %vm360_vm0, %v410_v24  ;;  %v395_v27 = vadd.f32 %v737_v17, %v394_v26  ;;  %v694_v24 = vld [vmem:[%s875_s19 + $0x10] sm:$0xff] }
  0xa1   : > { %v387_v28 = vpop.f32.mrf.mxu0 }
  0xa2   : > { %v407_v30 = vmax.f32 %v395_v27, 0.0  ;;  %v388_v32 = vadd.f32 %v737_v17, %v387_v28 }
  0xa4   : > { %v412_v31 = vpack.c.bf16 %v407_v30, %v406_v29  ;;  %v404_v35 = vmax.f32 %v388_v32, 0.0 }
  0xa6   : > { %692 = vmatmul.msk.bf16.vlgmr.msra.gmra.mxu3 %vm360_vm0, %v412_v31 }
  0xa7   : > { %v397_v33 = vpop.f32.mrf.mxu2 }
  0xa8   : > { %v398_v39 = vadd.f32 %v737_v17, %v397_v33 }
  0xa9   : > { %v389_v34 = vpop.f32.mrf.mxu0 }
  0xaa   : > { %v390_v36 = vadd.f32 %v737_v17, %v389_v34  ;;  %v408_v42 = vmax.f32 %v398_v39, 0.0 }
  0xac   : > { %v405_v37 = vmax.f32 %v390_v36, 0.0 }
  0xae   : > { %v411_v38 = vpack.c.bf16 %v405_v37, %v404_v35  ;;  %v696_v37 = vld [vmem:[%s875_s19 + $0x20] sm:$0xff] }
  0xaf   : > { %v399_v40 = vpop.f32.mrf.mxu2 }
  0xb0   : > { %691 = vmatmul.msk.bf16.gmra.mxu1 %vm360_vm0, %v411_v38  ;;  %v400_v41 = vadd.f32 %v737_v17, %v399_v40 }
  0xb2   : > { %v409_v43 = vmax.f32 %v400_v41, 0.0  ;;  %v498_v41 = vld [vmem:[%s875_s19 + $0x8] sm:$0xff] }
  0xb4   : > { %v413_v44 = vpack.c.bf16 %v409_v43, %v408_v42  ;;  %v695_v43 = vld [vmem:[%s875_s19 + $0x18] sm:$0xff] }
  0xb6   : > { %693 = vmatmul.msk.bf16.gmra.mxu3 %vm360_vm0, %v413_v44 }
 0x11d   : > { %v455_v45 = vpop.f32.mrf.mxu1 }
 0x11e   : > { %v456_v52 = vadd.f32 %v738_v49, %v455_v45  ;;  %v698_v45 = vld [vmem:[%s875_s19 + $0x30] sm:$0xff] }
 0x120   : > { %v475_v55 = vmul.f32 0.17677669, %v456_v52 }
 0x125   : > { %v457_v46 = vpop.f32.mrf.mxu1 }
 0x126   : > { %v458_v60 = vadd.f32 %v738_v49, %v457_v46 }
 0x128   : > { %v476_v2 = vmul.f32 0.17677669, %v458_v60 }
 0x129   : > { %v465_v47 = vpop.f32.mrf.mxu3 }
 0x12a   : > { %v466_v56 = vadd.f32 %v738_v49, %v465_v47 }
 0x12c   : > { %v479_v61 = vmul.f32 0.17677669, %v466_v56 }
 0x12d   : > { %v460_v48 = vpop.f32.mrf.mxu1 }
 0x12e   : > { %v461_v50 = vadd.f32 %v738_v49, %v460_v48 }
 0x130   : > { %v477_v53 = vmul.f32 0.17677669, %v461_v50 }
 0x131   : > { %v467_v51 = vpop.f32.mrf.mxu3 }
 0x132   : > { %v483_v57 = vmax.f32 %v475_v55, %v477_v53  ;;  %v468_v3 = vadd.f32 %v738_v49, %v467_v51 }
 0x134   : > { %v485_v1 = vmax.f32 %v483_v57, %v479_v61  ;;  %v480_v11 = vmul.f32 0.17677669, %v468_v3 }
 0x135   : > { %v462_v54 = vpop.f32.mrf.mxu1 }
 0x136   : > { %v463_v58 = vadd.f32 %v738_v49, %v462_v54  ;;  %v697_v54 = vld [vmem:[%s875_s19 + $0x28] sm:$0xff] }
 0x138   : > { %v478_v63 = vmul.f32 0.17677669, %v463_v58 }
 0x139   : > { %v470_v59 = vpop.f32.mrf.mxu3 }
 0x13a   : > { %v471_v62 = vadd.f32 %v738_v49, %v470_v59  ;;  %v484_v5 = vmax.f32 %v476_v2, %v478_v63 }
 0x13c   : > { %v481_v0 = vmul.f32 0.17677669, %v471_v62  ;;  %v486_v17 = vmax.f32 %v484_v5, %v480_v11  ;;  %v699_v62 = vld [vmem:[%s875_s19 + $0x38] sm:$0xff] }
 0x13e   : > { %v487_v4 = vmax.f32 %v485_v1, %v481_v0 }
 0x140   : > { %v489_v6 = vsub.f32 %v475_v55, %v487_v4  ;;  %v503_v7 = vsub.f32 %v477_v53, %v487_v4  ;;  %v518_v8 = vsub.f32 %v479_v61, %v487_v4  ;;  %v533_v9 = vsub.f32 %v481_v0, %v487_v4 }
 0x141   : > { %v472_v10 = vpop.f32.mrf.mxu3 }
 0x142   : > { %v491_v12 = vmul.f32 1.442695, %v489_v6  ;;  %v505_v13 = vmul.f32 1.442695, %v503_v7  ;;  %v473_v14 = vadd.f32 %v738_v49, %v472_v10  ;;  %v520_v15 = vmul.f32 1.442695, %v518_v8 }
 0x143   : > { %v535_v18 = vmul.f32 1.442695, %v533_v9 }
 0x144   : > { %739 = vpow2.f32 %v491_v12  ;;  %v482_v16 = vmul.f32 0.17677669, %v473_v14 }
 0x145   : > { %741 = vpow2.f32 %v505_v13 }
 0x146   : > { %v488_v19 = vmax.f32 %v486_v17, %v482_v16  ;;  %743 = vpow2.f32 %v520_v15 }
 0x147   : > { %745 = vpow2.f32 %v535_v18 }
 0x148   : > { %v490_v21 = vsub.f32 %v476_v2, %v488_v19  ;;  %v504_v22 = vsub.f32 %v478_v63, %v488_v19  ;;  %v519_v23 = vsub.f32 %v480_v11, %v488_v19  ;;  %v534_v25 = vsub.f32 %v482_v16, %v488_v19 }
 0x14a   : > { %v740_v26 = vpop.eup %739  ;;  %v493_v27 = vmul.f32 1.442695, %v490_v21  ;;  %v507_v28 = vmul.f32 1.442695, %v504_v22  ;;  %v522_v31 = vmul.f32 1.442695, %v519_v23 }
 0x14b   : > { %v742_v29 = vpop.eup %741  ;;  %v499_v30 = vmul.f32 %v740_v26, %v497_v20  ;;  %v537_v35 = vmul.f32 1.442695, %v534_v25 }
 0x14c   : > { %v509_v32 = vadd.f32 %v742_v29, %v740_v26  ;;  %v514_v33 = vmul.f32 %v742_v29, %v694_v24  ;;  %747 = vpow2.f32 %v493_v27  ;;  %v744_v34 = vpop.eup %743 }
 0x14d   : > { %749 = vpow2.f32 %v507_v28  ;;  %v746_v38 = vpop.eup %745  ;;  %v529_v42 = vmul.f32 %v744_v34, %v696_v37 }
 0x14e   : > { %v524_v36 = vadd.f32 %v744_v34, %v509_v32  ;;  %v516_v39 = vadd.f32 %v514_v33, %v499_v30  ;;  %751 = vpow2.f32 %v522_v31  ;;  %v544_v52 = vmul.f32 %v746_v38, %v698_v45 }
 0x14f   : > { %753 = vpow2.f32 %v537_v35 }
 0x150   : > { %v539_v40 = vadd.f32 %v746_v38, %v524_v36  ;;  %v531_v47 = vadd.f32 %v529_v42, %v516_v39 }
 0x152   : > { %v748_v44 = vpop.eup %747  ;;  %755 = vrcp.f32 %v539_v40  ;;  %v546_v56 = vadd.f32 %v544_v52, %v531_v47 }
 0x153   : > { %v750_v46 = vpop.eup %749  ;;  %v500_v48 = vmul.f32 %v748_v44, %v498_v41 }
 0x154   : > { %v510_v49 = vadd.f32 %v750_v46, %v748_v44  ;;  %v515_v50 = vmul.f32 %v750_v46, %v695_v43  ;;  %v752_v51 = vpop.eup %751 }
 0x155   : > { %v754_v55 = vpop.eup %753  ;;  %v530_v61 = vmul.f32 %v752_v51, %v697_v54 }
 0x156   : > { %v525_v53 = vadd.f32 %v752_v51, %v510_v49  ;;  %v517_v57 = vadd.f32 %v515_v50, %v500_v48  ;;  %v545_v0 = vmul.f32 %v754_v55, %v699_v62 }
 0x158   : > { %v756_v58 = vpop.eup %755  ;;  %v540_v59 = vadd.f32 %v754_v55, %v525_v53  ;;  %v532_v63 = vadd.f32 %v530_v61, %v517_v57 }
 0x159   : > { %v550_v60 = vmul.f32 %v756_v58, %v546_v56 }
 0x15a   : > { %757 = vrcp.f32 %v540_v59  ;;  %v547_v1 = vadd.f32 %v545_v0, %v532_v63 }
 0x15b   : > { %552 = vst.msk [vmem:[%s325_s27] sm:$0xff] %vm360_vm0, %v550_v60 }
 0x160   : > { %v758_v2 = vpop.eup %757 }
 0x161   : > { %v551_v3 = vmul.f32 %v758_v2, %v547_v1 }
 0x163   : > { %553 = vst.msk [vmem:[%s325_s27 + $0x8] sm:$0xff] %vm360_vm0, %v551_v3 }
 0x164 PF: > { %s16_s23 = sadd.s32 1, %s781_s23   ;;  %s907_s21 = smov %s777_s22 }
 0x165   : > { %p13_p5 = scmp.ge.s32.totalorder %s16_s23, 4   ;;  %s908_s22 = smov %s910_s24 }
 0x167   :  { %15 = sbr.rel (!%p13_p5) target bundleno = 2 (0x2), region = 80 }

// kernel: neg.9
= control target key start
LH: loop header
LB: loop body
LE: loop exit
PB: predicated region body
PF: predicated region fallthrough
CT: control target
= control target key end

     0   :  { %s40_s0 = inlined_call_operand.vmem [shape: f32[2,4,4], index: 0, kind: input, shape index: {}]   ;;  %s41_s1 = inlined_call_operand.vmem [shape: f32[2,4,4], index: 1, kind: output, shape index: {}]  }
   0x1   :  { %v2_v0 = vld [vmem:[%s40_s0] sm:$0xf]  ;;  %v16_v1 = vld [vmem:[%s40_s0 + $0x4] sm:$0xf] }
   0x2   :  { %v5_v2 = vxor.u32 2147483648, %v2_v0  ;;  %v12_v3 = vxor.u32 2147483648, %v16_v1 }
   0x4   :  { %7 = vst [vmem:[%s41_s1] sm:$0xf] %v5_v2 }
   0x5   :  { %17 = vst [vmem:[%s41_s1 + $0x4] sm:$0xf] %v12_v3 }

// kernel: _lambda_.29
= control target key start
LH: loop header
LB: loop body
LE: loop exit
PB: predicated region body
PF: predicated region fallthrough
CT: control target
= control target key end

     0   :  { %vm76_vm0 = vcmask 1040384   ;;  %vm77_vm1 = vcmask 1041408   ;;  %v149_v1 = vmov 65535   ;;  %vm69_vm2 = vcmask 547840   ;;  %s206_s1 = inlined_call_operand.vmem [shape: bf16[67,128], index: 1, kind: input, shape index: {}]   ;;  %s207_s2 = inlined_call_operand.vmem [shape: f32[1,128], index: 2, kind: input, shape index: {}]   ;;  %s208_s0 = inlined_call_operand.vmem [shape: bf16[32,67], index: 0, kind: input, shape index: {}]   ;;  %s209_s3 = inlined_call_operand.vmem [shape: f32[32,128], index: 3, kind: output, shape index: {}]  }
   0x1   :  { %v27_v0 = vld [vmem:[%s206_s1 + $0x20] sm:$0x3]  ;;  %v78_v2 = vsel %vm76_vm0, 4294967295, %v149_v1  ;;  %v141_v7 = vld [vmem:[%s206_s1 + $0x18] sm:$0xff]  ;;  %v140_v8 = vld [vmem:[%s206_s1 + $0x10] sm:$0xff] }
   0x2   :  { %v59_v3 = vunpack.c.l.b16 %v27_v0  ;;  %v79_v4 = vsel %vm77_vm1, %v78_v2, 0  ;;  %v139_v9 = vld [vmem:[%s206_s1 + $0x8] sm:$0xff]  ;;  %v138_v10 = vld [vmem:[%s206_s1] sm:$0xff] }
   0x3   :  { %v136_v11 = vld [vmem:[%s208_s0] sm:$0xff]  ;;  %v137_v12 = vld [vmem:[%s208_s0 + $0x8] sm:$0xff] }
   0x4   :  { %v64_v5 = vpack.c.b16 %v59_v3, %v59_v3  ;;  %v148_v13 = vld [vmem:[%s207_s2] ss:$0 sm:$0xff] }
   0x6   :  { %v81_v6 = vand.u32 %v79_v4, %v64_v5 }
   0x8   :  { %86 = vmatpush.bf16.msra.mxu0 %v81_v6  ;;  %142 = vmatpush.bf16.msra.mxu1 %v81_v6 }
   0xc   :  { %87 = vmatpush.bf16.msra.mxu0 %v141_v7  ;;  %143 = vmatpush.bf16.msra.mxu1 %v141_v7 }
  0x10   :  { %88 = vmatpush.bf16.msra.mxu0 %v140_v8  ;;  %144 = vmatpush.bf16.msra.mxu1 %v140_v8 }
  0x14   :  { %89 = vmatpush.bf16.msra.mxu0 %v139_v9  ;;  %145 = vmatpush.bf16.msra.mxu1 %v139_v9 }
  0x18   :  { %90 = vmatpush.bf16.msra.mxu0 %v138_v10  ;;  %146 = vmatpush.bf16.msra.mxu1 %v138_v10 }
  0x1b   :  { %134 = vmatmul.msk.bf16.vlgmr.msra.gmra.mxu0 %vm69_vm2, %v136_v11  ;;  %135 = vmatmul.msk.bf16.vlgmr.msra.gmra.mxu1 %vm69_vm2, %v137_v12 }
  0x98   :  { %v92_v14 = vpop.f32.mrf.mxu0  ;;  %v97_v15 = vpop.f32.mrf.mxu1 }
  0x99   :  { %v93_v16 = vadd.f32 %v148_v13, %v92_v14  ;;  %v98_v17 = vadd.f32 %v148_v13, %v97_v15 }
  0x9b   :  { %102 = vst [vmem:[%s209_s3] sm:$0xff] %v93_v16 }
  0x9c   :  { %104 = vst [vmem:[%s209_s3 + $0x10] sm:$0xff] %v98_v17 }
  0xa0   :  { %v94_v18 = vpop.f32.mrf.mxu0  ;;  %v99_v19 = vpop.f32.mrf.mxu1 }
  0xa1   :  { %v95_v20 = vadd.f32 %v148_v13, %v94_v18  ;;  %v100_v21 = vadd.f32 %v148_v13, %v99_v19 }
  0xa3   :  { %103 = vst [vmem:[%s209_s3 + $0x8] sm:$0xff] %v95_v20 }
  0xa4   :  { %105 = vst [vmem:[%s209_s3 + $0x18] sm:$0xff] %v100_v21 }

// kernel: _lambda_.30
= control target key start
LH: loop header
LB: loop body
LE: loop exit
PB: predicated region body
PF: predicated region fallthrough
CT: control target
= control target key end

     0   :  { %s249_s1 = inlined_call_operand.vmem [shape: bf16[128,128], index: 1, kind: input, shape index: {}]   ;;  %s250_s2 = inlined_call_operand.vmem [shape: f32[1,128], index: 2, kind: input, shape index: {}]   ;;  %s251_s0 = inlined_call_operand.vmem [shape: bf16[32,128], index: 0, kind: input, shape index: {}]   ;;  %s252_s3 = inlined_call_operand.vmem [shape: f32[32,128], index: 3, kind: output, shape index: {}]  }
   0x1   :  { %v174_v0 = vld [vmem:[%s249_s1 + $0x38] sm:$0xff]  ;;  %v173_v1 = vld [vmem:[%s249_s1 + $0x30] sm:$0xff]  ;;  %v172_v2 = vld [vmem:[%s249_s1 + $0x28] sm:$0xff] }
   0x2   :  { %98 = vmatpush.bf16.msra.mxu0 %v174_v0  ;;  %175 = vmatpush.bf16.msra.mxu1 %v174_v0  ;;  %v171_v3 = vld [vmem:[%s249_s1 + $0x20] sm:$0xff]  ;;  %v170_v4 = vld [vmem:[%s249_s1 + $0x18] sm:$0xff]  ;;  %v169_v5 = vld [vmem:[%s249_s1 + $0x10] sm:$0xff] }
   0x3   :  { %v168_v6 = vld [vmem:[%s249_s1 + $0x8] sm:$0xff]  ;;  %v167_v7 = vld [vmem:[%s249_s1] sm:$0xff] }
   0x4   :  { %v165_v8 = vld [vmem:[%s251_s0] sm:$0xff]  ;;  %v166_v9 = vld [vmem:[%s251_s0 + $0x8] sm:$0xff] }
   0x5   :  { %v183_v10 = vld [vmem:[%s250_s2] ss:$0 sm:$0xff] }
   0x6   :  { %99 = vmatpush.bf16.msra.mxu0 %v173_v1  ;;  %176 = vmatpush.bf16.msra.mxu1 %v173_v1 }
   0xa   :  { %100 = vmatpush.bf16.msra.mxu0 %v172_v2  ;;  %177 = vmatpush.bf16.msra.mxu1 %v172_v2 }
   0xe   :  { %101 = vmatpush.bf16.msra.mxu0 %v171_v3  ;;  %178 = vmatpush.bf16.msra.mxu1 %v171_v3 }
  0x12   :  { %102 = vmatpush.bf16.msra.mxu0 %v170_v4  ;;  %179 = vmatpush.bf16.msra.mxu1 %v170_v4 }
  0x16   :  { %103 = vmatpush.bf16.msra.mxu0 %v169_v5  ;;  %180 = vmatpush.bf16.msra.mxu1 %v169_v5 }
  0x1a   :  { %104 = vmatpush.bf16.msra.mxu0 %v168_v6  ;;  %181 = vmatpush.bf16.msra.mxu1 %v168_v6 }
  0x1e   :  { %105 = vmatpush.bf16.msra.mxu0 %v167_v7  ;;  %182 = vmatpush.bf16.msra.mxu1 %v167_v7 }
  0x21   :  { %106 = vmatmul.bf16.vlgmr.msra.gmra.mxu0 %v165_v8  ;;  %111 = vmatmul.bf16.vlgmr.msra.gmra.mxu1 %v166_v9 }
  0x9e   :  { %v107_v11 = vpop.f32.mrf.mxu0  ;;  %v112_v12 = vpop.f32.mrf.mxu1 }
  0x9f   :  { %v108_v13 = vadd.f32 %v183_v10, %v107_v11  ;;  %v113_v14 = vadd.f32 %v183_v10, %v112_v12 }
  0xa1   :  { %117 = vst [vmem:[%s252_s3] sm:$0xff] %v108_v13 }
  0xa2   :  { %119 = vst [vmem:[%s252_s3 + $0x10] sm:$0xff] %v113_v14 }
  0xa6   :  { %v109_v15 = vpop.f32.mrf.mxu0  ;;  %v114_v16 = vpop.f32.mrf.mxu1 }
  0xa7   :  { %v110_v17 = vadd.f32 %v183_v10, %v109_v15  ;;  %v115_v18 = vadd.f32 %v183_v10, %v114_v16 }
  0xa9   :  { %118 = vst [vmem:[%s252_s3 + $0x8] sm:$0xff] %v110_v17 }
  0xaa   :  { %120 = vst [vmem:[%s252_s3 + $0x18] sm:$0xff] %v115_v18 }

// kernel: _lambda_.32
= control target key start
LH: loop header
LB: loop body
LE: loop exit
PB: predicated region body
PF: predicated region fallthrough
CT: control target
= control target key end

     0   :  { %vm47_vm0 = vcmask 1040384   ;;  %vm48_vm1 = vcmask 1041408   ;;  %v163_v1 = vmov 65535   ;;  %vm40_vm2 = vcmask 23552   ;;  %s233_s1 = inlined_call_operand.vmem [shape: bf16[3,32], index: 1, kind: input, shape index: {}]   ;;  %s234_s0 = inlined_call_operand.vmem [shape: bf16[32,3], index: 0, kind: input, shape index: {}]   ;;  %s235_s2 = inlined_call_operand.vmem [shape: f32[1,32], index: 2, kind: input, shape index: {}]   ;;  %s236_s4 = inlined_call_operand.vmem [shape: f32[1,32], index: 4, kind: input, shape index: {}]   ;;  %s237_s3 = inlined_call_operand.vmem [shape: bf16[32,32], index: 3, kind: input, shape index: {}]   ;;  %s238_s5 = inlined_call_operand.vmem [shape: f32[32,32], index: 5, kind: output, shape index: {}]  }
   0x1   :  { %v25_v0 = vld [vmem:[%s233_s1] sm:$0x3]  ;;  %v49_v2 = vsel %vm47_vm0, 4294967295, %v163_v1  ;;  %v154_v6 = vld [vmem:[%s234_s0 + $0x8] sm:$0xff]  ;;  %vm99_vm3 = vcmask 261120  }
   0x2   :  { %v50_v3 = vsel %vm48_vm1, %v49_v2, 0  ;;  %v153_v5 = vld [vmem:[%s234_s0] sm:$0xff]  ;;  %v156_v7 = vld [vmem:[%s237_s3 + $0x8] sm:$0xff] }
   0x3   :  { %v52_v4 = vand.u32 %v50_v3, %v25_v0  ;;  %112 = vmatpush.bf16.msra.mxu1 %v156_v7  ;;  %158 = vmatpush.bf16.msra.mxu2 %v156_v7  ;;  %v155_v8 = vld [vmem:[%s237_s3] sm:$0xff] }
   0x4   :  { %v161_v10 = vld [vmem:[%s235_s2] ss:$0 sm:$0xff] }
   0x5   :  { %61 = vmatpush.bf16.msra.mxu0 %v52_v4  ;;  %157 = vmatpush.bf16.msra.mxu3 %v52_v4  ;;  %v162_v24 = vld [vmem:[%s236_s4] ss:$0 sm:$0xff] }
   0x7   :  { %113 = vmatpush.bf16.msra.mxu1 %v155_v8  ;;  %159 = vmatpush.bf16.msra.mxu2 %v155_v8 }
   0x8   :  { %141 = vmatmul.msk.bf16.vlgmr.msra.gmra.mxu0 %vm40_vm2, %v153_v5  ;;  %142 = vmatmul.msk.bf16.vlgmr.msra.gmra.mxu3 %vm40_vm2, %v154_v6 }
  0x85   :  { %v63_v9 = vpop.f32.mrf.mxu0 }
  0x86   :  { %v64_v11 = vadd.f32 %v161_v10, %v63_v9 }
  0x88   :  { %v73_v14 = vmax.f32 %v64_v11, 0.0 }
  0x8b   :  { %v68_v12 = vpop.f32.mrf.mxu3 }
  0x8c   :  { %v69_v17 = vadd.f32 %v161_v10, %v68_v12 }
  0x8d   :  { %v65_v13 = vpop.f32.mrf.mxu0 }
  0x8e   :  { %v66_v15 = vadd.f32 %v161_v10, %v65_v13  ;;  %v75_v21 = vmax.f32 %v69_v17, 0.0 }
  0x90   :  { %v74_v16 = vmax.f32 %v66_v15, 0.0 }
  0x92   :  { %v81_v18 = vpack.c.bf16 %v74_v16, %v73_v14 }
  0x93   :  { %v70_v19 = vpop.f32.mrf.mxu3 }
  0x94   :  { %v71_v20 = vadd.f32 %v161_v10, %v70_v19  ;;  %151 = vmatmul.msk.bf16.vlgmr.msra.gmra.mxu1 %vm99_vm3, %v81_v18 }
  0x96   :  { %v76_v22 = vmax.f32 %v71_v20, 0.0 }
  0x98   :  { %v82_v23 = vpack.c.bf16 %v76_v22, %v75_v21 }
  0x9a   :  { %152 = vmatmul.msk.bf16.vlgmr.msra.gmra.mxu2 %vm99_vm3, %v82_v23 }
 0x111   :  { %v115_v25 = vpop.f32.mrf.mxu1 }
 0x112   :  { %v116_v26 = vadd.f32 %v162_v24, %v115_v25 }
 0x114   :  { %125 = vst.msk [vmem:[%s238_s5] sm:$0xff] %vm99_vm3, %v116_v26 }
 0x119   :  { %v117_v27 = vpop.f32.mrf.mxu1 }
 0x11a   :  { %v118_v28 = vadd.f32 %v162_v24, %v117_v27 }
 0x11c   :  { %126 = vst.msk [vmem:[%s238_s5 + $0x8] sm:$0xff] %vm99_vm3, %v118_v28 }
 0x11d   :  { %v120_v29 = vpop.f32.mrf.mxu2 }
 0x11e   :  { %v121_v30 = vadd.f32 %v162_v24, %v120_v29 }
 0x120   :  { %127 = vst.msk [vmem:[%s238_s5 + $0x10] sm:$0xff] %vm99_vm3, %v121_v30 }
 0x125   :  { %v122_v31 = vpop.f32.mrf.mxu2 }
 0x126   :  { %v123_v32 = vadd.f32 %v162_v24, %v122_v31 }
 0x128   :  { %128 = vst.msk [vmem:[%s238_s5 + $0x18] sm:$0xff] %vm99_vm3, %v123_v32 }

// kernel: _lambda_.31
= control target key start
LH: loop header
LB: loop body
LE: loop exit
PB: predicated region body
PF: predicated region fallthrough
CT: control target
= control target key end

     0   :  { %vm117_vm0 = vcmask 261120   ;;  %vm134_vm1 = vcmask 785408   ;;  %s256_s1 = inlined_call_operand.vmem [shape: bf16[128,32], index: 1, kind: input, shape index: {}]   ;;  %s257_s3 = inlined_call_operand.vmem [shape: bf16[32,96], index: 3, kind: input, shape index: {}]   ;;  %s258_s2 = inlined_call_operand.vmem [shape: f32[1,32], index: 2, kind: input, shape index: {}]   ;;  %s259_s0 = inlined_call_operand.vmem [shape: bf16[8,128], index: 0, kind: input, shape index: {}]   ;;  %s260_s4 = inlined_call_operand.vmem [shape: f32[8,96], index: 4, kind: output, shape index: {}]  }
   0x1   :  { %v188_v0 = vld [vmem:[%s256_s1 + $0x38] sm:$0xff]  ;;  %v187_v1 = vld [vmem:[%s256_s1 + $0x30] sm:$0xff]  ;;  %v190_v2 = vld [vmem:[%s257_s3 + $0x8] sm:$0xff] }
   0x2   :  { %87 = vmatpush.bf16.msra.mxu0 %v188_v0  ;;  %127 = vmatpush.bf16.msra.mxu1 %v190_v2  ;;  %v186_v3 = vld [vmem:[%s256_s1 + $0x28] sm:$0xff]  ;;  %v185_v4 = vld [vmem:[%s256_s1 + $0x20] sm:$0xff]  ;;  %v184_v5 = vld [vmem:[%s256_s1 + $0x18] sm:$0xff] }
   0x3   :  { %v183_v6 = vld [vmem:[%s256_s1 + $0x10] sm:$0xff]  ;;  %v182_v7 = vld [vmem:[%s256_s1 + $0x8] sm:$0xff]  ;;  %v181_v8 = vld [vmem:[%s256_s1] sm:$0xff] }
   0x4   :  { %v18_v9 = vld [vmem:[%s259_s0] sm:$0xf] }
   0x5   :  { %v189_v10 = vld [vmem:[%s257_s3] sm:$0xff] }
   0x6   :  { %88 = vmatpush.bf16.msra.mxu0 %v187_v1  ;;  %128 = vmatpush.bf16.msra.mxu1 %v189_v10  ;;  %v191_v11 = vld [vmem:[%s258_s2] ss:$0 sm:$0xff] }
   0xa   :  { %89 = vmatpush.bf16.msra.mxu0 %v186_v3 }
   0xe   :  { %90 = vmatpush.bf16.msra.mxu0 %v185_v4 }
  0x12   :  { %91 = vmatpush.bf16.msra.mxu0 %v184_v5 }
  0x16   :  { %92 = vmatpush.bf16.msra.mxu0 %v183_v6 }
  0x1a   :  { %93 = vmatpush.bf16.msra.mxu0 %v182_v7 }
  0x1e   :  { %94 = vmatpush.bf16.msra.mxu0 %v181_v8 }
  0x21   :  { %95 = vmatmul.bf16.vlgmr.msra.gmra.mxu0 %v18_v9 }
  0x9e   :  { %v96_v12 = vpop.f32.mrf.mxu0 }
  0x9f   :  { %v97_v13 = vadd.f32 %v191_v11, %v96_v12 }
  0xa1   :  { %v104_v14 = vpack.c.bf16 %v97_v13, %v97_v13 }
  0xa3   :  { %180 = vmatmul.msk.bf16.vlgmr.msra.gmra.mxu1 %vm117_vm0, %v104_v14 }
  0xa6   :  { %v98_v15 = vpop.f32.mrf.mxu0 }
 0x120   :  { %v130_v16 = vpop.f32.mrf.mxu1 }
 0x121   :  { %135 = vst.msk [vmem:[%s260_s4] sm:$0xff] %vm134_vm1, %v130_v16 }
 0x128   :  { %v132_v17 = vpop.f32.mrf.mxu1 }

// kernel: _lambda_.33
= control target key start
LH: loop header
LB: loop body
LE: loop exit
PB: predicated region body
PF: predicated region fallthrough
CT: control target
= control target key end

     0   :  { %s692_s21 = smov 0   ;;  %s694_s22 = smov 0   ;;  %s759_s0 = inlined_call_operand.vmem [shape: f32[2,4,8,32], index: 0, kind: input, shape index: {}]   ;;  %s760_s1 = inlined_call_operand.vmem [shape: f32[2,4,8,32], index: 1, kind: input, shape index: {}]   ;;  %s761_s2 = inlined_call_operand.vmem [shape: bf16[32,32], index: 2, kind: input, shape index: {}]   ;;  %s762_s3 = inlined_call_operand.vmem [shape: f32[1,32], index: 3, kind: input, shape index: {}]   ;;  %s763_s4 = inlined_call_operand.vmem [shape: bf16[32,32], index: 4, kind: input, shape index: {}]   ;;  %s764_s5 = inlined_call_operand.vmem [shape: f32[1,32], index: 5, kind: input, shape index: {}]   ;;  %s765_s6 = inlined_call_operand.vmem [shape: f32[2,8,32], index: 6, kind: output, shape index: {}]  }
   0x1   :  { %s696_s23 = smov 0  }
   0x2 LB: > { %s28_s24 = sadd.s32 1, %s651_s22  ;;  %p556_p0 = scmp.ge.s32.totalorder %s655_s23, 1  ;;  %s655_s23 = sphi %s696_s23, %s16_s23   ;;  %s651_s22 = sphi %s694_s22, %s767_s22   ;;  %s647_s21 = sphi %s692_s21, %s766_s21  }
   0x3   : > { %p30_p1 = scmp.ge.s32.totalorder %s28_s24, 2  ;;  %p246_p2 = scmp.lt.s32.totalorder %s655_s23, 3 }
   0x5   : > { %s769_s24 = smov (%p30_p1, %s28_s24), 0  ;;  %p247_p3 = pnand %p556_p0, %p246_p2 }
   0x6   : > { %p289_p4 = scmp.lt.s32.totalorder (!%p247_p3), %s647_s21, 1 }
   0x7   : > { %250 = sbr.rel (%p247_p3) target bundleno = 340 (0x154), region = 44 }
   0xc   : > { %v590_v0 = vld [vmem:[%s761_s2 + $0x8] sm:$0xff]  ;;  %v589_v1 = vld [vmem:[%s761_s2] sm:$0xff]  ;;  %s771_s21 = smov (!%p289_p4, %s647_s21), 1  ;;  %vm339_vm0 = vcmask 261120  }
   0xd   : > { %352 = vmatpush.bf16.msra.mxu0 %v590_v0  ;;  %593 = vmatpush.bf16.msra.mxu2 %v590_v0  ;;  %s587_s29 = sshll.u32 %s771_s21, 5  ;;  %v592_v8 = vld [vmem:[%s763_s4 + $0x8] sm:$0xff]  ;;  %v591_v9 = vld [vmem:[%s763_s4] sm:$0xff]  ;;  %s561_s20 = sshll.u32 %s771_s21, 3 }
   0xe   : > { %s296_s8 = scalar_lea.vmem %s759_s0, %s587_s29  ;;  %403 = vmatpush.bf16.msra.mxu1 %v592_v8  ;;  %595 = vmatpush.bf16.msra.mxu3 %v592_v8  ;;  %v621_v11 = vld [vmem:[%s762_s3] ss:$0 sm:$0xff]  ;;  %s304_s19 = scalar_lea.vmem %s760_s1, %s587_s29 }
   0xf   : > { %v313_v2 = vld [vmem:[%s296_s8] sm:$0xff]  ;;  %v314_v3 = vld [vmem:[%s296_s8 + $0x8] sm:$0xff]  ;;  %v315_v5 = vld [vmem:[%s296_s8 + $0x10] sm:$0xff]  ;;  %s311_s27 = scalar_lea.vmem %s765_s6, %s561_s20 }
  0x10   : > { %v317_v4 = vpack.c.bf16 %v314_v3, %v313_v2  ;;  %v316_v6 = vld [vmem:[%s296_s8 + $0x18] sm:$0xff]  ;;  %v622_v27 = vld [vmem:[%s764_s5] ss:$0 sm:$0xff]  ;;  %v582_v50 = vld [vmem:[%s304_s19 + $0x8] sm:$0xff] }
  0x11   : > { %353 = vmatpush.bf16.msra.mxu0 %v589_v1  ;;  %594 = vmatpush.bf16.msra.mxu2 %v589_v1  ;;  %v318_v7 = vpack.c.bf16 %v316_v6, %v315_v5  ;;  %v427_v49 = vld [vmem:[%s304_s19] sm:$0xff]  ;;  %v583_v57 = vld [vmem:[%s304_s19 + $0x10] sm:$0xff]  ;;  %v584_v63 = vld [vmem:[%s304_s19 + $0x18] sm:$0xff] }
  0x12   : > { %404 = vmatpush.bf16.msra.mxu1 %v591_v9  ;;  %596 = vmatpush.bf16.msra.mxu3 %v591_v9 }
  0x14   : > { %570 = vmatmul.msk.bf16.vlgmr.msra.gmra.mxu0 %vm339_vm0, %v317_v4  ;;  %571 = vmatmul.msk.bf16.vlgmr.msra.gmra.mxu2 %vm339_vm0, %v318_v7 }
  0x91   : > { %v355_v10 = vpop.f32.mrf.mxu0 }
  0x92   : > { %v356_v12 = vadd.f32 %v621_v11, %v355_v10 }
  0x94   : > { %v365_v15 = vmax.f32 %v356_v12, 0.0 }
  0x97   : > { %v360_v13 = vpop.f32.mrf.mxu2 }
  0x98   : > { %v361_v19 = vadd.f32 %v621_v11, %v360_v13 }
  0x99   : > { %v357_v14 = vpop.f32.mrf.mxu0 }
  0x9a   : > { %v358_v16 = vadd.f32 %v621_v11, %v357_v14  ;;  %v367_v22 = vmax.f32 %v361_v19, 0.0 }
  0x9c   : > { %v366_v17 = vmax.f32 %v358_v16, 0.0 }
  0x9e   : > { %v369_v18 = vpack.c.bf16 %v366_v17, %v365_v15 }
  0x9f   : > { %v362_v20 = vpop.f32.mrf.mxu2 }
  0xa0   : > { %580 = vmatmul.msk.bf16.vlgmr.msra.gmra.mxu1 %vm339_vm0, %v369_v18  ;;  %v363_v21 = vadd.f32 %v621_v11, %v362_v20 }
  0xa2   : > { %v368_v23 = vmax.f32 %v363_v21, 0.0 }
  0xa4   : > { %v370_v24 = vpack.c.bf16 %v368_v23, %v367_v22 }
  0xa6   : > { %581 = vmatmul.msk.bf16.vlgmr.msra.gmra.mxu3 %vm339_vm0, %v370_v24 }
 0x11d   : > { %v406_v25 = vpop.f32.mrf.mxu1 }
 0x11e   : > { %v407_v30 = vadd.f32 %v622_v27, %v406_v25 }
 0x120   : > { %v416_v33 = vmul.f32 0.17677669, %v407_v30 }
 0x125   : > { %v408_v26 = vpop.f32.mrf.mxu1 }
 0x126   : > { %v409_v29 = vadd.f32 %v622_v27, %v408_v26 }
 0x128   : > { %v417_v32 = vmul.f32 0.17677669, %v409_v29 }
 0x129   : > { %v411_v28 = vpop.f32.mrf.mxu3 }
 0x12a   : > { %v412_v31 = vadd.f32 %v622_v27, %v411_v28  ;;  %v420_v36 = vmax.f32 %v416_v33, %v417_v32 }
 0x12c   : > { %v418_v34 = vmul.f32 0.17677669, %v412_v31 }
 0x12e   : > { %v421_v38 = vmax.f32 %v420_v36, %v418_v34 }
 0x131   : > { %v413_v35 = vpop.f32.mrf.mxu3 }
 0x132   : > { %v414_v37 = vadd.f32 %v622_v27, %v413_v35 }
 0x134   : > { %v419_v39 = vmul.f32 0.17677669, %v414_v37 }
 0x136   : > { %v422_v40 = vmax.f32 %v421_v38, %v419_v39 }
 0x138   : > { %v423_v41 = vsub.f32 %v416_v33, %v422_v40  ;;  %v430_v42 = vsub.f32 %v417_v32, %v422_v40  ;;  %v438_v43 = vsub.f32 %v418_v34, %v422_v40  ;;  %v446_v44 = vsub.f32 %v419_v39, %v422_v40 }
 0x13a   : > { %v424_v45 = vmul.f32 1.442695, %v423_v41  ;;  %v431_v46 = vmul.f32 1.442695, %v430_v42  ;;  %v439_v47 = vmul.f32 1.442695, %v438_v43 }
 0x13b   : > { %v447_v48 = vmul.f32 1.442695, %v446_v44 }
 0x13c   : > { %623 = vpow2.f32 %v424_v45 }
 0x13d   : > { %625 = vpow2.f32 %v431_v46 }
 0x13e   : > { %627 = vpow2.f32 %v439_v47 }
 0x13f   : > { %629 = vpow2.f32 %v447_v48 }
 0x142   : > { %v624_v51 = vpop.eup %623 }
 0x143   : > { %v626_v52 = vpop.eup %625  ;;  %v428_v53 = vmul.f32 %v624_v51, %v427_v49 }
 0x144   : > { %v433_v54 = vadd.f32 %v626_v52, %v624_v51  ;;  %v436_v55 = vmul.f32 %v626_v52, %v582_v50  ;;  %v628_v56 = vpop.eup %627 }
 0x145   : > { %v630_v59 = vpop.eup %629  ;;  %v444_v62 = vmul.f32 %v628_v56, %v583_v57 }
 0x146   : > { %v441_v58 = vadd.f32 %v628_v56, %v433_v54  ;;  %v437_v60 = vadd.f32 %v436_v55, %v428_v53  ;;  %v452_v1 = vmul.f32 %v630_v59, %v584_v63 }
 0x148   : > { %v449_v61 = vadd.f32 %v630_v59, %v441_v58  ;;  %v445_v0 = vadd.f32 %v444_v62, %v437_v60 }
 0x14a   : > { %631 = vrcp.f32 %v449_v61  ;;  %v453_v2 = vadd.f32 %v452_v1, %v445_v0 }
 0x150   : > { %v632_v3 = vpop.eup %631 }
 0x151   : > { %v455_v4 = vmul.f32 %v632_v3, %v453_v2 }
 0x153   : > { %456 = vst.msk [vmem:[%s311_s27] sm:$0xff] %vm339_vm0, %v455_v4 }
 0x154 PF: > { %s16_s23 = sadd.s32 1, %s655_s23   ;;  %s766_s21 = smov %s651_s22 }
 0x155   : > { %p13_p5 = scmp.ge.s32.totalorder %s16_s23, 4   ;;  %s767_s22 = smov %s769_s24 }
 0x157   :  { %15 = sbr.rel (!%p13_p5) target bundleno = 2 (0x2), region = 80 }

// kernel: _lambda_.34
= control target key start
LH: loop header
LB: loop body
LE: loop exit
PB: predicated region body
PF: predicated region fallthrough
CT: control target
= control target key end

     0   :  { %vm36_vm0 = vcmask 261120   ;;  %s105_s1 = inlined_call_operand.vmem [shape: bf16[32,128], index: 1, kind: input, shape index: {}]   ;;  %s106_s2 = inlined_call_operand.vmem [shape: f32[1,128], index: 2, kind: input, shape index: {}]   ;;  %s107_s0 = inlined_call_operand.vmem [shape: bf16[8,32], index: 0, kind: input, shape index: {}]   ;;  %s108_s3 = inlined_call_operand.vmem [shape: f32[8,128], index: 3, kind: output, shape index: {}]  }
   0x1   :  { %v68_v0 = vld [vmem:[%s105_s1 + $0x8] sm:$0xff]  ;;  %v67_v1 = vld [vmem:[%s105_s1] sm:$0xff] }
   0x2   :  { %46 = vmatpush.bf16.msra.mxu0 %v68_v0  ;;  %v15_v2 = vld [vmem:[%s107_s0] sm:$0xf] }
   0x3   :  { %v69_v3 = vld [vmem:[%s106_s2] ss:$0 sm:$0xff] }
   0x6   :  { %47 = vmatpush.bf16.msra.mxu0 %v67_v1 }
   0x9   :  { %66 = vmatmul.msk.bf16.vlgmr.msra.gmra.mxu0 %vm36_vm0, %v15_v2 }
  0x86   :  { %v49_v4 = vpop.f32.mrf.mxu0 }
  0x87   :  { %v50_v5 = vadd.f32 %v69_v3, %v49_v4 }
  0x89   :  { %53 = vst [vmem:[%s108_s3] sm:$0xff] %v50_v5 }
  0x8e   :  { %v51_v6 = vpop.f32.mrf.mxu0 }

// kernel: _lambda_.35
= control target key start
LH: loop header
LB: loop body
LE: loop exit
PB: predicated region body
PF: predicated region fallthrough
CT: control target
= control target key end

     0   :  { %s814_s0 = inlined_call_operand.vmem [shape: bf16[2,128], index: 0, kind: input, shape index: {}]   ;;  %s815_s1 = inlined_call_operand.vmem [shape: bf16[128,256], index: 1, kind: input, shape index: {}]   ;;  %s816_s2 = inlined_call_operand.vmem [shape: f32[1,256], index: 2, kind: input, shape index: {}]   ;;  %s817_s3 = inlined_call_operand.vmem [shape: bf16[256,64], index: 3, kind: input, shape index: {}]   ;;  %s818_s4 = inlined_call_operand.vmem [shape: f32[1,64], index: 4, kind: input, shape index: {}]   ;;  %s819_s5 = inlined_call_operand.vmem [shape: bf16[64,5], index: 5, kind: input, shape index: {}]   ;;  %s820_s6 = inlined_call_operand.vmem [shape: f32[1,5], index: 6, kind: input, shape index: {}]   ;;  %s821_s7 = inlined_call_operand.hbm [shape: f32[2,5], index: 7, kind: output, shape index: {}]  }
   0x1   :  { %v450_v0 = vld [vmem:[%s815_s1 + $0x70] sm:$0xf]  ;;  %v552_v1 = vld [vmem:[%s815_s1 + $0x74] sm:$0xf0]  ;;  %v551_v2 = vld [vmem:[%s815_s1 + $0x74] sm:$0xf] }
   0x2   :  { %v451_v3 = vor.u32 %v552_v1, %v450_v0  ;;  %v452_v4 = vld [vmem:[%s815_s1 + $0x78] sm:$0xf0]  ;;  %v442_v5 = vld [vmem:[%s815_s1 + $0x60] sm:$0xf]  ;;  %v550_v6 = vld [vmem:[%s815_s1 + $0x64] sm:$0xf0] }
   0x3   :  { %v455_v7 = vor.u32 %v551_v2, %v452_v4  ;;  %v549_v8 = vld [vmem:[%s815_s1 + $0x64] sm:$0xf]  ;;  %v444_v9 = vld [vmem:[%s815_s1 + $0x68] sm:$0xf0]  ;;  %v443_v10 = vor.u32 %v550_v6, %v442_v5  ;;  %v434_v12 = vld [vmem:[%s815_s1 + $0x50] sm:$0xf] }
   0x4   :  { %131 = vmatpush.bf16.msra.mxu0 %v451_v3  ;;  %v447_v11 = vor.u32 %v549_v8, %v444_v9  ;;  %v548_v13 = vld [vmem:[%s815_s1 + $0x54] sm:$0xf0]  ;;  %v547_v14 = vld [vmem:[%s815_s1 + $0x54] sm:$0xf]  ;;  %v436_v15 = vld [vmem:[%s815_s1 + $0x58] sm:$0xf0] }
   0x5   :  { %144 = vmatpush.bf16.msra.mxu1 %v455_v7  ;;  %v435_v16 = vor.u32 %v548_v13, %v434_v12  ;;  %v439_v17 = vor.u32 %v547_v14, %v436_v15  ;;  %v426_v18 = vld [vmem:[%s815_s1 + $0x40] sm:$0xf]  ;;  %v546_v19 = vld [vmem:[%s815_s1 + $0x44] sm:$0xf0]  ;;  %v545_v20 = vld [vmem:[%s815_s1 + $0x44] sm:$0xf] }
   0x6   :  { %v428_v21 = vld [vmem:[%s815_s1 + $0x48] sm:$0xf0]  ;;  %v427_v22 = vor.u32 %v546_v19, %v426_v18  ;;  %v560_v23 = vld [vmem:[%s817_s3 + $0x38] sm:$0xff]  ;;  %v418_v26 = vld [vmem:[%s815_s1 + $0x30] sm:$0xf] }
   0x7   :  { %v568_v24 = vld [vmem:[%s817_s3 + $0x78] sm:$0xff]  ;;  %v431_v25 = vor.u32 %v545_v20, %v428_v21  ;;  %v543_v28 = vld [vmem:[%s815_s1 + $0x34] sm:$0xf]  ;;  %293 = vmatpush.bf16.msra.mxu2 %v560_v23  ;;  %v410_v33 = vld [vmem:[%s815_s1 + $0x20] sm:$0xf] }
   0x8   :  { %132 = vmatpush.bf16.msra.mxu0 %v443_v10  ;;  %v544_v27 = vld [vmem:[%s815_s1 + $0x34] sm:$0xf0]  ;;  %v420_v29 = vld [vmem:[%s815_s1 + $0x38] sm:$0xf0]  ;;  %306 = vmatpush.bf16.msra.mxu3 %v568_v24  ;;  %v559_v30 = vld [vmem:[%s817_s3 + $0x30] sm:$0xff] }
   0x9   :  { %145 = vmatpush.bf16.msra.mxu1 %v447_v11  ;;  %v567_v31 = vld [vmem:[%s817_s3 + $0x70] sm:$0xff]  ;;  %v419_v32 = vor.u32 %v544_v27, %v418_v26  ;;  %v423_v34 = vor.u32 %v543_v28, %v420_v29  ;;  %v542_v35 = vld [vmem:[%s815_s1 + $0x24] sm:$0xf0]  ;;  %v541_v36 = vld [vmem:[%s815_s1 + $0x24] sm:$0xf] }
   0xc   :  { %133 = vmatpush.bf16.msra.mxu0 %v435_v16 }
   0xd   :  { %146 = vmatpush.bf16.msra.mxu1 %v439_v17 }
  0x10   :  { %134 = vmatpush.bf16.msra.mxu0 %v427_v22 }
  0x11   :  { %147 = vmatpush.bf16.msra.mxu1 %v431_v25 }
  0x12   :  { %12 = vsyncpa [#allocation3], 0  ;;  %v412_v37 = vld [vmem:[%s815_s1 + $0x28] sm:$0xf0]  ;;  %294 = vmatpush.bf16.msra.mxu2 %v559_v30  ;;  %307 = vmatpush.bf16.msra.mxu3 %v567_v31  ;;  %v411_v40 = vor.u32 %v542_v35, %v410_v33  ;;  %v402_v42 = vld [vmem:[%s815_s1 + $0x10] sm:$0xf] }
  0x13   :  { %v558_v38 = vld [vmem:[%s817_s3 + $0x28] sm:$0xff]  ;;  %v415_v41 = vor.u32 %v541_v36, %v412_v37  ;;  %v540_v43 = vld [vmem:[%s815_s1 + $0x14] sm:$0xf0]  ;;  %v539_v44 = vld [vmem:[%s815_s1 + $0x14] sm:$0xf]  ;;  %vm357_vm0 = vcmask 523264  }
  0x14   :  { %v566_v39 = vld [vmem:[%s817_s3 + $0x68] sm:$0xff]  ;;  %135 = vmatpush.bf16.msra.mxu0 %v419_v32  ;;  %v404_v45 = vld [vmem:[%s815_s1 + $0x18] sm:$0xf0]  ;;  %v557_v46 = vld [vmem:[%s817_s3 + $0x20] sm:$0xff]  ;;  %v403_v48 = vor.u32 %v540_v43, %v402_v42  ;;  %vm374_vm1 = vcmask 33792  }
  0x15   :  { %148 = vmatpush.bf16.msra.mxu1 %v423_v34  ;;  %v565_v47 = vld [vmem:[%s817_s3 + $0x60] sm:$0xff]  ;;  %v407_v49 = vor.u32 %v539_v44, %v404_v45  ;;  %v538_v51 = vld [vmem:[%s815_s1 + $0x4] sm:$0xf0]  ;;  %v396_v53 = vld [vmem:[%s815_s1 + $0x8] sm:$0xf0] }
  0x16   :  { %295 = vmatpush.bf16.msra.mxu2 %v558_v38  ;;  %308 = vmatpush.bf16.msra.mxu3 %v566_v39  ;;  %v394_v50 = vld [vmem:[%s815_s1] sm:$0xf]  ;;  %v537_v52 = vld [vmem:[%s815_s1 + $0x4] sm:$0xf]  ;;  %v556_v54 = vld [vmem:[%s817_s3 + $0x18] sm:$0xff] }
  0x17   :  { %v564_v55 = vld [vmem:[%s817_s3 + $0x58] sm:$0xff]  ;;  %v395_v56 = vor.u32 %v538_v51, %v394_v50  ;;  %v399_v57 = vor.u32 %v537_v52, %v396_v53  ;;  %v555_v58 = vld [vmem:[%s817_s3 + $0x10] sm:$0xff]  ;;  %v28_v60 = vld [vmem:[%s814_s0] sm:$0x1] }
  0x18   :  { %136 = vmatpush.bf16.msra.mxu0 %v411_v40  ;;  %v563_v59 = vld [vmem:[%s817_s3 + $0x50] sm:$0xff]  ;;  %v554_v61 = vld [vmem:[%s817_s3 + $0x8] sm:$0xff]  ;;  %v553_v63 = vld [vmem:[%s817_s3] sm:$0xff] }
  0x19   :  { %149 = vmatpush.bf16.msra.mxu1 %v415_v41  ;;  %v562_v62 = vld [vmem:[%s817_s3 + $0x48] sm:$0xff]  ;;  %v561_v0 = vld [vmem:[%s817_s3 + $0x40] sm:$0xff]  ;;  %v572_v1 = vld [vmem:[%s819_s5 + $0x18] sm:$0xff] }
  0x1a   :  { %296 = vmatpush.bf16.msra.mxu2 %v557_v46  ;;  %309 = vmatpush.bf16.msra.mxu3 %v565_v47  ;;  %v571_v2 = vld [vmem:[%s819_s5 + $0x10] sm:$0xff]  ;;  %v45_v3 = vld [vmem:[%s816_s2] sm:$0x3]  ;;  %v570_v16 = vld [vmem:[%s819_s5 + $0x8] sm:$0xff] }
  0x1b   :  { %v47_v4 = vperm.slane %v45_v3, 0  ;;  %v48_v5 = vperm.slane %v45_v3, 1  ;;  %v569_v17 = vld [vmem:[%s819_s5] sm:$0xff]  ;;  %s602_s5 = smov [#allocation2]  }
  0x1c   :  { %137 = vmatpush.bf16.msra.mxu0 %v403_v48  ;;  %v574_v18 = vld [vmem:[%s818_s4] ss:$0 sm:$0xff]  ;;  %s381_s17 = sshll.u32 %s602_s5, 4  ;;  %s383_s4 = sshll.u32 %s821_s7, 4  ;;  %s382_s17 = int_to_ptr.vmem [resolvable:$true] %s381_s17  ;;  %s384_s4 = int_to_ptr.hbm [resolvable:$true] %s383_s4 }
  0x1d   :  { %150 = vmatpush.bf16.msra.mxu1 %v407_v49  ;;  %v575_v27 = vld [vmem:[%s820_s6] ss:$0 sm:$0xff] }
  0x1e   :  { %297 = vmatpush.bf16.msra.mxu2 %v556_v54  ;;  %310 = vmatpush.bf16.msra.mxu3 %v564_v55 }
  0x20   :  { %138 = vmatpush.bf16.msra.mxu0 %v395_v56 }
  0x21   :  { %151 = vmatpush.bf16.msra.mxu1 %v399_v57 }
  0x22   :  { %298 = vmatpush.bf16.msra.mxu2 %v555_v58  ;;  %311 = vmatpush.bf16.msra.mxu3 %v563_v59 }
  0x23   :  { %139 = vmatmul.bf16.vlgmr.msra.gmra.mxu0 %v28_v60 }
  0x24   :  { %152 = vmatmul.bf16.vlgmr.msra.gmra.mxu1 %v28_v60  ;;  %365 = vmatpush.bf16.msrb.mxu0 %v572_v1 }
  0x26   :  { %299 = vmatpush.bf16.msra.mxu2 %v554_v61  ;;  %312 = vmatpush.bf16.msra.mxu3 %v562_v62 }
  0x28   :  { %366 = vmatpush.bf16.msrb.mxu0 %v571_v2 }
  0x2a   :  { %300 = vmatpush.bf16.msra.mxu2 %v553_v63  ;;  %313 = vmatpush.bf16.msra.mxu3 %v561_v0 }
  0x2c   :  { %367 = vmatpush.bf16.msrb.mxu0 %v570_v16 }
  0x30   :  { %368 = vmatpush.bf16.msrb.mxu0 %v569_v17 }
  0xa0   :  { %v140_v6 = vpop.f32.mrf.mxu0 }
  0xa1   :  { %v141_v7 = vadd.f32 %v140_v6, %v47_v4  ;;  %v153_v8 = vpop.f32.mrf.mxu1 }
  0xa2   :  { %v154_v9 = vadd.f32 %v153_v8, %v48_v5 }
  0xa3   :  { %v157_v10 = vmax.f32 %v141_v7, 0.0 }
  0xa4   :  { %v158_v11 = vmax.f32 %v154_v9, 0.0 }
  0xa5   :  { %v191_v12 = vpack.c.bf16 %v157_v10, %v157_v10 }
  0xa6   :  { %v192_v13 = vpack.c.bf16 %v158_v11, %v158_v11 }
  0xa7   :  { %301 = vmatmul.bf16.vlgmr.msra.gmra.mxu2 %v191_v12 }
  0xa8   :  { %314 = vmatmul.bf16.vlgmr.msra.gmra.mxu3 %v192_v13  ;;  %v142_v14 = vpop.f32.mrf.mxu0 }
  0xa9   :  { %v155_v15 = vpop.f32.mrf.mxu1 }
 0x12a   :  { %v302_v19 = vpop.f32.mrf.mxu2 }
 0x12b   :  { %v303_v20 = vadd.f32 %v574_v18, %v302_v19  ;;  %v315_v21 = vpop.f32.mrf.mxu3 }
 0x12d   :  { %v316_v22 = vadd.f32 %v315_v21, %v303_v20 }
 0x12f   :  { %v319_v23 = vmax.f32 %v316_v22, 0.0 }
 0x131   :  { %v328_v24 = vpack.c.bf16 %v319_v23, %v319_v23 }
 0x132   :  { %v304_v25 = vpop.f32.mrf.mxu2 }
 0x133   :  { %v317_v26 = vpop.f32.mrf.mxu3  ;;  %536 = vmatmul.msk.bf16.vlgmr.msrb.gmra.mxu0 %vm357_vm0, %v328_v24 }
 0x1b0   :  { %v370_v28 = vpop.f32.mrf.mxu0 }
 0x1b1   :  { %v371_v29 = vadd.f32 %v575_v27, %v370_v28 }
 0x1b3   :  { %375 = vst.msk [vmem:[#allocation2] sm:$0x3] %vm374_vm1, %v371_v29 }
 0x1b4   :  { %386 = dma.vmem_to_hbm [thread:$0]  %s382_s17, 32, %s384_s4, [#allocation3]  }
 0x1b8   :  { %v372_v30 = vpop.f32.mrf.mxu0 }
 0x1b9   :  { %600 = dma.done.wait [#allocation3], 32  }
 0x1ba   :  { %601 = vsyncadd [#allocation3], 4294967264 }
 0x1bb   :  { %391 = vsyncpa [#allocation3], 1 }

</bundles_post_ra>
